<compile_context>
chip_gen: v7x
topology: tpu7x:2x2x1
jax: 0.10.0
libtpu: 0.0.40
codegen_flags: <defaults>
</compile_context>

<pallas_src>
import jax
import jax.numpy as jnp
import numpy as np
from jax.experimental import pallas as pl
from jax.experimental.pallas import tpu as pltpu


def _round_up(v, m):
    return (v + m - 1) // m * m


def _pick_batch_block(n, per_image_bytes, budget_bytes):
    """Largest divisor of n whose per-step footprint fits the VMEM budget."""
    nb = 1
    for cand in range(1, n + 1):
        if n % cand == 0 and cand * per_image_bytes <= budget_bytes:
            nb = cand
    return nb


def decom_block_pallas(x_nchw, filter_bank, w2, compute_dtype=jnp.bfloat16):
    """x_nchw: (N, Cin, H, W); filter_bank: (n_basis, basis_size, k, k);
    w2: (out_channels, group*n_basis, 1, 1).  Returns (N, out_channels, H, W)."""
    N, Cin, H, W = x_nchw.shape
    n_basis, basis_size, k, _ = filter_bank.shape
    group = Cin // basis_size
    out_c = w2.shape[0]
    pad = k // 2
    Hp, Wp = H + 2 * pad, W + 2 * pad
    kk = k * k
    K = kk * Cin
    out_c_pad = _round_up(out_c, 128)          # lane-dense output width

    # --- wrapper glue (fused by XLA under jit): NCHW->NHWC + halo pad ---
    x_nhwc = jnp.transpose(x_nchw, (0, 2, 3, 1))                   # (N,H,W,Cin)
    x_p = jnp.pad(x_nhwc, ((0, 0), (pad, pad), (pad, pad), (0, 0)))

    # --- fuse the shared filter_bank (replicated per group) with the 1x1 conv:
    #     w_fused[t*Cin + g*bs + i, co] = sum_b fb[b, i, dy, dx] * w2[co, g*n_basis+b]
    #     Dense and exact (the 1x1 conv mixes groups anyway). ---
    fb_taps = jnp.transpose(filter_bank, (2, 3, 1, 0)).reshape(kk, basis_size, n_basis)
    w2_r = w2.reshape(out_c, group, n_basis)
    w_fused = jnp.einsum("tib,cgb->tgic", fb_taps, w2_r)           # (kk,g,bs,out_c)
    w_fused = w_fused.reshape(K, out_c)                            # (k*k*Cin, out_c)
    w_fused = jnp.pad(w_fused, ((0, 0), (0, out_c_pad - out_c)))   # lane padding
    w_fused = w_fused.astype(compute_dtype)

    # --- batch blocking: pick nb (divisor of N) that fits a VMEM budget.
    #     Per image: padded input tile + bf16 im2col matrix + fp32 output tile,
    #     x2 for double-buffered input/output.
    in_itemsize = x_nchw.dtype.itemsize
    out_itemsize = x_nchw.dtype.itemsize
    per_image_bytes = 2 * (Hp * Wp * Cin * in_itemsize
                           + H * W * out_c_pad * out_itemsize) + H * W * K * 2
    budget = 20 * 1024 * 1024                  # leave headroom under the 32 MiB limit
    nb = _pick_batch_block(N, per_image_bytes, budget)

    # --- Pallas kernel: one im2col matmul per image, nb images per grid step ---
    def _kernel(xp_ref, wf_ref, o_ref):
        wf = wf_ref[...]                                           # (K, out_c_pad), resident
        for b in range(nb):                                        # static unroll, nb is small
            xp = xp_ref[b]                                         # (Hp, Wp, Cin)
            # im2col: tap (dy, dx) -> shifted (H, W, Cin) window; k*k taps stacked
            # along the channel (lane) axis, then a single leading-dim merge.
            cols = jnp.concatenate(
                [xp[dy:dy + H, dx:dx + W, :] for dy in range(k) for dx in range(k)],
                axis=-1)                                           # (H, W, k*k*Cin)
            cols = cols.reshape(H * W, K).astype(compute_dtype)
            # One MXU matmul: M = H*W, contraction = k*k*Cin, N = out_c_pad
            # (128-lane dense), fp32 accumulation.
            out = jnp.dot(cols, wf, preferred_element_type=jnp.float32)
            o_ref[b] = out.astype(o_ref.dtype)

    y_p = pl.pallas_call(
        _kernel,
        out_shape=jax.ShapeDtypeStruct((N, H * W, out_c_pad), x_nchw.dtype),
        grid=(N // nb,),
        in_specs=[
            pl.BlockSpec((nb, Hp, Wp, Cin), lambda n: (n, 0, 0, 0)),
            pl.BlockSpec((K, out_c_pad), lambda n: (0, 0)),        # resident weight
        ],
        out_specs=pl.BlockSpec((nb, H * W, out_c_pad), lambda n: (n, 0, 0)),
        compiler_params=pltpu.CompilerParams(
            dimension_semantics=("parallel",),
            vmem_limit_bytes=32 * 1024 * 1024),
    )(x_p, w_fused)

    # Slice off the lane padding, restore NCHW.
    y = y_p[..., :out_c].reshape(N, H, W, out_c)
    return jnp.transpose(y, (0, 3, 1, 2))


def decom_block_reference(x_nchw, filter_bank, w2):
    """Plain-JAX fp32 reference matching the PyTorch forward (for validation)."""
    n_basis, basis_size, k, _ = filter_bank.shape
    group = x_nchw.shape[1] // basis_size
    # conv_basis: grouped conv with the filter bank replicated per group
    # (same as torch.split + F.conv2d per chunk + cat along channels).
    rhs = jnp.tile(filter_bank, (group, 1, 1, 1))  # (group*n_basis, basis_size, k, k)
    y = jax.lax.conv_general_dilated(
        x_nchw, rhs, window_strides=(1, 1), padding=[(k // 2, k // 2)] * 2,
        dimension_numbers=("NCHW", "OIHW", "NCHW"),
        feature_group_count=group, precision=jax.lax.Precision.HIGHEST)
    # 1x1 conv
    y = jax.lax.conv_general_dilated(
        y, w2, window_strides=(1, 1), padding=[(0, 0), (0, 0)],
        dimension_numbers=("NCHW", "OIHW", "NCHW"),
        precision=jax.lax.Precision.HIGHEST)
    return y


if __name__ == "__main__":
    # Small, DecomBlock-consistent shapes.
    N, H, W = 2, 16, 16
    in_channels, basis_size, n_basis = 8, 4, 6
    out_channels, kernel_size = 16, 3
    group = in_channels // basis_size          # 2
    mid_channels = group * n_basis             # 12

    key = jax.random.PRNGKey(0)
    kx, kfb, kw2 = jax.random.split(key, 3)
    x = jax.random.normal(kx, (N, in_channels, H, W), jnp.float32)
    filter_bank = 0.1 * jax.random.normal(
        kfb, (n_basis, basis_size, kernel_size, kernel_size), jnp.float32)
    w2 = 0.1 * jax.random.normal(
        kw2, (out_channels, mid_channels, 1, 1), jnp.float32)
    # Biases omitted: DecomBlock is constructed with bias=False.

    decom_fn = jax.jit(decom_block_pallas)
    y = jax.block_until_ready(decom_fn(x, filter_bank, w2))
    y_ref = jax.block_until_ready(decom_block_reference(x, filter_bank, w2))

    assert y.shape == (N, out_channels, H, W)
    # bf16 MXU operands with fp32 accumulation -> looser tolerance vs fp32 ref.
    np.testing.assert_allclose(np.asarray(y), np.asarray(y_ref), rtol=2e-2, atol=2e-2)
    print("KERNEL_OK")
</pallas_src>

<mosaic_0001>
module attributes {stable_mosaic.version = 11 : i64} {
  func.func @_kernel(%arg0: i32, %arg1: memref<2x18x18x8xf32, #tpu.memory_space<vmem>>, %arg2: memref<72x128xbf16, #tpu.memory_space<vmem>>, %arg3: memref<2x256x128xf32, #tpu.memory_space<vmem>>) attributes {dimension_semantics = [#tpu.dimension_semantics<parallel>], iteration_bounds = array<i64: 1>, scalar_prefetch = 0 : i64, scratch_operands = 0 : i64, tpu.core_type = #tpu.core_type<tc>, window_params = [{transform_indices = @transform_0, window_bounds = array<i64: 2, 18, 18, 8>}, {pipeline_mode = #tpu.pipeline_mode<synchronous>, transform_indices = @transform_1, window_bounds = array<i64: 72, 128>}, {transform_indices = @transform_2, window_bounds = array<i64: 2, 256, 128>}]} {
    %c0 = arith.constant 0 : index
    %c0_0 = arith.constant 0 : index
    %0 = vector.load %arg2[%c0, %c0_0] : memref<72x128xbf16, #tpu.memory_space<vmem>>, vector<72x128xbf16>
    %c0_1 = arith.constant 0 : index
    %c0_2 = arith.constant 0 : index
    %c0_3 = arith.constant 0 : index
    %c0_4 = arith.constant 0 : index
    %1 = vector.load %arg1[%c0_1, %c0_2, %c0_3, %c0_4] : memref<2x18x18x8xf32, #tpu.memory_space<vmem>>, vector<1x18x18x8xf32>
    %2 = vector.shape_cast %1 : vector<1x18x18x8xf32> to vector<18x18x8xf32>
    %3 = vector.extract_strided_slice %2 {offsets = [0, 0, 0], sizes = [16, 16, 8], strides = [1, 1, 1]} : vector<18x18x8xf32> to vector<16x16x8xf32>
    %4 = vector.extract_strided_slice %2 {offsets = [0, 1, 0], sizes = [16, 16, 8], strides = [1, 1, 1]} : vector<18x18x8xf32> to vector<16x16x8xf32>
    %5 = vector.extract_strided_slice %2 {offsets = [0, 2, 0], sizes = [16, 16, 8], strides = [1, 1, 1]} : vector<18x18x8xf32> to vector<16x16x8xf32>
    %6 = vector.extract_strided_slice %2 {offsets = [1, 0, 0], sizes = [16, 16, 8], strides = [1, 1, 1]} : vector<18x18x8xf32> to vector<16x16x8xf32>
    %7 = vector.extract_strided_slice %2 {offsets = [1, 1, 0], sizes = [16, 16, 8], strides = [1, 1, 1]} : vector<18x18x8xf32> to vector<16x16x8xf32>
    %8 = vector.extract_strided_slice %2 {offsets = [1, 2, 0], sizes = [16, 16, 8], strides = [1, 1, 1]} : vector<18x18x8xf32> to vector<16x16x8xf32>
    %9 = vector.extract_strided_slice %2 {offsets = [2, 0, 0], sizes = [16, 16, 8], strides = [1, 1, 1]} : vector<18x18x8xf32> to vector<16x16x8xf32>
    %10 = vector.extract_strided_slice %2 {offsets = [2, 1, 0], sizes = [16, 16, 8], strides = [1, 1, 1]} : vector<18x18x8xf32> to vector<16x16x8xf32>
    %11 = vector.extract_strided_slice %2 {offsets = [2, 2, 0], sizes = [16, 16, 8], strides = [1, 1, 1]} : vector<18x18x8xf32> to vector<16x16x8xf32>
    %12 = tpu.concatenate %3, %4, %5, %6, %7, %8, %9, %10, %11 in 2 : vector<16x16x8xf32>, vector<16x16x8xf32>, vector<16x16x8xf32>, vector<16x16x8xf32>, vector<16x16x8xf32>, vector<16x16x8xf32>, vector<16x16x8xf32>, vector<16x16x8xf32>, vector<16x16x8xf32> -> vector<16x16x72xf32>
    %13 = vector.shape_cast %12 : vector<16x16x72xf32> to vector<256x72xf32>
    %14 = arith.truncf %13 : vector<256x72xf32> to vector<256x72xbf16>
    %cst = arith.constant dense<0.000000e+00> : vector<256x128xf32>
    %15 = tpu.matmul %14, %0, %cst {dimension_numbers = #tpu.dot_dimension_numbers<[1], [0], [0], [1], [0, 0, 1, 1], [], []>} : vector<256x72xbf16>, vector<72x128xbf16>, vector<256x128xf32> -> vector<256x128xf32>
    %c0_5 = arith.constant 0 : index
    %c0_6 = arith.constant 0 : index
    %c0_7 = arith.constant 0 : index
    %16 = vector.load %arg3[%c0_5, %c0_6, %c0_7] : memref<2x256x128xf32, #tpu.memory_space<vmem>>, vector<1x256x128xf32>
    %17 = vector.shape_cast %16 : vector<1x256x128xf32> to vector<256x128xf32>
    %18 = vector.shape_cast %15 : vector<256x128xf32> to vector<1x256x128xf32>
    tpu.vector_store %arg3[%c0_5, %c0_6, %c0_7], %18 {strides = array<i32>} : memref<2x256x128xf32, #tpu.memory_space<vmem>>, vector<1x256x128xf32>,
    %c1 = arith.constant 1 : index
    %c0_8 = arith.constant 0 : index
    %c0_9 = arith.constant 0 : index
    %c0_10 = arith.constant 0 : index
    %19 = vector.load %arg1[%c1, %c0_8, %c0_9, %c0_10] : memref<2x18x18x8xf32, #tpu.memory_space<vmem>>, vector<1x18x18x8xf32>
    %20 = vector.shape_cast %19 : vector<1x18x18x8xf32> to vector<18x18x8xf32>
    %21 = vector.extract_strided_slice %20 {offsets = [0, 0, 0], sizes = [16, 16, 8], strides = [1, 1, 1]} : vector<18x18x8xf32> to vector<16x16x8xf32>
    %22 = vector.extract_strided_slice %20 {offsets = [0, 1, 0], sizes = [16, 16, 8], strides = [1, 1, 1]} : vector<18x18x8xf32> to vector<16x16x8xf32>
    %23 = vector.extract_strided_slice %20 {offsets = [0, 2, 0], sizes = [16, 16, 8], strides = [1, 1, 1]} : vector<18x18x8xf32> to vector<16x16x8xf32>
    %24 = vector.extract_strided_slice %20 {offsets = [1, 0, 0], sizes = [16, 16, 8], strides = [1, 1, 1]} : vector<18x18x8xf32> to vector<16x16x8xf32>
    %25 = vector.extract_strided_slice %20 {offsets = [1, 1, 0], sizes = [16, 16, 8], strides = [1, 1, 1]} : vector<18x18x8xf32> to vector<16x16x8xf32>
    %26 = vector.extract_strided_slice %20 {offsets = [1, 2, 0], sizes = [16, 16, 8], strides = [1, 1, 1]} : vector<18x18x8xf32> to vector<16x16x8xf32>
    %27 = vector.extract_strided_slice %20 {offsets = [2, 0, 0], sizes = [16, 16, 8], strides = [1, 1, 1]} : vector<18x18x8xf32> to vector<16x16x8xf32>
    %28 = vector.extract_strided_slice %20 {offsets = [2, 1, 0], sizes = [16, 16, 8], strides = [1, 1, 1]} : vector<18x18x8xf32> to vector<16x16x8xf32>
    %29 = vector.extract_strided_slice %20 {offsets = [2, 2, 0], sizes = [16, 16, 8], strides = [1, 1, 1]} : vector<18x18x8xf32> to vector<16x16x8xf32>
    %30 = tpu.concatenate %21, %22, %23, %24, %25, %26, %27, %28, %29 in 2 : vector<16x16x8xf32>, vector<16x16x8xf32>, vector<16x16x8xf32>, vector<16x16x8xf32>, vector<16x16x8xf32>, vector<16x16x8xf32>, vector<16x16x8xf32>, vector<16x16x8xf32>, vector<16x16x8xf32> -> vector<16x16x72xf32>
    %31 = vector.shape_cast %30 : vector<16x16x72xf32> to vector<256x72xf32>
    %32 = arith.truncf %31 : vector<256x72xf32> to vector<256x72xbf16>
    %cst_11 = arith.constant dense<0.000000e+00> : vector<256x128xf32>
    %33 = tpu.matmul %32, %0, %cst_11 {dimension_numbers = #tpu.dot_dimension_numbers<[1], [0], [0], [1], [0, 0, 1, 1], [], []>} : vector<256x72xbf16>, vector<72x128xbf16>, vector<256x128xf32> -> vector<256x128xf32>
    %c1_12 = arith.constant 1 : index
    %c0_13 = arith.constant 0 : index
    %c0_14 = arith.constant 0 : index
    %34 = vector.load %arg3[%c1_12, %c0_13, %c0_14] : memref<2x256x128xf32, #tpu.memory_space<vmem>>, vector<1x256x128xf32>
    %35 = vector.shape_cast %34 : vector<1x256x128xf32> to vector<256x128xf32>
    %36 = vector.shape_cast %33 : vector<256x128xf32> to vector<1x256x128xf32>
    tpu.vector_store %arg3[%c1_12, %c0_13, %c0_14], %36 {strides = array<i32>} : memref<2x256x128xf32, #tpu.memory_space<vmem>>, vector<1x256x128xf32>,
    return
  }
  func.func @transform_0(%arg0: i32) -> (i32, i32, i32, i32) {
    %c0_i32 = arith.constant 0 : i32
    %c0_i32_0 = arith.constant 0 : i32
    %c0_i32_1 = arith.constant 0 : i32
    %c0_i32_2 = arith.constant 0 : i32
    return %arg0, %c0_i32, %c0_i32_0, %c0_i32_1 : i32, i32, i32, i32
  }
  func.func @transform_1(%arg0: i32) -> (i32, i32) {
    %c0_i32 = arith.constant 0 : i32
    %c0_i32_0 = arith.constant 0 : i32
    %c0_i32_1 = arith.constant 0 : i32
    return %c0_i32, %c0_i32_0 : i32, i32
  }
  func.func @transform_2(%arg0: i32) -> (i32, i32, i32) {
    %c0_i32 = arith.constant 0 : i32
    %c0_i32_0 = arith.constant 0 : i32
    %c0_i32_1 = arith.constant 0 : i32
    return %arg0, %c0_i32, %c0_i32_0 : i32, i32, i32
  }
}

</mosaic_0001>

<bundles_post_ra>
// kernel: decom_block_pallas.1
= control target key start
LH: loop header
LB: loop body
LE: loop exit
PB: predicated region body
PF: predicated region fallthrough
CT: control target
= control target key end

     0   :  { %vm123_vm0 = vcmask 1046528   ;;  %s4841_s13 = smov 8   ;;  %vm300_vm1 = vcmask 1045504   ;;  %s4842_s24 = smov 16   ;;  %vm1079_vm2 = vcmask 64512   ;;  %vm1112_vm3 = vcmask 130048   ;;  %s8745_s0 = inlined_call_operand.vmem [shape: f32[2,18,18,8], index: 0, kind: input, shape index: {}]   ;;  %s8746_s1 = inlined_call_operand.vmem [shape: bf16[72,128], index: 1, kind: input, shape index: {}]   ;;  %s8747_s2 = inlined_call_operand.vmem [shape: f32[2,256,128], index: 2, kind: output, shape index: {}]  }
   0x1   :  { %v4867_v0 = vld [vmem:[%s8745_s0 + $0x30] sm:$0xff]  ;;  %v4872_v1 = vld [vmem:[%s8745_s0 + $0x38] sm:$0xff]  ;;  %v4877_v2 = vld [vmem:[%s8745_s0 + $0x40] sm:$0x3]  ;;  %s4843_s3 = smov 24   ;;  %s4844_s4 = smov 32  }
   0x2   :  { %v134_v3 = vrot.slane %v4867_v0, 1  ;;  %v135_v4 = vrot.slane %v4872_v1, 1  ;;  %v137_v5 = vrot.slane %v4877_v2, 1  ;;  %v4885_v6 = vld [vmem:[%s8745_s0] sm:$0xff]  ;;  %v4890_v7 = vld [vmem:[%s8745_s0 + $0x8] sm:$0xff]  ;;  %v4907_v12 = vld [vmem:[%s8745_s0 + $0x50] sm:$0xff] }
   0x3   :  { %v4895_v8 = vld [vmem:[%s8745_s0 + $0x10] sm:$0x3]  ;;  %v124_v9 = vrot.slane %v4885_v6, 1  ;;  %v125_v10 = vrot.slane %v4890_v7, 1  ;;  %v4902_v11 = vld [vmem:[%s8745_s0 + $0x48] sm:$0xff]  ;;  %v4920_v17 = vld [vmem:[%s8745_s0 + $0x18] sm:$0xff] }
   0x4   :  { %v136_v13 = vsel %vm123_vm0, %v134_v3, %v135_v4  ;;  %v138_v14 = vsel %vm123_vm0, %v135_v4, %v137_v5  ;;  %v127_v15 = vrot.slane %v4895_v8, 1  ;;  %v4915_v16 = vld [vmem:[%s8745_s0 + $0x58] sm:$0x3]  ;;  %v4925_v18 = vld [vmem:[%s8745_s0 + $0x20] sm:$0xff]  ;;  %v139_v21 = vrot.slane %v4902_v11, 1  ;;  %v4969_v36 = vld [vmem:[%s8745_s0 + $0x68] sm:$0xff] }
   0x5   :  { %v4927_v19 = vpack.i.bf16 %v138_v14, %v136_v13  ;;  %v126_v20 = vsel %vm123_vm0, %v124_v9, %v125_v10  ;;  %v140_v22 = vrot.slane %v4907_v12, 1  ;;  %v4935_v23 = vld [vmem:[%s8745_s0 + $0x28] sm:$0x3]  ;;  %v4940_v24 = vld [vmem:[%s8745_s0 + $0x78] sm:$0xff]  ;;  %v4945_v25 = vld [vmem:[%s8745_s0 + $0x80] sm:$0xff]  ;;  %v142_v27 = vrot.slane %v4915_v16, 1 }
   0x6   :  { %v128_v26 = vsel %vm123_vm0, %v125_v10, %v127_v15  ;;  %v129_v28 = vrot.slane %v4920_v17, 1  ;;  %v130_v29 = vrot.slane %v4925_v18, 1  ;;  %v4954_v30 = vld [vmem:[%s8745_s0 + $0x88] sm:$0x3]  ;;  %v4959_v31 = vld [vmem:[%s8745_s0 + $0x60] sm:$0xff]  ;;  %v132_v34 = vrot.slane %v4935_v23, 1 }
   0x7   :  { %8999 = vst [vmem:[#allocation2_spill] sm:$0xff] %v4927_v19  ;;  %3477 = vrot.lane.b32.xlu1 %v4927_v19, %s4841_s13  ;;  %v3466_v32 = vpack.i.bf16 %v128_v26, %v126_v20  ;;  %v141_v33 = vsel %vm123_vm0, %v139_v21, %v140_v22  ;;  %v149_v35 = vrot.slane %v4940_v24, 1  ;;  %v4974_v37 = vld [vmem:[%s8745_s0 + $0x70] sm:$0x3]  ;;  %v143_v38 = vsel %vm123_vm0, %v140_v22, %v142_v27  ;;  %v4983_v42 = vld [vmem:[%s8745_s0 + $0xa8] sm:$0xff]  ;;  %v5009_v50 = vld [vmem:[%s8745_s0 + $0x98] sm:$0xff] }
   0x8   :  { %v131_v39 = vsel %vm123_vm0, %v129_v28, %v130_v29  ;;  %v150_v40 = vrot.slane %v4945_v25, 1  ;;  %v152_v41 = vrot.slane %v4954_v30, 1  ;;  %v4988_v43 = vld [vmem:[%s8745_s0 + $0xb0] sm:$0xff]  ;;  %v4991_v44 = vpack.i.bf16 %v143_v38, %v141_v33  ;;  %v4999_v48 = vld [vmem:[%s8745_s0 + $0xb8] sm:$0x3]  ;;  %v5036_v61 = vld [vmem:[%s8745_s0 + $0xe0] sm:$0xff] }
   0x9   :  { %3467 = vrot.lane.b32.xlu0 %v3466_v32, %s4841_s13  ;;  %v133_v45 = vsel %vm123_vm0, %v130_v29, %v132_v34  ;;  %v144_v46 = vrot.slane %v4959_v31, 1  ;;  %v145_v47 = vrot.slane %v4969_v36, 1  ;;  %v5004_v49 = vld [vmem:[%s8745_s0 + $0x90] sm:$0xff]  ;;  %v147_v54 = vrot.slane %v4974_v37, 1  ;;  %v5019_v55 = vld [vmem:[%s8745_s0 + $0xa0] sm:$0x3] }
   0xa   :  { %9000 = vst [vmem:[#allocation3_spill] sm:$0xff] %v4991_v44  ;;  %v5011_v51 = vpack.i.bf16 %v133_v45, %v131_v39  ;;  %v151_v52 = vsel %vm123_vm0, %v149_v35, %v150_v40  ;;  %v153_v53 = vsel %vm123_vm0, %v150_v40, %v152_v41  ;;  %v5024_v56 = vld [vmem:[%s8745_s0 + $0xd8] sm:$0xff]  ;;  %v159_v59 = vrot.slane %v4983_v42, 1  ;;  %v5041_v62 = vld [vmem:[%s8745_s0 + $0xe8] sm:$0x3]  ;;  %v5050_v9 = vld [vmem:[%s8745_s0 + $0xc0] sm:$0xff] }
   0xb   :  { %3482 = vrot.lane.b32.xlu1 %v4991_v44, %s4841_s13  ;;  %v5028_v57 = vpack.i.bf16 %v153_v53, %v151_v52  ;;  %v146_v58 = vsel %vm123_vm0, %v144_v46, %v145_v47  ;;  %v160_v60 = vrot.slane %v4988_v43, 1  ;;  %v148_v63 = vsel %vm123_vm0, %v145_v47, %v147_v54  ;;  %v5055_v10 = vld [vmem:[%s8745_s0 + $0xc8] sm:$0xff]  ;;  %v5067_v21 = vld [vmem:[%s8745_s0 + $0xd0] sm:$0x3]  ;;  %v5093_v39 = vld [vmem:[%s8745_s0 + $0x118] sm:$0x3] }
   0xc   :  { %9001 = vst [vmem:[#allocation4_spill] sm:$0xff] %v5011_v51  ;;  %v162_v3 = vrot.slane %v4999_v48, 1  ;;  %v154_v4 = vrot.slane %v5004_v49, 1  ;;  %v155_v5 = vrot.slane %v5009_v50, 1  ;;  %v5059_v13 = vpack.i.bf16 %v148_v63, %v146_v58  ;;  %v5076_v29 = vld [vmem:[%s8745_s0 + $0x108] sm:$0xff]  ;;  %v5081_v32 = vld [vmem:[%s8745_s0 + $0x110] sm:$0xff] }
   0xd   :  { %9002 = vst [vmem:[#allocation5_spill] sm:$0xff] %v5028_v57  ;;  %3472 = vrot.lane.b32.xlu0 %v5011_v51, %s4841_s13  ;;  %v161_v14 = vsel %vm123_vm0, %v159_v59, %v160_v60  ;;  %v157_v15 = vrot.slane %v5019_v55, 1  ;;  %v169_v20 = vrot.slane %v5024_v56, 1  ;;  %v170_v27 = vrot.slane %v5036_v61, 1  ;;  %v5098_v40 = vld [vmem:[%s8745_s0 + $0xf0] sm:$0xff]  ;;  %v5103_v41 = vld [vmem:[%s8745_s0 + $0xf8] sm:$0xff] }
   0xe   :  { %9003 = vst [vmem:[#allocation6_spill] sm:$0xff] %v5059_v13  ;;  %v163_v22 = vsel %vm123_vm0, %v160_v60, %v162_v3  ;;  %v156_v26 = vsel %vm123_vm0, %v154_v4, %v155_v5  ;;  %v172_v28 = vrot.slane %v5041_v62, 1  ;;  %v164_v35 = vrot.slane %v5050_v9, 1  ;;  %v5111_v52 = vld [vmem:[%s8745_s0 + $0x100] sm:$0x3]  ;;  %v5116_v53 = vld [vmem:[%s8745_s0 + $0x138] sm:$0xff] }
   0xf   :  { %3492 = vrot.lane.b32.xlu1 %v5028_v57, %s4841_s13  ;;  %v5085_v33 = vpack.i.bf16 %v163_v22, %v161_v14  ;;  %v158_v34 = vsel %vm123_vm0, %v155_v5, %v157_v15  ;;  %v165_v38 = vrot.slane %v5055_v10, 1  ;;  %v171_v45 = vsel %vm123_vm0, %v169_v20, %v170_v27  ;;  %v5128_v63 = vld [vmem:[%s8745_s0 + $0x140] sm:$0xff]  ;;  %v5133_v3 = vld [vmem:[%s8745_s0 + $0x148] sm:$0x3]  ;;  %v5184_v57 = vld [vmem:[%s8745_s0 + $0x178] sm:$0x3] }
  0x10   :  { %v173_v46 = vsel %vm123_vm0, %v170_v27, %v172_v28  ;;  %v167_v47 = vrot.slane %v5067_v21, 1  ;;  %v5120_v54 = vpack.i.bf16 %v158_v34, %v156_v26  ;;  %v179_v59 = vrot.slane %v5076_v29, 1  ;;  %v5149_v28 = vld [vmem:[%s8745_s0 + $0x120] sm:$0xff]  ;;  %v5154_v34 = vld [vmem:[%s8745_s0 + $0x128] sm:$0xff]  ;;  %9011 = vst [vmem:[#allocation14_spill] sm:$0xff] %v5184_v57  ;;  %v5189_v44 = vld [vmem:[%s8745_s0 + $0x150] sm:$0xff] }
  0x11   :  { %9004 = vst [vmem:[#allocation7_spill] sm:$0xff] %v5085_v33  ;;  %3487 = vrot.lane.b32.xlu0 %v5059_v13, %s4841_s13  ;;  %v166_v58 = vsel %vm123_vm0, %v164_v35, %v165_v38  ;;  %v180_v60 = vrot.slane %v5081_v32, 1  ;;  %v182_v5 = vrot.slane %v5093_v39, 1  ;;  %v174_v14 = vrot.slane %v5098_v40, 1  ;;  %9007 = vst [vmem:[#allocation10_spill] sm:$0xff] %v5149_v28  ;;  %s4845_s5 = smov 40  }
  0x12   :  { %9005 = vst [vmem:[#allocation8_spill] sm:$0xff] %v5120_v54  ;;  %v168_v4 = vsel %vm123_vm0, %v165_v38, %v167_v47  ;;  %v175_v15 = vrot.slane %v5103_v41, 1  ;;  %v5141_v20 = vpack.i.bf16 %v173_v46, %v171_v45  ;;  %v177_v26 = vrot.slane %v5111_v52, 1  ;;  %9008 = vst [vmem:[#allocation11_spill] sm:$0xff] %v5154_v34  ;;  %v5159_v35 = vld [vmem:[%s8745_s0 + $0x130] sm:$0x3] }
  0x13   :  { %3502 = vrot.lane.b32.xlu1 %v5085_v33, %s4841_s13  ;;  %v181_v22 = vsel %vm123_vm0, %v179_v59, %v180_v60  ;;  %v189_v27 = vrot.slane %v5116_v53, 1  ;;  %9009 = vst [vmem:[#allocation12_spill] sm:$0xff] %v5159_v35  ;;  %v183_v38 = vsel %vm123_vm0, %v180_v60, %v182_v5  ;;  %v190_v45 = vrot.slane %v5128_v63, 1  ;;  %v5167_v47 = vld [vmem:[%s8745_s0 + $0x168] sm:$0xff]  ;;  %v5172_v59 = vld [vmem:[%s8745_s0 + $0x170] sm:$0xff]  ;;  %s4846_s6 = smov 48  }
  0x14   :  { %9006 = vst [vmem:[#allocation9_spill] sm:$0xff] %v5141_v20  ;;  %v192_v46 = vrot.slane %v5133_v3, 1  ;;  %v5176_v33 = vpack.i.bf16 %v168_v4, %v166_v58  ;;  %v5178_v60 = vpack.i.bf16 %v183_v38, %v181_v22  ;;  %v176_v5 = vsel %vm123_vm0, %v174_v14, %v175_v15  ;;  %v5203_v38 = vld [vmem:[%s8745_s0 + $0x160] sm:$0x3]  ;;  %s4847_s11 = smov 56   ;;  %s4848_s12 = smov 64  }
  0x15   :  { %3497 = vrot.lane.b32.xlu0 %v5120_v54, %s4841_s13  ;;  %v5194_v54 = vld [vmem:[%s8745_s0 + $0x158] sm:$0xff]  ;;  %v178_v58 = vsel %vm123_vm0, %v175_v15, %v177_v26  ;;  %v184_v4 = vrot.slane %v5149_v28, 1  ;;  %v185_v14 = vrot.slane %v5154_v34, 1  ;;  %v187_v22 = vrot.slane %v5159_v35, 1 }
  0x16   :  { %9010 = vst [vmem:[#allocation13_spill] sm:$0xff] %v5176_v33  ;;  %9012 = vst [vmem:[#allocation15_spill] sm:$0xff] %v5194_v54  ;;  %v191_v13 = vsel %vm123_vm0, %v189_v27, %v190_v45  ;;  %v193_v51 = vsel %vm123_vm0, %v190_v45, %v192_v46  ;;  %v199_v15 = vrot.slane %v5167_v47, 1  ;;  %v200_v26 = vrot.slane %v5172_v59, 1 }
  0x17   :  { %3512 = vrot.lane.b32.xlu1 %v5141_v20, %s4841_s13  ;;  %v202_v19 = vrot.slane %v5184_v57, 1  ;;  %v194_v35 = vrot.slane %v5189_v44, 1  ;;  %v195_v34 = vrot.slane %v5194_v54, 1  ;;  %v5216_v28 = vpack.i.bf16 %v178_v58, %v176_v5 }
  0x18   :  { %v197_v20 = vrot.slane %v5203_v38, 1  ;;  %v5219_v27 = vpack.i.bf16 %v193_v51, %v191_v13  ;;  %v186_v45 = vsel %vm123_vm0, %v184_v4, %v185_v14  ;;  %v188_v46 = vsel %vm123_vm0, %v185_v14, %v187_v22 }
  0x19   :  { %3507 = vrot.lane.b32.xlu0 %v5176_v33, %s4841_s13  ;;  %v201_v57 = vsel %vm123_vm0, %v199_v15, %v200_v26  ;;  %v203_v54 = vsel %vm123_vm0, %v200_v26, %v202_v19  ;;  %v196_v33 = vsel %vm123_vm0, %v194_v35, %v195_v34  ;;  %v306_v5 = vrot.slane %v4920_v17, 2 }
  0x1a   :  { %v307_v58 = vrot.slane %v4925_v18, 2  ;;  %v198_v51 = vsel %vm123_vm0, %v195_v34, %v197_v20  ;;  %v309_v13 = vrot.slane %v4935_v23, 2  ;;  %v301_v4 = vrot.slane %v4885_v6, 2 }
  0x1b   :  { %3522 = vrot.lane.b32.xlu1 %v5178_v60, %s4841_s13  ;;  %v302_v14 = vrot.slane %v4890_v7, 2  ;;  %v304_v22 = vrot.slane %v4895_v8, 2  ;;  %v5237_v19 = vpack.i.bf16 %v188_v46, %v186_v45  ;;  %v316_v35 = vrot.slane %v4902_v11, 2 }
  0x1c   :  { %v317_v15 = vrot.slane %v4907_v12, 2  ;;  %v319_v26 = vrot.slane %v4915_v16, 2  ;;  %v314_v20 = vrot.slane %v4877_v2, 2  ;;  %v5245_v6 = vpack.i.bf16 %v203_v54, %v201_v57 }
  0x1d   :  { %3517 = vrot.lane.b32.xlu0 %v5216_v28, %s4841_s13  ;;  %v5247_v7 = vpack.i.bf16 %v198_v51, %v196_v33  ;;  %v308_v8 = vsel %vm300_vm1, %v306_v5, %v307_v58  ;;  %v310_v23 = vsel %vm300_vm1, %v307_v58, %v309_v13  ;;  %v303_v34 = vsel %vm300_vm1, %v301_v4, %v302_v14 }
  0x1e   :  { %v311_v45 = vrot.slane %v4867_v0, 2  ;;  %v312_v46 = vrot.slane %v4872_v1, 2  ;;  %v305_v2 = vsel %vm300_vm1, %v302_v14, %v304_v22  ;;  %v326_v16 = vrot.slane %v4940_v24, 2 }
  0x1f   :  { %3532 = vrot.lane.b32.xlu1 %v5219_v27, %s4841_s13  ;;  %v327_v57 = vrot.slane %v4945_v25, 2  ;;  %v329_v33 = vrot.slane %v4954_v30, 2  ;;  %v318_v54 = vsel %vm300_vm1, %v316_v35, %v317_v15  ;;  %v320_v5 = vsel %vm300_vm1, %v317_v15, %v319_v26 }
  0x20   :  { %v5264_v58 = vpack.i.bf16 %v310_v23, %v308_v8  ;;  %v3546_v51 = vpack.i.bf16 %v305_v2, %v303_v34  ;;  %v313_v13 = vsel %vm300_vm1, %v311_v45, %v312_v46  ;;  %v315_v4 = vsel %vm300_vm1, %v312_v46, %v314_v20 }
  0x21   :  { %3527 = vrot.lane.b32.xlu0 %v5237_v19, %s4841_s13  ;;  %v5270_v14 = vpack.i.bf16 %v320_v5, %v318_v54  ;;  %v328_v30 = vsel %vm300_vm1, %v326_v16, %v327_v57  ;;  %v330_v22 = vsel %vm300_vm1, %v327_v57, %v329_v33  ;;  %v321_v35 = vrot.slane %v4959_v31, 2 }
  0x22   :  { %v322_v15 = vrot.slane %v4969_v36, 2  ;;  %v324_v26 = vrot.slane %v4974_v37, 2  ;;  %v336_v8 = vrot.slane %v4983_v42, 2  ;;  %v337_v23 = vrot.slane %v4988_v43, 2 }
  0x23   :  { %3542 = vrot.lane.b32.xlu1 %v5245_v6, %s4841_s13  ;;  %9013 = vst [vmem:[#allocation16_spill] sm:$0xff] %v5270_v14  ;;  %v339_v20 = vrot.slane %v4999_v48, 2  ;;  %v331_v34 = vrot.slane %v5004_v49, 2  ;;  %v332_v45 = vrot.slane %v5009_v50, 2  ;;  %v334_v46 = vrot.slane %v5019_v55, 2 }
  0x24   :  { %v5286_v2 = vpack.i.bf16 %v315_v4, %v313_v13  ;;  %v5288_v37 = vpack.i.bf16 %v330_v22, %v328_v30  ;;  %v323_v16 = vsel %vm300_vm1, %v321_v35, %v322_v15  ;;  %v325_v57 = vsel %vm300_vm1, %v322_v15, %v324_v26 }
  0x25   :  { %3537 = vrot.lane.b32.xlu0 %v5247_v7, %s4841_s13  ;;  %v338_v33 = vsel %vm300_vm1, %v336_v8, %v337_v23  ;;  %v346_v48 = vrot.slane %v5024_v56, 2  ;;  %v340_v54 = vsel %vm300_vm1, %v337_v23, %v339_v20  ;;  %v333_v55 = vsel %vm300_vm1, %v331_v34, %v332_v45 }
  0x26   :  { %9014 = vst [vmem:[#allocation17_spill] sm:$0xff] %v5288_v37  ;;  %v335_v5 = vsel %vm300_vm1, %v332_v45, %v334_v46  ;;  %v349_v13 = vrot.slane %v5041_v62, 2  ;;  %v341_v4 = vrot.slane %v5050_v9, 2  ;;  %v342_v30 = vrot.slane %v5055_v10, 2 }
  0x27   :  { %3552 = vrot.lane.b32.xlu1 %v5264_v58, %s4842_s24  ;;  %v344_v22 = vrot.slane %v5067_v21, 2  ;;  %v5306_v35 = vpack.i.bf16 %v325_v57, %v323_v16  ;;  %v356_v15 = vrot.slane %v5076_v29, 2  ;;  %v357_v26 = vrot.slane %v5081_v32, 2 }
  0x28   :  { %v359_v8 = vrot.slane %v5093_v39, 2  ;;  %v5311_v23 = vpack.i.bf16 %v340_v54, %v338_v33  ;;  %v5315_v62 = vpack.i.bf16 %v335_v5, %v333_v55  ;;  %v351_v21 = vrot.slane %v5098_v40, 2 }
  0x29   :  { %3547 = vrot.lane.b32.xlu0 %v3546_v51, %s4842_s24  ;;  %v347_v51 = vrot.slane %v5036_v61, 2  ;;  %9015 = vst [vmem:[#allocation18_spill] sm:$0xff] %v5306_v35  ;;  %v352_v20 = vrot.slane %v5103_v41, 2  ;;  %v354_v34 = vrot.slane %v5111_v52, 2  ;;  %v343_v16 = vsel %vm300_vm1, %v341_v4, %v342_v30 }
  0x2a   :  { %9016 = vst [vmem:[#allocation19_spill] sm:$0xff] %v5311_v23  ;;  %9017 = vst [vmem:[#allocation20_spill] sm:$0xff] %v5315_v62  ;;  %v345_v39 = vsel %vm300_vm1, %v342_v30, %v344_v22  ;;  %v358_v57 = vsel %vm300_vm1, %v356_v15, %v357_v26  ;;  %v360_v33 = vsel %vm300_vm1, %v357_v26, %v359_v8  ;;  %v366_v54 = vrot.slane %v5116_v53, 2  ;;  %v9020_v22 = vld [vmem:[#allocation10_spill] sm:$0xff]  ;;  %v9021_v15 = vld [vmem:[#allocation11_spill] sm:$0xff] }
  0x2b   :  { %3562 = vrot.lane.b32.xlu1 %v5270_v14, %s4842_s24  ;;  %v348_v45 = vsel %vm300_vm1, %v346_v48, %v347_v51  ;;  %v350_v46 = vsel %vm300_vm1, %v347_v51, %v349_v13  ;;  %v367_v55 = vrot.slane %v5128_v63, 2  ;;  %v369_v52 = vrot.slane %v5133_v3, 2  ;;  %v9022_v8 = vld [vmem:[#allocation12_spill] sm:$0xff] }
  0x2c   :  { %v5333_v48 = vpack.i.bf16 %v350_v46, %v348_v45  ;;  %v353_v5 = vsel %vm300_vm1, %v351_v21, %v352_v20  ;;  %v355_v51 = vsel %vm300_vm1, %v352_v20, %v354_v34  ;;  %v5337_v13 = vpack.i.bf16 %v345_v39, %v343_v16  ;;  %v71_v20 = vld [vmem:[%s8745_s0 + $0x190] sm:$0x3]  ;;  %v9024_v39 = vld [vmem:[#allocation14_spill] sm:$0xff] }
  0x2d   :  { %3557 = vrot.lane.b32.xlu0 %v5286_v2, %s4842_s24  ;;  %v5339_v4 = vpack.i.bf16 %v360_v33, %v358_v57  ;;  %v368_v30 = vsel %vm300_vm1, %v366_v54, %v367_v55  ;;  %v361_v3 = vrot.slane %v9020_v22, 2  ;;  %v362_v26 = vrot.slane %v9021_v15, 2  ;;  %v69_v33 = vld [vmem:[%s8745_s0 + $0x180] sm:$0xff] }
  0x2e   :  { %9018 = vst [vmem:[#allocation21_spill] sm:$0xff] %v5333_v48  ;;  %9019 = vst [vmem:[#allocation22_spill] sm:$0xff] %v5337_v13  ;;  %v364_v45 = vrot.slane %v9022_v8, 2  ;;  %v5347_v46 = vpack.i.bf16 %v355_v51, %v353_v5  ;;  %v370_v21 = vsel %vm300_vm1, %v367_v55, %v369_v52  ;;  %v376_v34 = vrot.slane %v5167_v47, 2  ;;  %v70_v5 = vld [vmem:[%s8745_s0 + $0x188] sm:$0xff] }
  0x2f   :  { %3572 = vrot.lane.b32.xlu1 %v5288_v37, %s4842_s24  ;;  %v377_v16 = vrot.slane %v5172_v59, 2  ;;  %v379_v57 = vrot.slane %v9024_v39, 2  ;;  %v363_v54 = vsel %vm300_vm1, %v361_v3, %v362_v26  ;;  %v371_v52 = vrot.slane %v5189_v44, 2  ;;  %v9025_v8 = vld [vmem:[#allocation15_spill] sm:$0xff] }
  0x30   :  { %9023 = vst [vmem:[#allocation10_spill] sm:$0xff] %v5347_v46  ;;  %v365_v55 = vsel %vm300_vm1, %v362_v26, %v364_v45  ;;  %v576_v51 = vrot.slane %v69_v33, 1  ;;  %v372_v39 = vrot.slane %v9025_v8, 2  ;;  %v579_v37 = vrot.slane %v71_v20, 1 }
  0x31   :  { %3567 = vrot.lane.b32.xlu0 %v5306_v35, %s4842_s24  ;;  %v378_v3 = vsel %vm300_vm1, %v376_v34, %v377_v16  ;;  %v380_v26 = vsel %vm300_vm1, %v377_v16, %v379_v57  ;;  %v5381_v14 = vpack.i.bf16 %v365_v55, %v363_v54  ;;  %v677_v34 = vrot.slane %v69_v33, 2 }
  0x32   :  { %v373_v35 = vsel %vm300_vm1, %v371_v52, %v372_v39  ;;  %v678_v16 = vrot.slane %v70_v5, 2  ;;  %v680_v57 = vrot.slane %v71_v20, 2  ;;  %v5409_v20 = vpack.i.bf16 %v70_v5, %v69_v33 }
  0x33   :  { %3582 = vrot.lane.b32.xlu1 %v5311_v23, %s4842_s24  ;;  %v577_v23 = vrot.slane %v70_v5, 1  ;;  %9026 = vst [vmem:[#allocation11_spill] sm:$0xff] %v5381_v14  ;;  %v5415_v55 = vpack.i.bf16 %v4969_v36, %v4959_v31  ;;  %v5468_v31 = vpack.i.bf16 %v5081_v32, %v5076_v29  ;;  %v5474_v36 = vpack.i.bf16 %v9025_v8, %v5189_v44  ;;  %v9029_v44 = vld [vmem:[#allocation2_spill] sm:$0xff]  ;;  %v9036_v29 = vld [vmem:[#allocation7_spill] sm:$0xff]  ;;  %v9037_v32 = vld [vmem:[#allocation9_spill] sm:$0xff] }
  0x34   :  { %v9038_v5 = vld [vmem:[#allocation18_spill] sm:$0xff]  ;;  %vm1435_vm4 = vcmask 1043456   ;;  %vm1145_vm5 = vcmask 195584   ;;  %vm1178_vm6 = vcmask 261120   ;;  %vm1211_vm7 = vcmask 326656  }
  0x35   :  { %3577 = vrot.lane.b32.xlu0 %v5315_v62, %s4842_s24  ;;  %v578_v45 = vsel %vm123_vm0, %v576_v51, %v577_v23  ;;  %v580_v62 = vsel %vm123_vm0, %v577_v23, %v579_v37  ;;  %v679_v23 = vsel %vm300_vm1, %v677_v34, %v678_v16  ;;  %v9039_v51 = vld [vmem:[#allocation16_spill] sm:$0xff]  ;;  %v9043_v34 = vld [vmem:[#allocation19_spill] sm:$0xff]  ;;  %vm1244_vm8 = vcmask 392192  }
  0x36   :  { %vm1277_vm9 = vcmask 457728   ;;  %vm1310_vm10 = vcmask 523264   ;;  %vm1386_vm11 = vcmask 588800  }
  0x37   :  { %3592 = vrot.lane.b32.xlu1 %v5333_v48, %s4842_s24  ;;  %v374_v48 = vrot.slane %v5203_v38, 2  ;;  %v5383_v38 = vpack.i.bf16 %v580_v62, %v578_v45  ;;  %v681_v62 = vsel %vm300_vm1, %v678_v16, %v680_v57 }
  0x38   :  { %v5403_v54 = vpack.i.bf16 %v681_v62, %v679_v23  ;;  %v9044_v23 = vld [vmem:[#allocation21_spill] sm:$0xff] }
  0x39   :  { %3587 = vrot.lane.b32.xlu0 %v5337_v13, %s4842_s24  ;;  %v5373_v13 = vpack.i.bf16 %v370_v21, %v368_v30  ;;  %v375_v30 = vsel %vm300_vm1, %v372_v39, %v374_v48  ;;  %v5389_v21 = vpack.i.bf16 %v380_v26, %v378_v3  ;;  %v5401_v48 = vpack.i.bf16 %v4872_v1, %v4867_v0  ;;  %v9040_v3 = vld [vmem:[#allocation20_spill] sm:$0xff]  ;;  %v9041_v26 = vld [vmem:[#allocation17_spill] sm:$0xff] }
  0x3a   :  { %v5393_v37 = vpack.i.bf16 %v375_v30, %v373_v35  ;;  %9028 = vst [vmem:[#allocation14_spill] sm:$0xff] %v5403_v54  ;;  %v3626_v35 = vpack.i.bf16 %v4925_v18, %v4920_v17  ;;  %v5420_v0 = vpack.i.bf16 %v4907_v12, %v4902_v11  ;;  %v5426_v1 = vpack.i.bf16 %v5009_v50, %v5004_v49  ;;  %v9030_v49 = vld [vmem:[#allocation4_spill] sm:$0xff]  ;;  %v9031_v50 = vld [vmem:[#allocation6_spill] sm:$0xff] }
  0x3b   :  { %3602 = vrot.lane.b32.xlu1 %v5339_v4, %s4842_s24  ;;  %v5432_v17 = vpack.i.bf16 %v4945_v25, %v4940_v24  ;;  %v5438_v11 = vpack.i.bf16 %v5055_v10, %v5050_v9  ;;  %v5444_v12 = vpack.i.bf16 %v4988_v43, %v4983_v42  ;;  %v5450_v18 = vpack.i.bf16 %v5103_v41, %v5098_v40  ;;  %v9034_v9 = vld [vmem:[#allocation5_spill] sm:$0xff]  ;;  %v9042_v30 = vld [vmem:[#allocation22_spill] sm:$0xff] }
  0x3c   :  { %9027 = vst [vmem:[#allocation12_spill] sm:$0xff] %v5393_v37  ;;  %v5456_v24 = vpack.i.bf16 %v5036_v61, %v5024_v56  ;;  %v5462_v25 = vpack.i.bf16 %v9021_v15, %v9020_v22  ;;  %v5480_v42 = vpack.i.bf16 %v5128_v63, %v5116_v53  ;;  %v5488_v43 = vpack.i.bf16 %v5172_v59, %v5167_v47  ;;  %v9032_v56 = vld [vmem:[#allocation3_spill] sm:$0xff]  ;;  %v9033_v61 = vld [vmem:[#allocation8_spill] sm:$0xff]  ;;  %v9035_v10 = vld [vmem:[#allocation13_spill] sm:$0xff] }
  0x3d   :  { %3597 = vrot.lane.b32.xlu0 %v5347_v46, %s4842_s24 }
  0x3f   :  { %3612 = vrot.lane.b32.xlu1 %v5373_v13, %s4842_s24 }
  0x41   :  { %3607 = vrot.lane.b32.xlu0 %v5381_v14, %s4842_s24 }
  0x43   :  { %3622 = vrot.lane.b32.xlu1 %v5389_v21, %s4842_s24 }
  0x45   :  { %3617 = vrot.lane.b32.xlu0 %v5393_v37, %s4842_s24 }
  0x47   :  { %3632 = vrot.lane.b32.xlu1 %v5401_v48, %s4843_s3 }
  0x49   :  { %3627 = vrot.lane.b32.xlu0 %v3626_v35, %s4843_s3 }
  0x4b   :  { %3642 = vrot.lane.b32.xlu1 %v5415_v55, %s4843_s3 }
  0x4d   :  { %3637 = vrot.lane.b32.xlu0 %v5420_v0, %s4843_s3 }
  0x4f   :  { %3652 = vrot.lane.b32.xlu1 %v5426_v1, %s4843_s3 }
  0x51   :  { %3647 = vrot.lane.b32.xlu0 %v5432_v17, %s4843_s3 }
  0x53   :  { %3662 = vrot.lane.b32.xlu1 %v5438_v11, %s4843_s3 }
  0x55   :  { %3657 = vrot.lane.b32.xlu0 %v5444_v12, %s4843_s3 }
  0x57   :  { %3672 = vrot.lane.b32.xlu1 %v5450_v18, %s4843_s3 }
  0x59   :  { %3667 = vrot.lane.b32.xlu0 %v5456_v24, %s4843_s3 }
  0x5b   :  { %3682 = vrot.lane.b32.xlu1 %v5462_v25, %s4843_s3 }
  0x5d   :  { %3677 = vrot.lane.b32.xlu0 %v5468_v31, %s4843_s3 }
  0x5f   :  { %3692 = vrot.lane.b32.xlu1 %v5474_v36, %s4843_s3 }
  0x61   :  { %3687 = vrot.lane.b32.xlu0 %v5480_v42, %s4843_s3 }
  0x63   :  { %3702 = vrot.lane.b32.xlu1 %v5409_v20, %s4843_s3 }
  0x65   :  { %3697 = vrot.lane.b32.xlu0 %v5488_v43, %s4843_s3 }
  0x67   :  { %3712 = vrot.lane.b32.xlu1 %v9029_v44, %s4844_s4 }
  0x69   :  { %3707 = vrot.lane.b32.xlu0 %v9030_v49, %s4844_s4 }
  0x6b   :  { %3722 = vrot.lane.b32.xlu1 %v9031_v50, %s4844_s4 }
  0x6d   :  { %3717 = vrot.lane.b32.xlu0 %v9032_v56, %s4844_s4 }
  0x6f   :  { %3732 = vrot.lane.b32.xlu1 %v9033_v61, %s4844_s4 }
  0x71   :  { %3727 = vrot.lane.b32.xlu0 %v9034_v9, %s4844_s4 }
  0x73   :  { %3742 = vrot.lane.b32.xlu1 %v9035_v10, %s4844_s4 }
  0x75   :  { %3737 = vrot.lane.b32.xlu0 %v9036_v29, %s4844_s4 }
  0x77   :  { %3752 = vrot.lane.b32.xlu1 %v5216_v28, %s4844_s4 }
  0x79   :  { %3747 = vrot.lane.b32.xlu0 %v9037_v32, %s4844_s4  ;;  %v5514_v40 = vpop.permute.xlu1 %3477 }
  0x7b   :  { %v5516_v41 = vpop.permute.xlu0 %3467  ;;  %3762 = vrot.lane.b32.xlu1 %v5237_v19, %s4844_s4 }
  0x7d   :  { %3757 = vrot.lane.b32.xlu0 %v5178_v60, %s4844_s4  ;;  %v5522_v53 = vpop.permute.xlu1 %3482 }
  0x7f   :  { %v5524_v63 = vpop.permute.xlu0 %3472  ;;  %3772 = vrot.lane.b32.xlu1 %v5247_v7, %s4844_s4 }
  0x81   :  { %3767 = vrot.lane.b32.xlu0 %v5219_v27, %s4844_s4  ;;  %v5530_v47 = vpop.permute.xlu1 %3492 }
  0x83   :  { %v5532_v59 = vpop.permute.xlu0 %3487  ;;  %3782 = vrot.lane.b32.xlu1 %v5383_v38, %s4844_s4 }
  0x85   :  { %3777 = vrot.lane.b32.xlu0 %v5245_v6, %s4844_s4  ;;  %v5538_v22 = vpop.permute.xlu1 %3502 }
  0x87   :  { %v5540_v15 = vpop.permute.xlu0 %3497  ;;  %3792 = vrot.lane.b32.xlu1 %v5286_v2, %s4845_s5 }
  0x89   :  { %3787 = vrot.lane.b32.xlu0 %v5264_v58, %s4845_s5  ;;  %v5546_v33 = vpop.permute.xlu1 %3512 }
  0x8b   :  { %v5548_v52 = vpop.permute.xlu0 %3507  ;;  %3802 = vrot.lane.b32.xlu1 %v9038_v5, %s4845_s5 }
  0x8d   :  { %3797 = vrot.lane.b32.xlu0 %v9039_v51, %s4845_s5  ;;  %v5554_v8 = vpop.permute.xlu1 %3522 }
  0x8f   :  { %v5556_v39 = vpop.permute.xlu0 %3517  ;;  %3812 = vrot.lane.b32.xlu1 %v9040_v3, %s4845_s5 }
  0x91   :  { %3807 = vrot.lane.b32.xlu0 %v9041_v26, %s4845_s5  ;;  %v5562_v58 = vpop.permute.xlu1 %3532 }
  0x93   :  { %v5564_v45 = vpop.permute.xlu0 %3527  ;;  %3822 = vrot.lane.b32.xlu1 %v9042_v30, %s4845_s5 }
  0x95   :  { %3817 = vrot.lane.b32.xlu0 %v9043_v34, %s4845_s5  ;;  %v5570_v16 = vpop.permute.xlu1 %3542 }
  0x97   :  { %v5572_v57 = vpop.permute.xlu0 %3537  ;;  %3832 = vrot.lane.b32.xlu1 %v5347_v46, %s4845_s5 }
  0x99   :  { %3827 = vrot.lane.b32.xlu0 %v9044_v23, %s4845_s5  ;;  %v5578_v62 = vpop.permute.xlu1 %3552 }
  0x9a   :  { %9045 = vst [vmem:[#allocation15_spill] sm:$0xff] %v5578_v62 }
  0x9b   :  { %v5580_v35 = vpop.permute.xlu0 %3547  ;;  %3842 = vrot.lane.b32.xlu1 %v5381_v14, %s4845_s5 }
  0x9d   :  { %3837 = vrot.lane.b32.xlu0 %v5339_v4, %s4845_s5  ;;  %v5586_v49 = vpop.permute.xlu1 %3562 }
  0x9e   :  { %9046 = vst [vmem:[#allocation2_spill] sm:$0xff] %v5586_v49 }
  0x9f   :  { %v5588_v30 = vpop.permute.xlu0 %3557  ;;  %3852 = vrot.lane.b32.xlu1 %v5393_v37, %s4845_s5 }
  0xa1   :  { %3847 = vrot.lane.b32.xlu0 %v5373_v13, %s4845_s5  ;;  %v5594_v46 = vpop.permute.xlu1 %3572 }
  0xa3   :  { %v5596_v62 = vpop.permute.xlu0 %3567  ;;  %3862 = vrot.lane.b32.xlu1 %v5403_v54, %s4845_s5 }
  0xa4   :  { %9047 = vst [vmem:[#allocation4_spill] sm:$0xff] %v5596_v62 }
  0xa5   :  { %3857 = vrot.lane.b32.xlu0 %v5389_v21, %s4845_s5  ;;  %v5602_v14 = vpop.permute.xlu1 %3582 }
  0xa7   :  { %v5604_v49 = vpop.permute.xlu0 %3577  ;;  %3872 = vrot.lane.b32.xlu1 %v5420_v0, %s4846_s6 }
  0xa8   :  { %9048 = vst [vmem:[#allocation6_spill] sm:$0xff] %v5604_v49 }
  0xa9   :  { %3867 = vrot.lane.b32.xlu0 %v5401_v48, %s4846_s6  ;;  %v5610_v37 = vpop.permute.xlu1 %3592 }
  0xaa   :  { %9049 = vst [vmem:[#allocation3_spill] sm:$0xff] %v5610_v37  ;;  %v4765_v37 = vld [vmem:[%s8745_s0 + $0x98] sm:$0xff] }
  0xab   :  { %v5612_v62 = vpop.permute.xlu0 %3587  ;;  %3882 = vrot.lane.b32.xlu1 %v5432_v17, %s4846_s6 }
  0xac   :  { %9050 = vst [vmem:[#allocation8_spill] sm:$0xff] %v5612_v62 }
  0xad   :  { %3877 = vrot.lane.b32.xlu0 %v5415_v55, %s4846_s6  ;;  %v5618_v54 = vpop.permute.xlu1 %3602 }
  0xae   :  { %9051 = vst [vmem:[#allocation5_spill] sm:$0xff] %v5618_v54  ;;  %v5935_v54 = vld [vmem:[%s8745_s0 + $0x1e8] sm:$0xff] }
  0xaf   :  { %v5620_v49 = vpop.permute.xlu0 %3597  ;;  %3892 = vrot.lane.b32.xlu1 %v5444_v12, %s4846_s6  ;;  %9088 = vst [vmem:[#allocation48_spill] sm:$0xff] %v5935_v54 }
  0xb0   :  { %9052 = vst [vmem:[#allocation13_spill] sm:$0xff] %v5620_v49 }
  0xb1   :  { %3887 = vrot.lane.b32.xlu0 %v5426_v1, %s4846_s6  ;;  %v5626_v48 = vpop.permute.xlu1 %3612 }
  0xb2   :  { %9053 = vst [vmem:[#allocation7_spill] sm:$0xff] %v5626_v48  ;;  %v4759_v48 = vld [vmem:[%s8745_s0 + $0x80] sm:$0xff] }
  0xb3   :  { %v5628_v0 = vpop.permute.xlu0 %3607  ;;  %3902 = vrot.lane.b32.xlu1 %v5456_v24, %s4846_s6  ;;  %v5656_v24 = vld [vmem:[%s8745_s0 + $0x1a0] sm:$0xff] }
  0xb4   :  { %9054 = vst [vmem:[#allocation9_spill] sm:$0xff] %v5628_v0  ;;  %v3489_v0 = vunpack.i.l.bf16 %v5532_v59 }
  0xb5   :  { %3897 = vrot.lane.b32.xlu0 %v5438_v11, %s4846_s6  ;;  %v5634_v55 = vpop.permute.xlu1 %3622  ;;  %v5651_v11 = vld [vmem:[%s8745_s0 + $0x198] sm:$0xff] }
  0xb6   :  { %9055 = vst [vmem:[#allocation18_spill] sm:$0xff] %v5634_v55 }
  0xb7   :  { %v5636_v17 = vpop.permute.xlu0 %3617  ;;  %3912 = vrot.lane.b32.xlu1 %v5468_v31, %s4846_s6 }
  0xb8   :  { %9056 = vst [vmem:[#allocation16_spill] sm:$0xff] %v5636_v17  ;;  %v4755_v17 = vld [vmem:[%s8745_s0 + $0x50] sm:$0xff] }
  0xb9   :  { %3907 = vrot.lane.b32.xlu0 %v5450_v18, %s4846_s6  ;;  %v5642_v1 = vpop.permute.xlu1 %3632 }
  0xba   :  { %9057 = vst [vmem:[#allocation20_spill] sm:$0xff] %v5642_v1 }
  0xbb   :  { %v5644_v12 = vpop.permute.xlu0 %3627  ;;  %3922 = vrot.lane.b32.xlu1 %v5480_v42, %s4846_s6  ;;  %v3941_v42 = vpack.i.bf16 %v5656_v24, %v5651_v11 }
  0xbc   :  { %9058 = vst [vmem:[#allocation17_spill] sm:$0xff] %v5644_v12 }
  0xbd   :  { %3917 = vrot.lane.b32.xlu0 %v5462_v25, %s4846_s6  ;;  %v5660_v18 = vpop.permute.xlu1 %3642 }
  0xbe   :  { %9059 = vst [vmem:[#allocation19_spill] sm:$0xff] %v5660_v18 }
  0xbf   :  { %v5662_v31 = vpop.permute.xlu0 %3637  ;;  %3932 = vrot.lane.b32.xlu1 %v5488_v43, %s4846_s6 }
  0xc0   :  { %9060 = vst [vmem:[#allocation21_spill] sm:$0xff] %v5662_v31 }
  0xc1   :  { %3927 = vrot.lane.b32.xlu0 %v5474_v36, %s4846_s6  ;;  %v5670_v12 = vpop.permute.xlu1 %3652  ;;  %v5686_v36 = vld [vmem:[%s8745_s0 + $0x1a8] sm:$0x3] }
  0xc2   :  { %9061 = vst [vmem:[#allocation23_spill] sm:$0xff] %v5670_v12  ;;  %v981_v18 = vrot.slane %v5686_v36, 2 }
  0xc3   :  { %v5672_v1 = vpop.permute.xlu0 %3647  ;;  %3942 = vrot.lane.b32.xlu1 %v3941_v42, %s4846_s6  ;;  %v877_v42 = vrot.slane %v5651_v11, 1 }
  0xc4   :  { %9062 = vst [vmem:[#allocation24_spill] sm:$0xff] %v5672_v1 }
  0xc5   :  { %3937 = vrot.lane.b32.xlu0 %v5409_v20, %s4846_s6  ;;  %v5677_v25 = vpop.permute.xlu1 %3662  ;;  %v878_v20 = vrot.slane %v5656_v24, 1 }
  0xc6   :  { %9063 = vst [vmem:[#allocation25_spill] sm:$0xff] %v5677_v25 }
  0xc7   :  { %v5679_v31 = vpop.permute.xlu0 %3657  ;;  %3952 = vrot.lane.b32.xlu1 %v9032_v56, %s4847_s11  ;;  %v4746_v56 = vld [vmem:[%s8746_s1] sm:$0xff]   ;;  %v5708_v1 = vsel %vm123_vm0, %v877_v42, %v878_v20  ;;  %v3480_v42 = vunpack.i.h.bf16 %v5514_v40 }
  0xc8   :  { %9064 = vst [vmem:[#allocation26_spill] sm:$0xff] %v5679_v31  ;;  %v880_v31 = vrot.slane %v5686_v36, 1  ;;  %3372 = vmatprep.subr.bf16.mxu0 %v4746_v56  ;;  %3414 = vmatprep.subr.bf16.mxu1 %v4746_v56  ;;  %v4749_v36 = vld [vmem:[%s8746_s1 + $0x18] sm:$0xff]  }
  0xc9   :  { %3947 = vrot.lane.b32.xlu0 %v9029_v44, %s4847_s11  ;;  %v5690_v43 = vpop.permute.xlu1 %3672  ;;  %3373 = vmatpush3.bf16.msra.mxu0 %v4746_v56  ;;  %v3469_v44 = vunpack.i.l.bf16 %v5516_v41 }
  0xca   :  { %9065 = vst [vmem:[#allocation27_spill] sm:$0xff] %v5690_v43  ;;  %3415 = vmatpush3.bf16.msra.mxu1 %v4746_v56  ;;  %v3484_v56 = vunpack.i.l.bf16 %v5522_v53 }
  0xcb   :  { %v5695_v25 = vpop.permute.xlu0 %3667  ;;  %3962 = vrot.lane.b32.xlu1 %v9034_v9, %s4847_s11  ;;  %v3479_v9 = vunpack.i.l.bf16 %v5514_v40  ;;  %v4748_v40 = vld [vmem:[%s8746_s1 + $0x10] sm:$0xff]  }
  0xcc   :  { %9066 = vst [vmem:[#allocation28_spill] sm:$0xff] %v5695_v25  ;;  %v5711_v25 = vsel %vm123_vm0, %v878_v20, %v880_v31  ;;  %v3475_v20 = vunpack.i.h.bf16 %v5524_v63 }
  0xcd   :  { %3957 = vrot.lane.b32.xlu0 %v9031_v50, %s4847_s11  ;;  %v5705_v43 = vpop.permute.xlu1 %3682  ;;  %v4747_v50 = vld [vmem:[%s8746_s1 + $0x8] sm:$0xff]  }
  0xce   :  { %9067 = vst [vmem:[#allocation29_spill] sm:$0xff] %v5705_v43  ;;  %3374 = vmatprep.subr.bf16.mxu0 %v4747_v50  ;;  %3416 = vmatprep.subr.bf16.mxu1 %v4747_v50 }
  0xcf   :  { %v5714_v12 = vpop.permute.xlu0 %3677  ;;  %3972 = vrot.lane.b32.xlu1 %v9036_v29, %s4847_s11  ;;  %v3470_v29 = vunpack.i.h.bf16 %v5516_v41  ;;  %3375 = vmatpush3.bf16.msra.mxu0 %v4747_v50 }
  0xd0   :  { %9068 = vst [vmem:[#allocation30_spill] sm:$0xff] %v5714_v12  ;;  %3417 = vmatpush3.bf16.msra.mxu1 %v4747_v50  ;;  %3376 = vmatprep.subr.bf16.mxu0 %v4748_v40 }
  0xd1   :  { %3967 = vrot.lane.b32.xlu0 %v9033_v61, %s4847_s11  ;;  %v5723_v31 = vpop.permute.xlu1 %3692  ;;  %v3485_v61 = vunpack.i.h.bf16 %v5522_v53  ;;  %v4752_v53 = vld [vmem:[%s8745_s0 + $0x30] sm:$0xff]  ;;  %3418 = vmatprep.subr.bf16.mxu1 %v4748_v40 }
  0xd2   :  { %9069 = vst [vmem:[#allocation31_spill] sm:$0xff] %v5723_v31  ;;  %v5755_v50 = vsel %vm1079_vm2, %v4752_v53, %v3479_v9  ;;  %v3474_v31 = vunpack.i.l.bf16 %v5524_v63  ;;  %v5777_v9 = vld [vmem:[%s8745_s0 + $0x1d8] sm:$0x3]  ;;  %v4754_v63 = vld [vmem:[%s8745_s0] sm:$0xff]  ;;  %v3495_v53 = vunpack.i.h.bf16 %v5530_v47 }
  0xd3   :  { %v5731_v12 = vpop.permute.xlu0 %3687  ;;  %3982 = vrot.lane.b32.xlu1 %v9037_v32, %s4847_s11  ;;  %v4751_v32 = vld [vmem:[%s8745_s0 + $0x38] sm:$0xff]  ;;  %9074 = vst [vmem:[#allocation36_spill] sm:$0xff] %v5777_v9  ;;  %3377 = vmatpush3.bf16.msra.mxu0 %v4748_v40  ;;  %v5796_v55 = vsel %vm1079_vm2, %v4755_v17, %v3485_v61  ;;  %v4757_v17 = vld [vmem:[%s8745_s0 + $0x20] sm:$0xff] }
  0xd4   :  { %9070 = vst [vmem:[#allocation32_spill] sm:$0xff] %v5731_v12  ;;  %v5749_v12 = vsel %vm1079_vm2, %v4751_v32, %v3480_v42  ;;  %v5767_v42 = vld [vmem:[%s8745_s0 + $0x1c8] sm:$0xff]  ;;  %v5772_v32 = vld [vmem:[%s8745_s0 + $0x1d0] sm:$0xff]  ;;  %3419 = vmatpush3.bf16.msra.mxu1 %v4748_v40  ;;  %v5816_v61 = vsel %vm1079_vm2, %v4757_v17, %v3475_v20  ;;  %v5828_v40 = vld [vmem:[%s8745_s0 + $0x1b8] sm:$0xff]  ;;  %3378 = vmatprep.subr.bf16.mxu0 %v4749_v36 }
  0xd5   :  { %3977 = vrot.lane.b32.xlu0 %v9035_v10, %s4847_s11  ;;  %v5743_v41 = vpop.permute.xlu1 %3702  ;;  %v4753_v10 = vld [vmem:[%s8745_s0 + $0x8] sm:$0xff]  ;;  %9072 = vst [vmem:[#allocation34_spill] sm:$0xff] %v5767_v42  ;;  %9073 = vst [vmem:[#allocation35_spill] sm:$0xff] %v5772_v32  ;;  %v5833_v20 = vld [vmem:[%s8745_s0 + $0x1c0] sm:$0x3]  ;;  %3420 = vmatprep.subr.bf16.mxu1 %v4749_v36 }
  0xd6   :  { %9071 = vst [vmem:[#allocation33_spill] sm:$0xff] %v5743_v41  ;;  %v5761_v41 = vsel %vm1079_vm2, %v4753_v10, %v3470_v29  ;;  %v5783_v29 = vsel %vm1079_vm2, %v4754_v63, %v3469_v44  ;;  %v3494_v10 = vunpack.i.l.bf16 %v5530_v47  ;;  %v4756_v44 = vld [vmem:[%s8745_s0 + $0x48] sm:$0xff]  ;;  %v1740_v63 = vrot.slane %v5767_v42, 1  ;;  %9078 = vst [vmem:[#allocation40_spill] sm:$0xff] %v5828_v40 }
  0xd7   :  { %v5787_v43 = vpop.permute.xlu0 %3697  ;;  %3992 = vrot.lane.b32.xlu1 %v5178_v60, %s4847_s11  ;;  %v5802_v47 = vsel %vm1079_vm2, %v4756_v44, %v3484_v56  ;;  %v5807_v60 = vld [vmem:[%s8745_s0 + $0x1b0] sm:$0xff]  ;;  %v1741_v44 = vrot.slane %v5772_v32, 1  ;;  %9079 = vst [vmem:[#allocation41_spill] sm:$0xff] %v5833_v20  ;;  %v9081_v32 = vrot.slane %v5651_v11, 2  ;;  %v3505_v11 = vunpack.i.h.bf16 %v5538_v22  ;;  %3379 = vmatpush3.bf16.msra.mxu0 %v4749_v36 }
  0xd8   :  { %9075 = vst [vmem:[#allocation37_spill] sm:$0xff] %v5787_v43  ;;  %9076 = vst [vmem:[#allocation38_spill] sm:$0xff] %v5807_v60  ;;  %v1743_v43 = vrot.slane %v5777_v9, 1  ;;  %v9080_v9 = vrot.slane %v5656_v24, 2  ;;  %3421 = vmatpush3.bf16.msra.mxu1 %v4749_v36  ;;  %v3500_v24 = vunpack.i.h.bf16 %v5540_v15 }
  0xd9   :  { %3987 = vrot.lane.b32.xlu0 %v5216_v28, %s4847_s11  ;;  %v5820_v56 = vpop.permute.xlu1 %3712  ;;  %v4758_v28 = vld [vmem:[%s8745_s0 + $0x18] sm:$0xff] }
  0xda   :  { %9077 = vst [vmem:[#allocation39_spill] sm:$0xff] %v5820_v56  ;;  %v5839_v17 = vsel %vm1079_vm2, %v4758_v28, %v3474_v31  ;;  %v3490_v56 = vunpack.i.h.bf16 %v5532_v59  ;;  %v5848_v42 = vsel %vm300_vm1, %v9081_v32, %v9080_v9  ;;  %v5854_v31 = vsel %vm1079_vm2, %v4759_v48, %v3495_v53  ;;  %v4760_v59 = vld [vmem:[%s8745_s0 + $0x78] sm:$0xff] }
  0xdb   :  { %9082 = vst [vmem:[#allocation42_spill] sm:$0xff] %v5848_v42  ;;  %v5860_v28 = vsel %vm1079_vm2, %v4760_v59, %v3494_v10  ;;  %v5863_v32 = vpop.permute.xlu0 %3707  ;;  %4002 = vrot.lane.b32.xlu1 %v5219_v27, %s4847_s11  ;;  %v5870_v49 = vsel %vm300_vm1, %v9080_v9, %v981_v18  ;;  %v3504_v48 = vunpack.i.l.bf16 %v5538_v22  ;;  %v1735_v53 = vrot.slane %v5807_v60, 1  ;;  %v5884_v27 = vld [vmem:[%s8745_s0 + $0x200] sm:$0xff] }
  0xdc   :  { %9083 = vst [vmem:[#allocation43_spill] sm:$0xff] %v5863_v32  ;;  %9084 = vst [vmem:[#allocation44_spill] sm:$0xff] %v5870_v49  ;;  %v1736_v10 = vrot.slane %v5828_v40, 1  ;;  %v1738_v59 = vrot.slane %v5833_v20, 1  ;;  %v5879_v32 = vld [vmem:[%s8745_s0 + $0x1f8] sm:$0xff]  ;;  %v3499_v22 = vunpack.i.l.bf16 %v5540_v15  ;;  %v1742_v9 = vsel %vm123_vm0, %v1740_v63, %v1741_v44  ;;  %v4761_v40 = vld [vmem:[%s8745_s0 + $0x68] sm:$0xff] }
  0xdd   :  { %3997 = vrot.lane.b32.xlu0 %v5237_v19, %s4847_s11  ;;  %v5890_v18 = vpop.permute.xlu1 %3722  ;;  %v1744_v20 = vsel %vm123_vm0, %v1741_v44, %v1743_v43  ;;  %v5898_v60 = vsel %vm1079_vm2, %v4761_v40, %v3490_v56  ;;  %v4762_v15 = vld [vmem:[%s8745_s0 + $0x60] sm:$0xff]  ;;  %v3515_v19 = vunpack.i.h.bf16 %v5546_v33  ;;  %v5912_v43 = vld [vmem:[%s8745_s0 + $0x208] sm:$0x3]  ;;  %v3514_v40 = vunpack.i.l.bf16 %v5546_v33 }
  0xde   :  { %9085 = vst [vmem:[#allocation45_spill] sm:$0xff] %v5890_v18  ;;  %v5904_v36 = vsel %vm1079_vm2, %v4762_v15, %v3489_v0  ;;  %v5917_v56 = vld [vmem:[%s8745_s0 + $0x1e0] sm:$0xff]  ;;  %v4763_v0 = vld [vmem:[%s8745_s0 + $0xb0] sm:$0xff]  ;;  %v1750_v63 = vrot.slane %v5879_v32, 1  ;;  %v1751_v18 = vrot.slane %v5884_v27, 1  ;;  %v4764_v33 = vld [vmem:[%s8745_s0 + $0xa8] sm:$0xff]  ;;  %v5954_v62 = vsel %vm123_vm0, %v1736_v10, %v1738_v59 }
  0xdf   :  { %v5923_v44 = vsel %vm1079_vm2, %v4763_v0, %v3505_v11  ;;  %v5926_v15 = vpop.permute.xlu0 %3717  ;;  %4012 = vrot.lane.b32.xlu1 %v5245_v6, %s4847_s11  ;;  %v5940_v11 = vld [vmem:[%s8745_s0 + $0x1f0] sm:$0x3]  ;;  %v5946_v6 = vsel %vm1079_vm2, %v4764_v33, %v3504_v48  ;;  %v5948_v0 = vpack.i.bf16 %v1744_v20, %v1742_v9  ;;  %v5960_v42 = vsel %vm1079_vm2, %v4765_v37, %v3500_v24  ;;  %v5977_v37 = vld [vmem:[%s8745_s0 + $0x228] sm:$0xff] }
  0xe0   :  { %9086 = vst [vmem:[#allocation46_spill] sm:$0xff] %v5923_v44  ;;  %9087 = vst [vmem:[#allocation47_spill] sm:$0xff] %v5926_v15  ;;  %v5951_v15 = vsel %vm123_vm0, %v1735_v53, %v1736_v10  ;;  %v4766_v48 = vld [vmem:[%s8745_s0 + $0x90] sm:$0xff]  ;;  %v1753_v10 = vrot.slane %v5912_v43, 1  ;;  %v1745_v59 = vrot.slane %v5917_v56, 1  ;;  %v3510_v33 = vunpack.i.h.bf16 %v5548_v52 }
  0xe1   :  { %9089 = vst [vmem:[#allocation49_spill] sm:$0xff] %v5946_v6  ;;  %9090 = vst [vmem:[#allocation50_spill] sm:$0xff] %v5948_v0  ;;  %v5966_v20 = vsel %vm1079_vm2, %v4766_v48, %v3499_v22  ;;  %4007 = vrot.lane.b32.xlu0 %v5247_v7, %s4847_s11  ;;  %v5970_v53 = vpop.permute.xlu1 %3732  ;;  %v5982_v24 = vld [vmem:[%s8745_s0 + $0x230] sm:$0xff]  ;;  %v5987_v7 = vld [vmem:[%s8745_s0 + $0x238] sm:$0x3]  ;;  %v1746_v48 = vrot.slane %v5935_v54, 1  ;;  %v3509_v0 = vunpack.i.l.bf16 %v5548_v52  ;;  %v3525_v49 = vunpack.i.h.bf16 %v5554_v8 }
  0xe2   :  { %9091 = vst [vmem:[#allocation51_spill] sm:$0xff] %v5960_v42  ;;  %9092 = vst [vmem:[#allocation52_spill] sm:$0xff] %v5966_v20  ;;  %v4767_v22 = vld [vmem:[%s8745_s0 + $0xe0] sm:$0xff]  ;;  %v4768_v42 = vld [vmem:[%s8745_s0 + $0xd8] sm:$0xff]  ;;  %v1760_v44 = vrot.slane %v5977_v37, 1  ;;  %v1763_v52 = vrot.slane %v5987_v7, 1 }
  0xe3   :  { %9093 = vst [vmem:[#allocation53_spill] sm:$0xff] %v5970_v53  ;;  %9094 = vst [vmem:[#allocation54_spill] sm:$0xff] %v5977_v37  ;;  %v5993_v9 = vsel %vm1079_vm2, %v4767_v22, %v3515_v19  ;;  %v1748_v53 = vrot.slane %v5940_v11, 1  ;;  %v6002_v20 = vsel %vm1079_vm2, %v4768_v42, %v3514_v40  ;;  %v6005_v6 = vpop.permute.xlu0 %3727  ;;  %v9099_v19 = vpack.i.bf16 %v5711_v25, %v5708_v1  ;;  %v6021_v40 = vld [vmem:[%s8745_s0 + $0x210] sm:$0xff]  ;;  %v6026_v1 = vld [vmem:[%s8745_s0 + $0x218] sm:$0xff] }
  0xe4   :  { %9095 = vst [vmem:[#allocation55_spill] sm:$0xff] %v5982_v24  ;;  %9096 = vst [vmem:[#allocation56_spill] sm:$0xff] %v5987_v7  ;;  %v1761_v42 = vrot.slane %v5982_v24, 1  ;;  %v3524_v25 = vunpack.i.l.bf16 %v5554_v8  ;;  %v4769_v7 = vld [vmem:[%s8745_s0 + $0xc8] sm:$0xff]  ;;  %v3535_v8 = vunpack.i.h.bf16 %v5562_v58  ;;  %v1747_v37 = vsel %vm123_vm0, %v1745_v59, %v1746_v48  ;;  %v6059_v59 = vld [vmem:[%s8745_s0 + $0x220] sm:$0x3] }
  0xe5   :  { %9097 = vst [vmem:[#allocation57_spill] sm:$0xff] %v5993_v9  ;;  %9098 = vst [vmem:[#allocation58_spill] sm:$0xff] %v6005_v6  ;;  %4022 = vrot.lane.b32.xlu1 %v9099_v19, %s4847_s11  ;;  %v1752_v9 = vsel %vm123_vm0, %v1750_v63, %v1751_v18  ;;  %v3520_v63 = vunpack.i.h.bf16 %v5556_v39  ;;  %v3519_v19 = vunpack.i.l.bf16 %v5556_v39  ;;  %4017 = vrot.lane.b32.xlu0 %v5383_v38, %s4847_s11  ;;  %v6033_v22 = vpop.permute.xlu1 %3742  ;;  %v4770_v38 = vld [vmem:[%s8745_s0 + $0xc0] sm:$0xff] }
  0xe6   :  { %9100 = vst [vmem:[#allocation59_spill] sm:$0xff] %v6021_v40  ;;  %9101 = vst [vmem:[#allocation60_spill] sm:$0xff] %v6026_v1  ;;  %v1754_v6 = vsel %vm123_vm0, %v1751_v18, %v1753_v10  ;;  %v6040_v24 = vsel %vm1079_vm2, %v4769_v7, %v3510_v33  ;;  %v1749_v39 = vsel %vm123_vm0, %v1746_v48, %v1748_v53  ;;  %v3534_v18 = vunpack.i.l.bf16 %v5562_v58 }
  0xe7   :  { %9102 = vst [vmem:[#allocation61_spill] sm:$0xff] %v6033_v22  ;;  %9103 = vst [vmem:[#allocation62_spill] sm:$0xff] %v6040_v24  ;;  %v6049_v22 = vsel %vm1079_vm2, %v4770_v38, %v3509_v0  ;;  %v6052_v10 = vpop.permute.xlu0 %3737  ;;  %v1755_v53 = vrot.slane %v6021_v40, 1  ;;  %v1756_v7 = vrot.slane %v6026_v1, 1  ;;  %v4771_v0 = vld [vmem:[%s8745_s0 + $0x110] sm:$0xff]  ;;  %v6069_v33 = vpack.i.bf16 %v1754_v6, %v1752_v9  ;;  %v6076_v38 = vld [vmem:[%s8745_s0 + $0x258] sm:$0xff] }
  0xe8   :  { %9104 = vst [vmem:[#allocation63_spill] sm:$0xff] %v6052_v10  ;;  %v6067_v58 = vsel %vm1079_vm2, %v4771_v0, %v3525_v49  ;;  %v1764_v48 = vsel %vm123_vm0, %v1761_v42, %v1763_v52  ;;  %9106 = vst [vmem:[#allocation65_spill] sm:$0xff] %v6076_v38  ;;  %v4772_v10 = vld [vmem:[%s8745_s0 + $0x108] sm:$0xff]  ;;  %v4773_v49 = vld [vmem:[%s8745_s0 + $0xf8] sm:$0xff]  ;;  %v6100_v52 = vpack.i.bf16 %v1749_v39, %v1747_v37  ;;  %v3529_v0 = vunpack.i.l.bf16 %v5564_v45 }
  0xe9   :  { %4032 = vrot.lane.b32.xlu1 %v9039_v51, %s4848_s12  ;;  %9105 = vst [vmem:[#allocation64_spill] sm:$0xff] %v6069_v33  ;;  %v1762_v51 = vsel %vm123_vm0, %v1760_v44, %v1761_v42  ;;  %v6082_v24 = vsel %vm1079_vm2, %v4772_v10, %v3524_v25  ;;  %v6088_v44 = vsel %vm1079_vm2, %v4773_v49, %v3520_v63  ;;  %v4774_v6 = vld [vmem:[%s8745_s0 + $0xf0] sm:$0xff]  ;;  %v6098_v42 = vpop.permute.xlu1 %3752  ;;  %v4775_v25 = vld [vmem:[%s8745_s0 + $0x140] sm:$0xff]  ;;  %v3530_v10 = vunpack.i.h.bf16 %v5564_v45  ;;  %v4776_v37 = vld [vmem:[%s8745_s0 + $0x138] sm:$0xff] }
  0xea   :  { %v6094_v9 = vsel %vm1079_vm2, %v4774_v6, %v3519_v19  ;;  %4027 = vrot.lane.b32.xlu0 %v5286_v2, %s4848_s12  ;;  %9107 = vst [vmem:[#allocation66_spill] sm:$0xff] %v6098_v42  ;;  %9108 = vst [vmem:[#allocation67_spill] sm:$0xff] %v6100_v52  ;;  %v6106_v63 = vsel %vm1079_vm2, %v4775_v25, %v3535_v8  ;;  %v1758_v19 = vrot.slane %v6059_v59, 1  ;;  %v4750_v2 = vld [vmem:[%s8746_s1 + $0x20] ss:$0 sps:$4 sm:$0xff]   ;;  %v1770_v25 = vrot.slane %v6076_v38, 1 }
  0xeb   :  { %v6118_v39 = vsel %vm1079_vm2, %v4776_v37, %v3534_v18  ;;  %v6120_v49 = vpop.permute.xlu0 %3747  ;;  %v6124_v8 = vpack.i.bf16 %v1764_v48, %v1762_v51  ;;  %v6127_v45 = vsel %vm123_vm0, %v1755_v53, %v1756_v7  ;;  %v6132_v6 = vld [vmem:[%s8745_s0 + $0x260] sm:$0xff]  ;;  %v3545_v18 = vunpack.i.h.bf16 %v5570_v16  ;;  %v6139_v37 = vld [vmem:[%s8745_s0 + $0x268] sm:$0x3]  ;;  %3456 = vmatprep.subr.msk.bf16.mxu0 %vm1435_vm4, %v4750_v2  ;;  %3457 = vmatprep.subr.msk.bf16.mxu1 %vm1435_vm4, %v4750_v2 }
  0xec   :  { %9109 = vst [vmem:[#allocation68_spill] sm:$0xff] %v6118_v39  ;;  %9110 = vst [vmem:[#allocation69_spill] sm:$0xff] %v6120_v49  ;;  %v1926_v53 = vrot.slane %v5879_v32, 2  ;;  %v1927_v51 = vrot.slane %v5884_v27, 2  ;;  %v1929_v48 = vrot.slane %v5912_v43, 2  ;;  %v3544_v49 = vunpack.i.l.bf16 %v5570_v16  ;;  %v4777_v32 = vld [vmem:[%s8745_s0 + $0x128] sm:$0xff] }
  0xed   :  { %4042 = vrot.lane.b32.xlu1 %v9041_v26, %s4848_s12  ;;  %9111 = vst [vmem:[#allocation70_spill] sm:$0xff] %v6124_v8  ;;  %v6144_v26 = vld [vmem:[%s8745_s0 + $0x240] sm:$0xff]  ;;  %v6152_v42 = vpop.permute.xlu1 %3762  ;;  %v1921_v38 = vrot.slane %v5917_v56, 2  ;;  %v1922_v39 = vrot.slane %v5935_v54, 2  ;;  %v6160_v27 = vsel %vm1079_vm2, %v4777_v32, %v3530_v10  ;;  %v1759_v43 = vsel %vm123_vm0, %v1756_v7, %v1758_v19  ;;  %v4779_v7 = vld [vmem:[%s8745_s0 + $0x170] sm:$0xff] }
  0xee   :  { %9112 = vst [vmem:[#allocation71_spill] sm:$0xff] %v6144_v26  ;;  %4037 = vrot.lane.b32.xlu0 %v9038_v5, %s4848_s12  ;;  %9113 = vst [vmem:[#allocation72_spill] sm:$0xff] %v6152_v42  ;;  %v4778_v16 = vld [vmem:[%s8745_s0 + $0x120] sm:$0xff]  ;;  %v1924_v56 = vrot.slane %v5940_v11, 2  ;;  %v1771_v10 = vrot.slane %v6132_v6, 1  ;;  %v1773_v32 = vrot.slane %v6139_v37, 1  ;;  %v6181_v11 = vsel %vm1079_vm2, %v4779_v7, %v3545_v18 }
  0xef   :  { %9114 = vst [vmem:[#allocation73_spill] sm:$0xff] %v6160_v27  ;;  %v6166_v5 = vsel %vm1079_vm2, %v4778_v16, %v3529_v0  ;;  %v6170_v42 = vpop.permute.xlu0 %3757  ;;  %v1765_v54 = vrot.slane %v6144_v26, 1  ;;  %v1437_v27 = vsel %vm1435_vm4, %v4750_v2, 0  ;;  %v3540_v0 = vunpack.i.h.bf16 %v5572_v57  ;;  %v4780_v2 = vld [vmem:[%s8745_s0 + $0x168] sm:$0xff] }
  0xf0   :  { %9115 = vst [vmem:[#allocation74_spill] sm:$0xff] %v6170_v42  ;;  %v1928_v19 = vsel %vm300_vm1, %v1926_v53, %v1927_v51  ;;  %v1930_v16 = vsel %vm300_vm1, %v1927_v51, %v1929_v48  ;;  %3381 = vmatpush3.bf16.msra.mxu0 %v1437_v27  ;;  %3423 = vmatpush3.bf16.msra.mxu1 %v1437_v27  ;;  %v3539_v7 = vunpack.i.l.bf16 %v5572_v57  ;;  %v6205_v53 = vld [vmem:[%s8745_s0 + $0x250] sm:$0x3]  ;;  %v1931_v27 = vrot.slane %v6021_v40, 2 }
  0xf1   :  { %4052 = vrot.lane.b32.xlu1 %v9043_v34, %s4848_s12  ;;  %v6187_v34 = vld [vmem:[%s8745_s0 + $0x248] sm:$0xff]  ;;  %v6195_v18 = vsel %vm1079_vm2, %v4780_v2, %v3544_v49  ;;  %v6200_v42 = vpop.permute.xlu1 %3772  ;;  %9118 = vst [vmem:[#allocation77_spill] sm:$0xff] %v6205_v53  ;;  %v1923_v51 = vsel %vm300_vm1, %v1921_v38, %v1922_v39  ;;  %v6208_v48 = vpack.i.bf16 %v1930_v16, %v1928_v19  ;;  %v1932_v2 = vrot.slane %v6026_v1, 2  ;;  %v4782_v1 = vld [vmem:[%s8745_s0 + $0x150] sm:$0xff] }
  0xf2   :  { %9116 = vst [vmem:[#allocation75_spill] sm:$0xff] %v6187_v34  ;;  %4047 = vrot.lane.b32.xlu0 %v9040_v3, %s4848_s12  ;;  %9117 = vst [vmem:[#allocation76_spill] sm:$0xff] %v6200_v42  ;;  %v6213_v49 = vld [vmem:[%s8745_s0 + $0x288] sm:$0xff]  ;;  %v6218_v3 = vld [vmem:[%s8745_s0 + $0x290] sm:$0xff]  ;;  %v1925_v57 = vsel %vm300_vm1, %v1922_v39, %v1924_v56  ;;  %v1934_v38 = vrot.slane %v6059_v59, 2  ;;  %v1772_v16 = vsel %vm123_vm0, %v1770_v25, %v1771_v10 }
  0xf3   :  { %9119 = vst [vmem:[#allocation78_spill] sm:$0xff] %v6208_v48  ;;  %9120 = vst [vmem:[#allocation79_spill] sm:$0xff] %v6213_v49  ;;  %v6224_v19 = vpop.permute.xlu0 %3767  ;;  %v1774_v42 = vsel %vm123_vm0, %v1771_v10, %v1773_v32  ;;  %v1766_v48 = vrot.slane %v6187_v34, 1  ;;  %v6234_v39 = vld [vmem:[%s8745_s0 + $0x298] sm:$0x3]  ;;  %v6236_v56 = vpack.i.bf16 %v1925_v57, %v1923_v51  ;;  %v6247_v32 = vpack.i.bf16 %v1759_v43, %v6127_v45  ;;  %v9127_v57 = vld [vmem:[#allocation22_spill] sm:$0xff] }
  0xf4   :  { %9121 = vst [vmem:[#allocation80_spill] sm:$0xff] %v6218_v3  ;;  %9122 = vst [vmem:[#allocation81_spill] sm:$0xff] %v6224_v19  ;;  %v4781_v59 = vld [vmem:[%s8745_s0 + $0x158] sm:$0xff]  ;;  %v6253_v51 = vsel %vm1079_vm2, %v4782_v1, %v3539_v7  ;;  %v6262_v45 = vpack.i.bf16 %v1774_v42, %v1772_v16  ;;  %v1783_v43 = vrot.slane %v6234_v39, 1  ;;  %v6268_v1 = vld [vmem:[%s8745_s0 + $0x270] sm:$0xff]  ;;  %v1933_v7 = vsel %vm300_vm1, %v1931_v27, %v1932_v2 }
  0xf5   :  { %4062 = vrot.lane.b32.xlu1 %v9044_v23, %s4848_s12  ;;  %9123 = vst [vmem:[#allocation82_spill] sm:$0xff] %v6234_v39  ;;  %9124 = vst [vmem:[#allocation83_spill] sm:$0xff] %v6236_v56  ;;  %v6242_v19 = vsel %vm1079_vm2, %v4781_v59, %v3540_v0  ;;  %v9125_v23 = vld [vmem:[#allocation15_spill] sm:$0xff]  ;;  %v6257_v40 = vpop.permute.xlu1 %3782  ;;  %v1768_v0 = vrot.slane %v6205_v53, 1  ;;  %v1780_v59 = vrot.slane %v6213_v49, 1  ;;  %v1767_v42 = vsel %vm123_vm0, %v1765_v54, %v1766_v48  ;;  %v6281_v16 = vld [vmem:[%s8745_s0 + $0x278] sm:$0xff] }
  0xf6   :  { %v3555_v25 = vunpack.i.h.bf16 %v9125_v23  ;;  %v3554_v10 = vunpack.i.l.bf16 %v9125_v23  ;;  %9126 = vst [vmem:[#allocation15_spill] sm:$0xff] %v6247_v32  ;;  %4057 = vrot.lane.b32.xlu0 %v9127_v57, %s4848_s12  ;;  %9128 = vst [vmem:[#allocation22_spill] sm:$0xff] %v6257_v40  ;;  %v1781_v23 = vrot.slane %v6218_v3, 1  ;;  %v1935_v57 = vsel %vm300_vm1, %v1932_v2, %v1934_v38  ;;  %v6286_v27 = vld [vmem:[%s8745_s0 + $0x280] sm:$0x3]  ;;  %v6303_v3 = vld [vmem:[%s8745_s0 + $0x2b8] sm:$0xff] }
  0xf7   :  { %9129 = vst [vmem:[#allocation84_spill] sm:$0xff] %v6262_v45  ;;  %9130 = vst [vmem:[#allocation85_spill] sm:$0xff] %v6268_v1  ;;  %v3549_v40 = vunpack.i.l.bf16 %v5580_v35  ;;  %v6273_v56 = vpop.permute.xlu0 %3777  ;;  %v6288_v2 = vpack.i.bf16 %v1935_v57, %v1933_v7  ;;  %v3550_v54 = vunpack.i.h.bf16 %v5580_v35  ;;  %v6308_v7 = vld [vmem:[%s8745_s0 + $0x2c0] sm:$0xff]  ;;  %v1769_v35 = vsel %vm123_vm0, %v1766_v48, %v1768_v0 }
  0xf8   :  { %9131 = vst [vmem:[#allocation86_spill] sm:$0xff] %v6273_v56  ;;  %9132 = vst [vmem:[#allocation87_spill] sm:$0xff] %v6281_v16  ;;  %v6292_v38 = vsel %vm1112_vm3, %v5839_v17, %v3554_v10  ;;  %v9135_v56 = vld [vmem:[#allocation2_spill] sm:$0xff]  ;;  %v1775_v57 = vrot.slane %v6268_v1, 1  ;;  %v3560_v49 = vunpack.i.h.bf16 %v5588_v30  ;;  %v1776_v53 = vrot.slane %v6281_v16, 1 }
  0xf9   :  { %4072 = vrot.lane.b32.xlu1 %v5339_v4, %s4848_s12  ;;  %9133 = vst [vmem:[#allocation88_spill] sm:$0xff] %v6286_v27  ;;  %9134 = vst [vmem:[#allocation89_spill] sm:$0xff] %v6288_v2  ;;  %v6296_v4 = vsel %vm1112_vm3, %v5816_v61, %v3555_v25  ;;  %v3565_v39 = vunpack.i.h.bf16 %v9135_v56  ;;  %v3564_v17 = vunpack.i.l.bf16 %v9135_v56  ;;  %v9138_v10 = vld [vmem:[#allocation10_spill] sm:$0xff]  ;;  %v6313_v61 = vpop.permute.xlu1 %3792  ;;  %v1782_v25 = vsel %vm123_vm0, %v1780_v59, %v1781_v23  ;;  %v6321_v2 = vld [vmem:[%s8745_s0 + $0x2c8] sm:$0x3] }
  0xfa   :  { %9136 = vst [vmem:[#allocation2_spill] sm:$0xff] %v6303_v3  ;;  %9137 = vst [vmem:[#allocation90_spill] sm:$0xff] %v6308_v7  ;;  %4067 = vrot.lane.b32.xlu0 %v9138_v10, %s4848_s12  ;;  %v1784_v56 = vsel %vm123_vm0, %v1781_v23, %v1783_v43  ;;  %v1778_v10 = vrot.slane %v6286_v27, 1  ;;  %v6329_v48 = vsel %vm1112_vm3, %v5783_v29, %v3549_v40  ;;  %v3559_v0 = vunpack.i.l.bf16 %v5588_v30  ;;  %v6494_v27 = vld [vmem:[%s8745_s0 + $0x328] sm:$0x3] }
  0xfb   :  { %9139 = vst [vmem:[#allocation10_spill] sm:$0xff] %v6313_v61  ;;  %9140 = vst [vmem:[#allocation91_spill] sm:$0xff] %v6321_v2  ;;  %v6332_v59 = vpop.permute.xlu0 %3787  ;;  %v1790_v61 = vrot.slane %v6303_v3, 1  ;;  %v1791_v1 = vrot.slane %v6308_v7, 1  ;;  %v6340_v23 = vsel %vm1112_vm3, %v5761_v41, %v3550_v54  ;;  %v6344_v43 = vsel %vm1112_vm3, %v5796_v55, %v3565_v39  ;;  %v9143_v7 = vld [vmem:[#allocation11_spill] sm:$0xff]  ;;  %v6364_v55 = vld [vmem:[%s8745_s0 + $0x2a0] sm:$0xff] }
  0xfc   :  { %9141 = vst [vmem:[#allocation92_spill] sm:$0xff] %v6332_v59  ;;  %v6346_v29 = vpack.i.bf16 %v1769_v35, %v1767_v42  ;;  %v1793_v30 = vrot.slane %v6321_v2, 1  ;;  %v6351_v40 = vsel %vm1112_vm3, %v5802_v47, %v3564_v17  ;;  %v3574_v59 = vunpack.i.l.bf16 %v5594_v46  ;;  %9146 = vst [vmem:[#allocation95_spill] sm:$0xff] %v6364_v55  ;;  %v6369_v47 = vld [vmem:[%s8745_s0 + $0x2a8] sm:$0xff]  ;;  %v9148_v39 = vld [vmem:[#allocation4_spill] sm:$0xff] }
  0xfd   :  { %4082 = vrot.lane.b32.xlu1 %v5373_v13, %s4848_s12  ;;  %v3575_v13 = vunpack.i.h.bf16 %v5594_v46  ;;  %v6357_v41 = vpop.permute.xlu1 %3802  ;;  %v6359_v54 = vpack.i.bf16 %v1784_v56, %v1782_v25  ;;  %9147 = vst [vmem:[#allocation96_spill] sm:$0xff] %v6369_v47  ;;  %v6373_v46 = vsel %vm1112_vm3, %v5749_v12, %v3560_v49  ;;  %v3569_v42 = vunpack.i.l.bf16 %v9148_v39  ;;  %v6381_v35 = vld [vmem:[%s8745_s0 + $0x2b0] sm:$0x3] }
  0xfe   :  { %9142 = vst [vmem:[#allocation93_spill] sm:$0xff] %v6346_v29  ;;  %4077 = vrot.lane.b32.xlu0 %v9143_v7, %s4848_s12  ;;  %9144 = vst [vmem:[#allocation11_spill] sm:$0xff] %v6357_v41  ;;  %v1777_v7 = vsel %vm123_vm0, %v1775_v57, %v1776_v53  ;;  %v1779_v17 = vsel %vm123_vm0, %v1776_v53, %v1778_v10  ;;  %v6385_v25 = vsel %vm1112_vm3, %v5755_v50, %v3559_v0  ;;  %v6397_v57 = vld [vmem:[%s8745_s0 + $0x2e8] sm:$0xff]  ;;  %v6402_v50 = vld [vmem:[%s8745_s0 + $0x2f0] sm:$0xff] }
  0xff   :  { %9145 = vst [vmem:[#allocation94_spill] sm:$0xff] %v6359_v54  ;;  %9149 = vst [vmem:[#allocation4_spill] sm:$0xff] %v6381_v35  ;;  %v3570_v56 = vunpack.i.h.bf16 %v9148_v39  ;;  %v3585_v12 = vunpack.i.h.bf16 %v5602_v14  ;;  %v6389_v49 = vpop.permute.xlu0 %3797  ;;  %v1792_v53 = vsel %vm123_vm0, %v1790_v61, %v1791_v1  ;;  %v6407_v10 = vld [vmem:[%s8745_s0 + $0x2f8] sm:$0x3]  ;;  %v3584_v0 = vunpack.i.l.bf16 %v5602_v14  ;;  %v9154_v2 = vld [vmem:[#allocation12_spill] sm:$0xff] }
 0x100   :  { %9150 = vst [vmem:[#allocation97_spill] sm:$0xff] %v6389_v49  ;;  %9151 = vst [vmem:[#allocation98_spill] sm:$0xff] %v6397_v57  ;;  %v1785_v61 = vrot.slane %v6364_v55, 1  ;;  %v1786_v39 = vrot.slane %v6369_v47, 1  ;;  %v6415_v49 = vsel %vm1112_vm3, %v5854_v31, %v3575_v13  ;;  %v6419_v41 = vsel %vm1112_vm3, %v5860_v28, %v3574_v59 }
 0x101   :  { %4092 = vrot.lane.b32.xlu1 %v5389_v21, %s4848_s12  ;;  %9152 = vst [vmem:[#allocation99_spill] sm:$0xff] %v6402_v50  ;;  %9153 = vst [vmem:[#allocation100_spill] sm:$0xff] %v6407_v10  ;;  %v1794_v21 = vsel %vm123_vm0, %v1791_v1, %v1793_v30  ;;  %v6423_v3 = vpop.permute.xlu1 %3812  ;;  %v6425_v14 = vpack.i.bf16 %v1779_v17, %v1777_v7  ;;  %v1788_v1 = vrot.slane %v6381_v35, 1  ;;  %v1800_v31 = vrot.slane %v6397_v57, 1  ;;  %v9174_v35 = vld [vmem:[#allocation14_spill] sm:$0xff] }
 0x102   :  { %4087 = vrot.lane.b32.xlu0 %v9154_v2, %s4848_s12  ;;  %9155 = vst [vmem:[#allocation12_spill] sm:$0xff] %v6423_v3  ;;  %v6430_v30 = vsel %vm1112_vm3, %v5904_v36, %v3569_v42  ;;  %v1801_v13 = vrot.slane %v6402_v50, 1  ;;  %v1803_v28 = vrot.slane %v6407_v10, 1  ;;  %v6437_v59 = vsel %vm1112_vm3, %v5898_v60, %v3570_v56  ;;  %v9157_v2 = vld [vmem:[#allocation46_spill] sm:$0xff]  ;;  %v9160_v3 = vld [vmem:[#allocation44_spill] sm:$0xff]  ;;  %v6459_v60 = vld [vmem:[%s8745_s0 + $0x2d8] sm:$0xff] }
 0x103   :  { %9156 = vst [vmem:[#allocation101_spill] sm:$0xff] %v6425_v14  ;;  %v6441_v7 = vsel %vm1112_vm3, %v9157_v2, %v3585_v12  ;;  %v6443_v17 = vpop.permute.xlu0 %3807  ;;  %v9161_v36 = vld [vmem:[#allocation42_spill] sm:$0xff]  ;;  %v6449_v57 = vpack.i.bf16 %v1794_v21, %v1792_v53  ;;  %v6454_v10 = vld [vmem:[%s8745_s0 + $0x2d0] sm:$0xff]  ;;  %9165 = vst [vmem:[#allocation103_spill] sm:$0xff] %v6459_v60  ;;  %v1787_v53 = vsel %vm123_vm0, %v1785_v61, %v1786_v39 }
 0x104   :  { %9158 = vst [vmem:[#allocation46_spill] sm:$0xff] %v6441_v7  ;;  %9159 = vst [vmem:[#allocation102_spill] sm:$0xff] %v6443_v17  ;;  %v9162_v42 = vpack.i.bf16 %v9160_v3, %v9161_v36  ;;  %v9166_v56 = vld [vmem:[#allocation49_spill] sm:$0xff]  ;;  %v9168_v2 = vld [vmem:[#allocation6_spill] sm:$0xff]  ;;  %v1789_v55 = vsel %vm123_vm0, %v1786_v39, %v1788_v1  ;;  %v1802_v7 = vsel %vm123_vm0, %v1800_v31, %v1801_v13  ;;  %v1795_v34 = vrot.slane %v6454_v10, 1 }
 0x105   :  { %9163 = vst [vmem:[#allocation44_spill] sm:$0xff] %v6449_v57  ;;  %9164 = vst [vmem:[#allocation42_spill] sm:$0xff] %v6454_v10  ;;  %v6463_v12 = vsel %vm1112_vm3, %v9166_v56, %v3584_v0  ;;  %v3580_v17 = vunpack.i.h.bf16 %v9168_v2  ;;  %v3579_v3 = vunpack.i.l.bf16 %v9168_v2  ;;  %v6471_v21 = vld [vmem:[%s8745_s0 + $0x2e0] sm:$0x3]  ;;  %v6476_v36 = vld [vmem:[%s8745_s0 + $0x318] sm:$0xff]  ;;  %v6488_v47 = vpop.permute.xlu1 %3822  ;;  %v1796_v39 = vrot.slane %v6459_v60, 1 }
 0x106   :  { %4102 = vrot.lane.b32.xlu1 %v9162_v42, %s4848_s12  ;;  %9167 = vst [vmem:[#allocation49_spill] sm:$0xff] %v6463_v12  ;;  %9169 = vst [vmem:[#allocation6_spill] sm:$0xff] %v6471_v21  ;;  %v6481_v0 = vld [vmem:[%s8745_s0 + $0x320] sm:$0xff]  ;;  %v9172_v42 = vld [vmem:[#allocation3_spill] sm:$0xff]  ;;  %4097 = vrot.lane.b32.xlu0 %v9174_v35, %s4848_s12  ;;  %v1798_v1 = vrot.slane %v6471_v21, 1 }
 0x107   :  { %9170 = vst [vmem:[#allocation104_spill] sm:$0xff] %v6476_v36  ;;  %9171 = vst [vmem:[#allocation105_spill] sm:$0xff] %v6481_v0  ;;  %v3595_v56 = vunpack.i.h.bf16 %v9172_v42  ;;  %v3594_v2 = vunpack.i.l.bf16 %v9172_v42  ;;  %v9173_v61 = vld [vmem:[#allocation8_spill] sm:$0xff]  ;;  %v1804_v42 = vsel %vm123_vm0, %v1801_v13, %v1803_v28  ;;  %v6500_v26 = vpop.permute.xlu0 %3817  ;;  %v9178_v35 = vld [vmem:[#allocation50_spill] sm:$0xff]  ;;  %v1811_v12 = vrot.slane %v6481_v0, 1 }
 0x108   :  { %v3589_v50 = vunpack.i.l.bf16 %v9173_v61  ;;  %9175 = vst [vmem:[#allocation3_spill] sm:$0xff] %v6488_v47  ;;  %9176 = vst [vmem:[#allocation8_spill] sm:$0xff] %v6494_v27  ;;  %v3590_v16 = vunpack.i.h.bf16 %v9173_v61  ;;  %v1810_v47 = vrot.slane %v6476_v36, 1  ;;  %v9179_v61 = vld [vmem:[#allocation52_spill] sm:$0xff]  ;;  %v9180_v13 = vld [vmem:[#allocation51_spill] sm:$0xff] }
 0x109   :  { %9177 = vst [vmem:[#allocation14_spill] sm:$0xff] %v6500_v26  ;;  %v6510_v31 = vsel %vm1112_vm3, %v9179_v61, %v3579_v3  ;;  %v6514_v28 = vsel %vm1112_vm3, %v9180_v13, %v3580_v17  ;;  %v6516_v26 = vpack.i.bf16 %v1789_v55, %v1787_v53  ;;  %v9182_v10 = vld [vmem:[#allocation57_spill] sm:$0xff]  ;;  %v6525_v36 = vsel %vm1112_vm3, %v6002_v20, %v3594_v2  ;;  %v6535_v55 = vpop.permute.xlu1 %3832  ;;  %v6547_v20 = vld [vmem:[%s8745_s0 + $0x308] sm:$0xff]  ;;  %v9198_v21 = vld [vmem:[#allocation36_spill] sm:$0xff] }
 0x10a   :  { %4112 = vrot.lane.b32.xlu1 %v9178_v35, %s4841_s13  ;;  %v1813_v35 = vrot.slane %v6494_v27, 1  ;;  %v6521_v60 = vsel %vm1112_vm3, %v9182_v10, %v3595_v56  ;;  %v6529_v3 = vsel %vm1112_vm3, %v6049_v22, %v3589_v50  ;;  %v9183_v17 = vpack.i.bf16 %v5954_v62, %v5951_v15  ;;  %9184 = vst [vmem:[#allocation51_spill] sm:$0xff] %v6535_v55  ;;  %v6542_v10 = vld [vmem:[%s8745_s0 + $0x300] sm:$0xff]  ;;  %v9190_v62 = vld [vmem:[#allocation5_spill] sm:$0xff] }
 0x10b   :  { %9181 = vst [vmem:[#allocation52_spill] sm:$0xff] %v6516_v26  ;;  %v6537_v53 = vpack.i.bf16 %v1804_v42, %v1802_v7  ;;  %9186 = vst [vmem:[#allocation106_spill] sm:$0xff] %v6542_v10  ;;  %v9188_v22 = vld [vmem:[#allocation62_spill] sm:$0xff]  ;;  %v3605_v15 = vunpack.i.h.bf16 %v9190_v62  ;;  %v3604_v56 = vunpack.i.l.bf16 %v9190_v62  ;;  %v9191_v7 = vld [vmem:[#allocation13_spill] sm:$0xff]  ;;  %v6562_v13 = vpop.permute.xlu0 %3827  ;;  %v1805_v0 = vrot.slane %v6542_v10, 1 }
 0x10c   :  { %4107 = vrot.lane.b32.xlu0 %v9183_v17, %s4841_s13  ;;  %9187 = vst [vmem:[#allocation107_spill] sm:$0xff] %v6547_v20  ;;  %v6551_v50 = vsel %vm1112_vm3, %v9188_v22, %v3590_v16  ;;  %v3599_v2 = vunpack.i.l.bf16 %v9191_v7  ;;  %v6559_v42 = vld [vmem:[%s8745_s0 + $0x310] sm:$0x3]  ;;  %v3600_v61 = vunpack.i.h.bf16 %v9191_v7  ;;  %9193 = vst [vmem:[#allocation13_spill] sm:$0xff] %v6562_v13  ;;  %v1797_v16 = vsel %vm123_vm0, %v1795_v34, %v1796_v39  ;;  %v9194_v62 = vld [vmem:[#allocation7_spill] sm:$0xff] }
 0x10d   :  { %9185 = vst [vmem:[#allocation57_spill] sm:$0xff] %v6537_v53  ;;  %9189 = vst [vmem:[#allocation62_spill] sm:$0xff] %v6551_v50  ;;  %v1799_v17 = vsel %vm123_vm0, %v1796_v39, %v1798_v1  ;;  %v1812_v22 = vsel %vm123_vm0, %v1810_v47, %v1811_v12  ;;  %v3615_v55 = vunpack.i.h.bf16 %v9194_v62  ;;  %v1814_v27 = vsel %vm123_vm0, %v1811_v12, %v1813_v35  ;;  %v6575_v13 = vpop.permute.xlu1 %3842  ;;  %v9197_v1 = vld [vmem:[#allocation35_spill] sm:$0xff]  ;;  %v9209_v10 = vld [vmem:[#allocation68_spill] sm:$0xff] }
 0x10e   :  { %9192 = vst [vmem:[#allocation5_spill] sm:$0xff] %v6559_v42  ;;  %4122 = vrot.lane.b32.xlu1 %v6069_v33, %s4841_s13  ;;  %v1806_v7 = vrot.slane %v6547_v20, 1  ;;  %9195 = vst [vmem:[#allocation7_spill] sm:$0xff] %v6575_v13  ;;  %v1808_v34 = vrot.slane %v6559_v42, 1  ;;  %v9196_v33 = vld [vmem:[#allocation34_spill] sm:$0xff]  ;;  %v1917_v47 = vrot.slane %v9197_v1, 2  ;;  %v6583_v12 = vsel %vm1112_vm3, %v6067_v58, %v3605_v15 }
 0x10f   :  { %v1916_v39 = vrot.slane %v9196_v33, 2  ;;  %v1919_v50 = vrot.slane %v9198_v21, 2  ;;  %v6587_v35 = vsel %vm1112_vm3, %v6082_v24, %v3604_v56  ;;  %v6593_v13 = vpack.i.bf16 %v1799_v17, %v1797_v16  ;;  %v9200_v1 = vld [vmem:[#allocation9_spill] sm:$0xff]  ;;  %v6601_v58 = vpop.permute.xlu0 %3837  ;;  %v9203_v56 = vld [vmem:[#allocation18_spill] sm:$0xff] }
 0x110   :  { %4117 = vrot.lane.b32.xlu0 %v6100_v52, %s4841_s13  ;;  %v6591_v52 = vsel %vm1112_vm3, %v6094_v9, %v3599_v2  ;;  %v6597_v33 = vsel %vm1112_vm3, %v6088_v44, %v3600_v61  ;;  %v3614_v21 = vunpack.i.l.bf16 %v9194_v62  ;;  %v3609_v42 = vunpack.i.l.bf16 %v9200_v1  ;;  %9201 = vst [vmem:[#allocation35_spill] sm:$0xff] %v6601_v58  ;;  %v9206_v62 = vld [vmem:[#allocation38_spill] sm:$0xff] }
 0x111   :  { %9199 = vst [vmem:[#allocation34_spill] sm:$0xff] %v6593_v13  ;;  %v6605_v24 = vpack.i.bf16 %v1814_v27, %v1812_v22  ;;  %v6609_v9 = vsel %vm1112_vm3, %v6106_v63, %v3615_v55  ;;  %v3610_v15 = vunpack.i.h.bf16 %v9200_v1  ;;  %v3625_v44 = vunpack.i.h.bf16 %v9203_v56  ;;  %v6616_v61 = vpop.permute.xlu1 %3852  ;;  %v9205_v55 = vld [vmem:[#allocation16_spill] sm:$0xff] }
 0x112   :  { %4132 = vrot.lane.b32.xlu1 %v6124_v8, %s4841_s13  ;;  %v3624_v2 = vunpack.i.l.bf16 %v9203_v56  ;;  %9204 = vst [vmem:[#allocation9_spill] sm:$0xff] %v6616_v61  ;;  %v1807_v16 = vsel %vm123_vm0, %v1805_v0, %v1806_v7  ;;  %v1809_v27 = vsel %vm123_vm0, %v1806_v7, %v1808_v34  ;;  %v1918_v17 = vsel %vm300_vm1, %v1916_v39, %v1917_v47  ;;  %v9207_v8 = vld [vmem:[#allocation40_spill] sm:$0xff]  ;;  %v9208_v56 = vld [vmem:[#allocation41_spill] sm:$0xff] }
 0x113   :  { %9202 = vst [vmem:[#allocation36_spill] sm:$0xff] %v6605_v24  ;;  %v1920_v63 = vsel %vm300_vm1, %v1917_v47, %v1919_v50  ;;  %v3619_v22 = vunpack.i.l.bf16 %v9205_v55  ;;  %v1911_v1 = vrot.slane %v9206_v62, 2  ;;  %v1912_v58 = vrot.slane %v9207_v8, 2  ;;  %v9210_v34 = vld [vmem:[#allocation20_spill] sm:$0xff]  ;;  %v6636_v39 = vpop.permute.xlu0 %3847  ;;  %v9212_v8 = vld [vmem:[#allocation73_spill] sm:$0xff] }
 0x114   :  { %4127 = vrot.lane.b32.xlu0 %v6247_v32, %s4841_s13  ;;  %v1914_v20 = vrot.slane %v9208_v56, 2  ;;  %v6628_v32 = vsel %vm1112_vm3, %v9209_v10, %v3614_v21  ;;  %v6632_v0 = vsel %vm1112_vm3, %v6166_v5, %v3609_v42  ;;  %v3620_v7 = vunpack.i.h.bf16 %v9205_v55  ;;  %9211 = vst [vmem:[#allocation18_spill] sm:$0xff] %v6636_v39  ;;  %v9214_v55 = vld [vmem:[#allocation17_spill] sm:$0xff]  ;;  %v9241_v61 = vld [vmem:[#allocation28_spill] sm:$0xff] }
 0x115   :  { %v3634_v50 = vunpack.i.l.bf16 %v9210_v34  ;;  %v6642_v47 = vsel %vm1112_vm3, %v9212_v8, %v3610_v15  ;;  %v6646_v10 = vsel %vm1112_vm3, %v6181_v11, %v3625_v44  ;;  %v6650_v5 = vsel %vm1112_vm3, %v6195_v18, %v3624_v2  ;;  %v6659_v15 = vpop.permute.xlu1 %3862  ;;  %v9217_v18 = vld [vmem:[#allocation19_spill] sm:$0xff] }
 0x116   :  { %4142 = vrot.lane.b32.xlu1 %v6262_v45, %s4841_s13  ;;  %v6652_v42 = vpack.i.bf16 %v1809_v27, %v1807_v16  ;;  %v3635_v21 = vunpack.i.h.bf16 %v9210_v34  ;;  %v3630_v62 = vunpack.i.h.bf16 %v9214_v55  ;;  %v3629_v56 = vunpack.i.l.bf16 %v9214_v55  ;;  %9215 = vst [vmem:[#allocation38_spill] sm:$0xff] %v6659_v15  ;;  %v9221_v55 = vld [vmem:[#allocation55_spill] sm:$0xff] }
 0x117   :  { %v6661_v8 = vpack.i.bf16 %v1920_v63, %v1918_v17  ;;  %v6665_v11 = vsel %vm1112_vm3, %v6253_v51, %v3619_v22  ;;  %v3644_v44 = vunpack.i.l.bf16 %v9217_v18  ;;  %v6669_v2 = vsel %vm300_vm1, %v1911_v1, %v1912_v58  ;;  %v9218_v51 = vld [vmem:[#allocation21_spill] sm:$0xff]  ;;  %v6684_v34 = vpop.permute.xlu0 %3857 }
 0x118   :  { %9213 = vst [vmem:[#allocation16_spill] sm:$0xff] %v6652_v42  ;;  %4137 = vrot.lane.b32.xlu0 %v6346_v29, %s4841_s13  ;;  %v6672_v16 = vsel %vm300_vm1, %v1912_v58, %v1914_v20  ;;  %v6676_v27 = vsel %vm1112_vm3, %v6242_v19, %v3620_v7  ;;  %v6680_v17 = vsel %vm1145_vm5, %v6292_v38, %v3634_v50  ;;  %v3645_v63 = vunpack.i.h.bf16 %v9217_v18  ;;  %v9220_v58 = vld [vmem:[#allocation54_spill] sm:$0xff]  ;;  %v9222_v7 = vld [vmem:[#allocation56_spill] sm:$0xff] }
 0x119   :  { %9216 = vst [vmem:[#allocation40_spill] sm:$0xff] %v6661_v8  ;;  %v3639_v22 = vunpack.i.l.bf16 %v9218_v51  ;;  %9219 = vst [vmem:[#allocation41_spill] sm:$0xff] %v6684_v34  ;;  %v3640_v20 = vunpack.i.h.bf16 %v9218_v51  ;;  %v1936_v1 = vrot.slane %v9220_v58, 2  ;;  %v1937_v19 = vrot.slane %v9221_v55, 2  ;;  %v6706_v51 = vpop.permute.xlu1 %3872  ;;  %v9236_v34 = vld [vmem:[#allocation77_spill] sm:$0xff] }
 0x11a   :  { %4152 = vrot.lane.b32.xlu1 %v6359_v54, %s4841_s13  ;;  %v1939_v45 = vrot.slane %v9222_v7, 2  ;;  %v6694_v38 = vsel %vm1145_vm5, %v6296_v4, %v3635_v21  ;;  %v6698_v50 = vsel %vm1145_vm5, %v6329_v48, %v3629_v56  ;;  %v6702_v18 = vsel %vm1145_vm5, %v6340_v23, %v3630_v62  ;;  %9223 = vst [vmem:[#allocation68_spill] sm:$0xff] %v6706_v51  ;;  %v9224_v21 = vld [vmem:[#allocation23_spill] sm:$0xff]  ;;  %v9225_v56 = vld [vmem:[#allocation24_spill] sm:$0xff] }
 0x11b   :  { %v6712_v4 = vsel %vm1145_vm5, %v6351_v40, %v3644_v44  ;;  %v3655_v55 = vunpack.i.h.bf16 %v9224_v21  ;;  %v3654_v48 = vunpack.i.l.bf16 %v9224_v21  ;;  %v6718_v23 = vsel %vm1145_vm5, %v6344_v43, %v3645_v63  ;;  %v6726_v54 = vpop.permute.xlu0 %3867  ;;  %v9227_v44 = vld [vmem:[#allocation25_spill] sm:$0xff]  ;;  %v9250_v51 = vld [vmem:[#allocation87_spill] sm:$0xff] }
 0x11c   :  { %4147 = vrot.lane.b32.xlu0 %v6425_v14, %s4841_s13  ;;  %v6722_v62 = vsel %vm1145_vm5, %v6385_v25, %v3639_v22  ;;  %v3650_v7 = vunpack.i.h.bf16 %v9225_v56  ;;  %v3649_v58 = vunpack.i.l.bf16 %v9225_v56  ;;  %9226 = vst [vmem:[#allocation20_spill] sm:$0xff] %v6726_v54  ;;  %v6732_v40 = vsel %vm1145_vm5, %v6373_v46, %v3640_v20  ;;  %v9229_v56 = vld [vmem:[#allocation65_spill] sm:$0xff]  ;;  %v9247_v54 = vld [vmem:[#allocation82_spill] sm:$0xff] }
 0x11d   :  { %v3664_v43 = vunpack.i.l.bf16 %v9227_v44  ;;  %v1938_v63 = vsel %vm300_vm1, %v1936_v1, %v1937_v19  ;;  %v1940_v25 = vsel %vm300_vm1, %v1937_v19, %v1939_v45  ;;  %v3665_v22 = vunpack.i.h.bf16 %v9227_v44  ;;  %v6740_v21 = vpop.permute.xlu1 %3882  ;;  %v9230_v1 = vld [vmem:[#allocation26_spill] sm:$0xff] }
 0x11e   :  { %4162 = vrot.lane.b32.xlu1 %v6449_v57, %s4841_s13  ;;  %9228 = vst [vmem:[#allocation73_spill] sm:$0xff] %v6740_v21  ;;  %v1946_v14 = vrot.slane %v9229_v56, 2  ;;  %v1947_v57 = vrot.slane %v6132_v6, 2  ;;  %v1949_v46 = vrot.slane %v6139_v37, 2  ;;  %v6747_v20 = vsel %vm1145_vm5, %v6419_v41, %v3654_v48  ;;  %v9234_v48 = vld [vmem:[#allocation71_spill] sm:$0xff] }
 0x11f   :  { %v6751_v45 = vsel %vm1145_vm5, %v6415_v49, %v3655_v55  ;;  %v3659_v19 = vunpack.i.l.bf16 %v9230_v1  ;;  %v6756_v44 = vsel %vm1145_vm5, %v6430_v30, %v3649_v58  ;;  %v3660_v37 = vunpack.i.h.bf16 %v9230_v1  ;;  %v6763_v15 = vpop.permute.xlu0 %3877  ;;  %v9233_v49 = vld [vmem:[#allocation49_spill] sm:$0xff]  ;;  %v9235_v58 = vld [vmem:[#allocation75_spill] sm:$0xff] }
 0x120   :  { %4157 = vrot.lane.b32.xlu0 %v6516_v26, %s4841_s13  ;;  %v6760_v26 = vsel %vm1145_vm5, %v6437_v59, %v3650_v7  ;;  %9231 = vst [vmem:[#allocation17_spill] sm:$0xff] %v6763_v15  ;;  %v6767_v41 = vpack.i.bf16 %v1940_v25, %v1938_v63  ;;  %v6771_v55 = vsel %vm1145_vm5, %v9233_v49, %v3664_v43  ;;  %v1941_v30 = vrot.slane %v9234_v48, 2  ;;  %v9237_v7 = vld [vmem:[#allocation46_spill] sm:$0xff]  ;;  %v9240_v49 = vld [vmem:[#allocation27_spill] sm:$0xff] }
 0x121   :  { %v1942_v29 = vrot.slane %v9235_v58, 2  ;;  %v1944_v59 = vrot.slane %v9236_v34, 2  ;;  %v6778_v1 = vsel %vm1145_vm5, %v9237_v7, %v3665_v22  ;;  %v1948_v63 = vsel %vm300_vm1, %v1946_v14, %v1947_v57 }
 0x122   :  { %4172 = vrot.lane.b32.xlu1 %v6537_v53, %s4841_s13  ;;  %9232 = vst [vmem:[#allocation19_spill] sm:$0xff] %v6767_v41  ;;  %v6782_v53 = vpop.permute.xlu1 %3892  ;;  %v1950_v43 = vsel %vm300_vm1, %v1947_v57, %v1949_v46  ;;  %v6788_v25 = vsel %vm1145_vm5, %v6510_v31, %v3659_v19  ;;  %v3675_v39 = vunpack.i.h.bf16 %v9240_v49  ;;  %v3674_v34 = vunpack.i.l.bf16 %v9240_v49  ;;  %v9244_v57 = vld [vmem:[#allocation79_spill] sm:$0xff]  ;;  %v9245_v31 = vld [vmem:[#allocation80_spill] sm:$0xff]  ;;  %v9246_v19 = vld [vmem:[#allocation29_spill] sm:$0xff] }
 0x123   :  { %9238 = vst [vmem:[#allocation21_spill] sm:$0xff] %v6782_v53  ;;  %9239 = vst [vmem:[#allocation54_spill] sm:$0xff] %v6788_v25  ;;  %v3669_v22 = vunpack.i.l.bf16 %v9241_v61  ;;  %v6795_v7 = vsel %vm1145_vm5, %v6514_v28, %v3660_v37  ;;  %v6798_v53 = vpop.permute.xlu0 %3887  ;;  %v1956_v14 = vrot.slane %v9244_v57, 2  ;;  %v1957_v46 = vrot.slane %v9245_v31, 2  ;;  %v9251_v31 = vld [vmem:[#allocation88_spill] sm:$0xff] }
 0x124   :  { %4167 = vrot.lane.b32.xlu0 %v6593_v13, %s4841_s13  ;;  %9242 = vst [vmem:[#allocation55_spill] sm:$0xff] %v6795_v7  ;;  %v3670_v13 = vunpack.i.h.bf16 %v9241_v61  ;;  %9243 = vst [vmem:[#allocation56_spill] sm:$0xff] %v6798_v53  ;;  %v3685_v21 = vunpack.i.h.bf16 %v9246_v19  ;;  %v1943_v49 = vsel %vm300_vm1, %v1941_v30, %v1942_v29  ;;  %v1945_v15 = vsel %vm300_vm1, %v1942_v29, %v1944_v59 }
 0x125   :  { %v1959_v28 = vrot.slane %v9247_v54, 2  ;;  %v3684_v37 = vunpack.i.l.bf16 %v9246_v19  ;;  %v1952_v57 = vrot.slane %v9250_v51, 2  ;;  %v1954_v7 = vrot.slane %v9251_v31, 2  ;;  %v9253_v19 = vld [vmem:[#allocation62_spill] sm:$0xff] }
 0x126   :  { %4182 = vrot.lane.b32.xlu1 %v6605_v24, %s4841_s13  ;;  %v6811_v61 = vpop.permute.xlu1 %3902  ;;  %v9249_v24 = vld [vmem:[#allocation85_spill] sm:$0xff]  ;;  %v6818_v30 = vsel %vm1145_vm5, %v6525_v36, %v3674_v34  ;;  %v6822_v29 = vsel %vm1145_vm5, %v6521_v60, %v3675_v39  ;;  %v6826_v54 = vsel %vm1145_vm5, %v6529_v3, %v3669_v22  ;;  %v6828_v59 = vpack.i.bf16 %v1950_v43, %v1948_v63  ;;  %v9257_v39 = vld [vmem:[#allocation31_spill] sm:$0xff] }
 0x127   :  { %9248 = vst [vmem:[#allocation23_spill] sm:$0xff] %v6811_v61  ;;  %v1951_v53 = vrot.slane %v9249_v24, 2  ;;  %v9254_v61 = vld [vmem:[#allocation30_spill] sm:$0xff]  ;;  %v6835_v25 = vpop.permute.xlu0 %3897  ;;  %v6839_v36 = vpack.i.bf16 %v1945_v15, %v1943_v49  ;;  %v1958_v60 = vsel %vm300_vm1, %v1956_v14, %v1957_v46  ;;  %v3695_v63 = vunpack.i.h.bf16 %v9257_v39 }
 0x128   :  { %4177 = vrot.lane.b32.xlu0 %v6652_v42, %s4841_s13  ;;  %9252 = vst [vmem:[#allocation24_spill] sm:$0xff] %v6828_v59  ;;  %v6832_v42 = vsel %vm1145_vm5, %v9253_v19, %v3670_v13  ;;  %v3679_v31 = vunpack.i.l.bf16 %v9254_v61  ;;  %9255 = vst [vmem:[#allocation25_spill] sm:$0xff] %v6835_v25  ;;  %v3680_v3 = vunpack.i.h.bf16 %v9254_v61  ;;  %v3694_v43 = vunpack.i.l.bf16 %v9257_v39  ;;  %v9263_v19 = vld [vmem:[#allocation90_spill] sm:$0xff] }
 0x129   :  { %9256 = vst [vmem:[#allocation65_spill] sm:$0xff] %v6839_v36  ;;  %v1960_v13 = vsel %vm300_vm1, %v1957_v46, %v1959_v28  ;;  %v6848_v34 = vsel %vm1145_vm5, %v6587_v35, %v3684_v37  ;;  %v6852_v22 = vsel %vm1145_vm5, %v6583_v12, %v3685_v21  ;;  %v9259_v15 = vpack.i.bf16 %v6672_v16, %v6669_v2  ;;  %v9261_v28 = vld [vmem:[#allocation32_spill] sm:$0xff]  ;;  %v9262_v35 = vld [vmem:[#allocation2_spill] sm:$0xff]  ;;  %v9264_v12 = vld [vmem:[#allocation91_spill] sm:$0xff] }
 0x12a   :  { %4192 = vrot.lane.b32.xlu1 %v6661_v8, %s4842_s24  ;;  %9258 = vst [vmem:[#allocation26_spill] sm:$0xff] %v6852_v22  ;;  %v6858_v14 = vpop.permute.xlu1 %3912  ;;  %v1953_v49 = vsel %vm300_vm1, %v1951_v53, %v1952_v57  ;;  %v1955_v46 = vsel %vm300_vm1, %v1952_v57, %v1954_v7  ;;  %v3689_v61 = vunpack.i.l.bf16 %v9261_v28  ;;  %v1966_v37 = vrot.slane %v9262_v35, 2  ;;  %v9267_v16 = vld [vmem:[#allocation78_spill] sm:$0xff]  ;;  %v9269_v7 = vld [vmem:[#allocation95_spill] sm:$0xff] }
 0x12b   :  { %9260 = vst [vmem:[#allocation49_spill] sm:$0xff] %v6858_v14  ;;  %v1967_v39 = vrot.slane %v9263_v19, 2  ;;  %v1969_v21 = vrot.slane %v9264_v12, 2  ;;  %v6868_v25 = vsel %vm1145_vm5, %v6591_v52, %v3679_v31  ;;  %v6870_v2 = vpop.permute.xlu0 %3907  ;;  %v6874_v53 = vpack.i.bf16 %v1960_v13, %v1958_v60  ;;  %v9273_v31 = vld [vmem:[#allocation4_spill] sm:$0xff]  ;;  %v9274_v13 = vld [vmem:[#allocation33_spill] sm:$0xff]  ;;  %v9275_v22 = vld [vmem:[#allocation83_spill] sm:$0xff] }
 0x12c   :  { %4187 = vrot.lane.b32.xlu0 %v9259_v15, %s4842_s24  ;;  %9265 = vst [vmem:[#allocation71_spill] sm:$0xff] %v6868_v25  ;;  %9266 = vst [vmem:[#allocation75_spill] sm:$0xff] %v6870_v2  ;;  %v1961_v57 = vrot.slane %v9269_v7, 2  ;;  %v9270_v15 = vld [vmem:[#allocation96_spill] sm:$0xff]  ;;  %v6880_v8 = vsel %vm1145_vm5, %v6597_v33, %v3680_v3  ;;  %v6884_v12 = vsel %vm1145_vm5, %v6628_v32, %v3694_v43  ;;  %v3690_v60 = vunpack.i.h.bf16 %v9261_v28  ;;  %v9278_v43 = vld [vmem:[#allocation98_spill] sm:$0xff] }
 0x12d   :  { %9268 = vst [vmem:[#allocation77_spill] sm:$0xff] %v6874_v53  ;;  %v1962_v14 = vrot.slane %v9270_v15, 2  ;;  %9271 = vst [vmem:[#allocation46_spill] sm:$0xff] %v6884_v12  ;;  %v6888_v52 = vsel %vm1145_vm5, %v6609_v9, %v3695_v63  ;;  %v3705_v2 = vunpack.i.h.bf16 %v9274_v13  ;;  %v3704_v25 = vunpack.i.l.bf16 %v9274_v13 }
 0x12e   :  { %4202 = vrot.lane.b32.xlu1 %v9267_v16, %s4842_s24  ;;  %9272 = vst [vmem:[#allocation27_spill] sm:$0xff] %v6888_v52  ;;  %v1964_v16 = vrot.slane %v9273_v31, 2  ;;  %v6896_v33 = vpop.permute.xlu1 %3922  ;;  %v6898_v3 = vpack.i.bf16 %v1955_v46, %v1953_v49  ;;  %v6902_v32 = vsel %vm1145_vm5, %v6632_v0, %v3689_v61  ;;  %v1968_v9 = vsel %vm300_vm1, %v1966_v37, %v1967_v39  ;;  %v9279_v31 = vld [vmem:[#allocation37_spill] sm:$0xff]  ;;  %v9281_v46 = vld [vmem:[#allocation99_spill] sm:$0xff] }
 0x12f   :  { %9276 = vst [vmem:[#allocation28_spill] sm:$0xff] %v6896_v33  ;;  %v1970_v63 = vsel %vm300_vm1, %v1967_v39, %v1969_v21  ;;  %v1976_v28 = vrot.slane %v9278_v43, 2  ;;  %v3700_v52 = vunpack.i.h.bf16 %v9279_v31  ;;  %v3699_v13 = vunpack.i.l.bf16 %v9279_v31  ;;  %v6909_v12 = vpop.permute.xlu0 %3917  ;;  %v9282_v61 = vld [vmem:[#allocation39_spill] sm:$0xff]  ;;  %v9283_v21 = vld [vmem:[#allocation100_spill] sm:$0xff] }
 0x130   :  { %4197 = vrot.lane.b32.xlu0 %v9275_v22, %s4842_s24  ;;  %9277 = vst [vmem:[#allocation29_spill] sm:$0xff] %v6898_v3  ;;  %9280 = vst [vmem:[#allocation82_spill] sm:$0xff] %v6909_v12  ;;  %v1963_v49 = vsel %vm300_vm1, %v1961_v57, %v1962_v14  ;;  %v1977_v0 = vrot.slane %v9281_v46, 2  ;;  %v3715_v33 = vunpack.i.h.bf16 %v9282_v61  ;;  %v3714_v37 = vunpack.i.l.bf16 %v9282_v61  ;;  %v9287_v46 = vld [vmem:[#allocation43_spill] sm:$0xff]  ;;  %v9288_v61 = vld [vmem:[#allocation89_spill] sm:$0xff] }
 0x131   :  { %v1965_v39 = vsel %vm300_vm1, %v1962_v14, %v1964_v16  ;;  %v1979_v43 = vrot.slane %v9283_v21, 2  ;;  %v6921_v31 = vsel %vm1145_vm5, %v6642_v47, %v3690_v60  ;;  %v6925_v12 = vsel %vm1145_vm5, %v6650_v5, %v3704_v25  ;;  %v9291_v21 = vld [vmem:[#allocation42_spill] sm:$0xff]  ;;  %v9292_v60 = vld [vmem:[#allocation103_spill] sm:$0xff] }
 0x132   :  { %4212 = vrot.lane.b32.xlu1 %v6767_v41, %s4842_s24  ;;  %9284 = vst [vmem:[#allocation85_spill] sm:$0xff] %v6921_v31  ;;  %9285 = vst [vmem:[#allocation87_spill] sm:$0xff] %v6925_v12  ;;  %v6929_v57 = vsel %vm1145_vm5, %v6646_v10, %v3705_v2  ;;  %v3709_v41 = vunpack.i.l.bf16 %v9287_v46  ;;  %v6934_v14 = vpop.permute.xlu1 %3932  ;;  %v6936_v16 = vpack.i.bf16 %v1970_v63, %v1968_v9  ;;  %v1971_v47 = vrot.slane %v9291_v21, 2  ;;  %v9293_v31 = vld [vmem:[#allocation6_spill] sm:$0xff] }
 0x133   :  { %9286 = vst [vmem:[#allocation88_spill] sm:$0xff] %v6929_v57  ;;  %9289 = vst [vmem:[#allocation62_spill] sm:$0xff] %v6934_v14  ;;  %v1972_v22 = vrot.slane %v9292_v60, 2  ;;  %v1974_v5 = vrot.slane %v9293_v31, 2  ;;  %v6943_v25 = vsel %vm1145_vm5, %v6665_v11, %v3699_v13  ;;  %v6947_v10 = vsel %vm1145_vm5, %v6676_v27, %v3700_v52  ;;  %v6949_v2 = vpop.permute.xlu0 %3927 }
 0x134   :  { %4207 = vrot.lane.b32.xlu0 %v9288_v61, %s4842_s24  ;;  %9290 = vst [vmem:[#allocation30_spill] sm:$0xff] %v6936_v16  ;;  %9294 = vst [vmem:[#allocation31_spill] sm:$0xff] %v6949_v2  ;;  %v6953_v9 = vpack.i.bf16 %v1965_v39, %v1963_v49  ;;  %v1978_v63 = vsel %vm300_vm1, %v1976_v28, %v1977_v0  ;;  %v6958_v31 = vsel %vm1178_vm6, %v6680_v17, %v3714_v37  ;;  %v9296_v49 = vld [vmem:[#allocation45_spill] sm:$0xff]  ;;  %v9298_v37 = vld [vmem:[#allocation104_spill] sm:$0xff] }
 0x135   :  { %v6962_v11 = vsel %vm1178_vm6, %v6694_v38, %v3715_v33  ;;  %v3710_v27 = vunpack.i.h.bf16 %v9287_v46  ;;  %v1980_v52 = vsel %vm300_vm1, %v1977_v0, %v1979_v43  ;;  %v6968_v13 = vsel %vm1178_vm6, %v6698_v50, %v3709_v41  ;;  %v9299_v0 = vld [vmem:[#allocation105_spill] sm:$0xff]  ;;  %v9301_v41 = vld [vmem:[#allocation47_spill] sm:$0xff] }
 0x136   :  { %4222 = vrot.lane.b32.xlu1 %v6828_v59, %s4842_s24  ;;  %9295 = vst [vmem:[#allocation32_spill] sm:$0xff] %v6953_v9  ;;  %v3725_v39 = vunpack.i.h.bf16 %v9296_v49  ;;  %v3724_v28 = vunpack.i.l.bf16 %v9296_v49  ;;  %v6974_v17 = vpop.permute.xlu1 %3942  ;;  %v1986_v38 = vrot.slane %v9298_v37, 2  ;;  %v1973_v33 = vsel %vm300_vm1, %v1971_v47, %v1972_v22  ;;  %v9300_v59 = vld [vmem:[#allocation8_spill] sm:$0xff]  ;;  %v9303_v49 = vld [vmem:[#allocation106_spill] sm:$0xff]  ;;  %v9305_v37 = vld [vmem:[#allocation5_spill] sm:$0xff] }
 0x137   :  { %9297 = vst [vmem:[#allocation2_spill] sm:$0xff] %v6974_v17  ;;  %v1975_v46 = vsel %vm300_vm1, %v1972_v22, %v1974_v5  ;;  %v1987_v43 = vrot.slane %v9299_v0, 2  ;;  %v1989_v50 = vrot.slane %v9300_v59, 2  ;;  %v3719_v57 = vunpack.i.l.bf16 %v9301_v41  ;;  %v6982_v12 = vpop.permute.xlu0 %3937  ;;  %v9304_v17 = vld [vmem:[#allocation107_spill] sm:$0xff]  ;;  %v9306_v59 = vld [vmem:[#allocation53_spill] sm:$0xff] }
 0x138   :  { %4217 = vrot.lane.b32.xlu0 %v6839_v36, %s4842_s24  ;;  %9302 = vst [vmem:[#allocation90_spill] sm:$0xff] %v6982_v12  ;;  %v1981_v36 = vrot.slane %v9303_v49, 2  ;;  %v1982_v14 = vrot.slane %v9304_v17, 2  ;;  %v1984_v2 = vrot.slane %v9305_v37, 2  ;;  %v6991_v22 = vsel %vm1178_vm6, %v6702_v18, %v3710_v27  ;;  %v9308_v37 = vld [vmem:[#allocation58_spill] sm:$0xff] }
 0x139   :  { %v3720_v47 = vunpack.i.h.bf16 %v9301_v41  ;;  %v3734_v5 = vunpack.i.l.bf16 %v9306_v59  ;;  %v6995_v0 = vpack.i.bf16 %v1980_v52, %v1978_v63  ;;  %v6999_v12 = vsel %vm1178_vm6, %v6712_v4, %v3724_v28 }
 0x13a   :  { %4232 = vrot.lane.b32.xlu1 %v6874_v53, %s4842_s24  ;;  %v7003_v49 = vsel %vm1178_vm6, %v6718_v23, %v3725_v39  ;;  %v3735_v17 = vunpack.i.h.bf16 %v9306_v59  ;;  %v3729_v53 = vunpack.i.l.bf16 %v9308_v37  ;;  %v7009_v18 = vpop.permute.xlu1 %3952  ;;  %v3730_v63 = vunpack.i.h.bf16 %v9308_v37  ;;  %v9310_v39 = vld [vmem:[#allocation61_spill] sm:$0xff] }
 0x13b   :  { %9307 = vst [vmem:[#allocation91_spill] sm:$0xff] %v6995_v0  ;;  %v7012_v27 = vpack.i.bf16 %v1975_v46, %v1973_v33  ;;  %v1988_v4 = vsel %vm300_vm1, %v1986_v38, %v1987_v43  ;;  %v1990_v52 = vsel %vm300_vm1, %v1987_v43, %v1989_v50  ;;  %v7018_v23 = vsel %vm1178_vm6, %v6722_v62, %v3719_v57  ;;  %v7021_v41 = vpop.permute.xlu0 %3947  ;;  %v7039_v57 = vld [vmem:[%s8745_s0 + $0x1e0] sm:$0xff]  ;;  %v9311_v43 = vld [vmem:[#allocation48_spill] sm:$0xff]  ;;  %v4784_v50 = vld [vmem:[%s8745_s0 + $0x1c8] sm:$0xff] }
 0x13c   :  { %4227 = vrot.lane.b32.xlu0 %v6898_v3, %s4842_s24  ;;  %v3744_v28 = vunpack.i.l.bf16 %v9310_v39  ;;  %v1983_v59 = vsel %vm300_vm1, %v1981_v36, %v1982_v14  ;;  %v1985_v33 = vsel %vm300_vm1, %v1982_v14, %v1984_v2  ;;  %v7029_v38 = vsel %vm1178_vm6, %v6732_v40, %v3720_v47 }
 0x13d   :  { %9309 = vst [vmem:[#allocation95_spill] sm:$0xff] %v7012_v27  ;;  %v7033_v46 = vsel %vm1178_vm6, %v6747_v20, %v3734_v5  ;;  %v3745_v62 = vunpack.i.h.bf16 %v9310_v39  ;;  %v4271_v36 = vpack.i.bf16 %v9311_v43, %v7039_v57  ;;  %v7045_v14 = vsel %vm1178_vm6, %v6751_v45, %v3735_v17  ;;  %v4785_v45 = vld [vmem:[%s8745_s0 + $0x1d0] sm:$0xff]  ;;  %v9315_v39 = vld [vmem:[#allocation59_spill] sm:$0xff] }
 0x13e   :  { %4242 = vrot.lane.b32.xlu1 %v6936_v16, %s4842_s24  ;;  %v7049_v40 = vsel %vm1178_vm6, %v6756_v44, %v3729_v53  ;;  %v7053_v20 = vpop.permute.xlu1 %3962  ;;  %v7055_v2 = vpack.i.bf16 %v1990_v52, %v1988_v4  ;;  %v4266_v47 = vpack.i.bf16 %v4785_v45, %v4784_v50  ;;  %v7065_v44 = vsel %vm1178_vm6, %v6760_v26, %v3730_v63  ;;  %v9313_v53 = vld [vmem:[#allocation63_spill] sm:$0xff]  ;;  %v9316_v43 = vld [vmem:[#allocation60_spill] sm:$0xff]  ;;  %v4786_v26 = vld [vmem:[%s8745_s0 + $0x1f8] sm:$0xff] }
 0x13f   :  { %v3740_v5 = vunpack.i.h.bf16 %v9313_v53  ;;  %v3739_v17 = vunpack.i.l.bf16 %v9313_v53  ;;  %v7069_v37 = vpack.i.bf16 %v1985_v33, %v1983_v59  ;;  %v7073_v4 = vsel %vm1178_vm6, %v6771_v55, %v3744_v28  ;;  %v7075_v52 = vpop.permute.xlu0 %3957  ;;  %v4787_v63 = vld [vmem:[%s8745_s0 + $0x200] sm:$0xff] }
 0x140   :  { %4237 = vrot.lane.b32.xlu0 %v6953_v9, %s4842_s24  ;;  %9312 = vst [vmem:[#allocation96_spill] sm:$0xff] %v7055_v2  ;;  %v4281_v50 = vpack.i.bf16 %v9316_v43, %v9315_v39  ;;  %v7087_v59 = vpack.i.bf16 %v4787_v63, %v4786_v26  ;;  %v7093_v28 = vsel %vm1178_vm6, %v6778_v1, %v3745_v62  ;;  %v9317_v33 = vld [vmem:[#allocation66_spill] sm:$0xff]  ;;  %v4788_v39 = vld [vmem:[%s8745_s0 + $0x228] sm:$0xff]  ;;  %v4789_v43 = vld [vmem:[%s8745_s0 + $0x230] sm:$0xff] }
 0x141   :  { %9314 = vst [vmem:[#allocation4_spill] sm:$0xff] %v7069_v37  ;;  %v3755_v45 = vunpack.i.h.bf16 %v9317_v33  ;;  %v3754_v53 = vunpack.i.l.bf16 %v9317_v33  ;;  %v7103_v26 = vpack.i.bf16 %v4789_v43, %v4788_v39  ;;  %v9318_v63 = vld [vmem:[#allocation69_spill] sm:$0xff]  ;;  %v9320_v16 = vld [vmem:[#allocation54_spill] sm:$0xff]  ;;  %v9321_v39 = vld [vmem:[#allocation55_spill] sm:$0xff] }
 0x142   :  { %4252 = vrot.lane.b32.xlu1 %v6995_v0, %s4842_s24  ;;  %v3750_v55 = vunpack.i.h.bf16 %v9318_v63  ;;  %v3749_v0 = vunpack.i.l.bf16 %v9318_v63  ;;  %v7109_v1 = vpop.permute.xlu1 %3972  ;;  %v7117_v9 = vsel %vm1178_vm6, %v9320_v16, %v3739_v17  ;;  %v7121_v43 = vsel %vm1178_vm6, %v9321_v39, %v3740_v5  ;;  %v9322_v63 = vld [vmem:[#allocation72_spill] sm:$0xff]  ;;  %v9323_v33 = vld [vmem:[#allocation79_spill] sm:$0xff]  ;;  %v9328_v5 = vld [vmem:[#allocation74_spill] sm:$0xff] }
 0x143   :  { %9319 = vst [vmem:[#allocation33_spill] sm:$0xff] %v7109_v1  ;;  %v3764_v3 = vunpack.i.l.bf16 %v9322_v63  ;;  %v3765_v61 = vunpack.i.h.bf16 %v9322_v63  ;;  %v7127_v62 = vpop.permute.xlu0 %3967  ;;  %v9324_v16 = vld [vmem:[#allocation80_spill] sm:$0xff]  ;;  %v7139_v1 = vsel %vm1178_vm6, %v6818_v30, %v3754_v53  ;;  %v7143_v63 = vsel %vm1178_vm6, %v6822_v29, %v3755_v45  ;;  %v9331_v45 = vld [vmem:[#allocation26_spill] sm:$0xff]  ;;  %v9334_v53 = vld [vmem:[#allocation81_spill] sm:$0xff] }
 0x144   :  { %4247 = vrot.lane.b32.xlu0 %v7012_v27, %s4842_s24  ;;  %9325 = vst [vmem:[#allocation98_spill] sm:$0xff] %v7143_v63  ;;  %v7147_v27 = vsel %vm1178_vm6, %v6826_v54, %v3749_v0  ;;  %v7151_v17 = vsel %vm1178_vm6, %v6832_v42, %v3750_v55  ;;  %v3760_v29 = vunpack.i.h.bf16 %v9328_v5  ;;  %v9333_v0 = vld [vmem:[#allocation76_spill] sm:$0xff]  ;;  %v9341_v63 = vld [vmem:[#allocation46_spill] sm:$0xff] }
 0x145   :  { %9326 = vst [vmem:[#allocation37_spill] sm:$0xff] %v7147_v27  ;;  %9327 = vst [vmem:[#allocation99_spill] sm:$0xff] %v7151_v17  ;;  %v7160_v30 = vsel %vm1178_vm6, %v6848_v34, %v3764_v3  ;;  %v7165_v54 = vsel %vm1178_vm6, %v9331_v45, %v3765_v61  ;;  %v3775_v42 = vunpack.i.h.bf16 %v9333_v0  ;;  %v3774_v55 = vunpack.i.l.bf16 %v9333_v0  ;;  %v9336_v34 = vld [vmem:[#allocation86_spill] sm:$0xff]  ;;  %v7179_v61 = vld [vmem:[%s8745_s0 + $0x1e8] sm:$0xff] }
 0x146   :  { %4262 = vrot.lane.b32.xlu1 %v7055_v2, %s4842_s24  ;;  %v3759_v2 = vunpack.i.l.bf16 %v9328_v5  ;;  %v7156_v39 = vpop.permute.xlu1 %3982  ;;  %9330 = vst [vmem:[#allocation100_spill] sm:$0xff] %v7160_v30  ;;  %9332 = vst [vmem:[#allocation43_spill] sm:$0xff] %v7165_v54  ;;  %v3769_v17 = vunpack.i.l.bf16 %v9334_v53  ;;  %v3780_v3 = vunpack.i.h.bf16 %v9336_v34  ;;  %v3779_v5 = vunpack.i.l.bf16 %v9336_v34  ;;  %v9337_v0 = vld [vmem:[#allocation71_spill] sm:$0xff]  ;;  %v9339_v30 = vld [vmem:[#allocation10_spill] sm:$0xff] }
 0x147   :  { %9329 = vst [vmem:[#allocation39_spill] sm:$0xff] %v7156_v39  ;;  %v7170_v27 = vpop.permute.xlu0 %3977  ;;  %v7193_v34 = vsel %vm1178_vm6, %v6880_v8, %v3760_v29  ;;  %v3795_v39 = vunpack.i.h.bf16 %v9339_v30  ;;  %v9343_v45 = vld [vmem:[#allocation27_spill] sm:$0xff]  ;;  %v9347_v8 = vld [vmem:[#allocation85_spill] sm:$0xff] }
 0x148   :  { %4257 = vrot.lane.b32.xlu0 %v7069_v37, %s4842_s24  ;;  %9335 = vst [vmem:[#allocation42_spill] sm:$0xff] %v7170_v27  ;;  %v3770_v37 = vunpack.i.h.bf16 %v9334_v53  ;;  %v7185_v54 = vsel %vm1178_vm6, %v9337_v0, %v3759_v2  ;;  %v7198_v27 = vsel %vm1178_vm6, %v9341_v63, %v3774_v55  ;;  %v7202_v2 = vsel %vm1178_vm6, %v9343_v45, %v3775_v42  ;;  %v9351_v42 = vld [vmem:[#allocation11_spill] sm:$0xff] }
 0x149   :  { %9338 = vst [vmem:[#allocation103_spill] sm:$0xff] %v7185_v54  ;;  %9342 = vst [vmem:[#allocation45_spill] sm:$0xff] %v7198_v27  ;;  %v7206_v0 = vsel %vm1178_vm6, %v6902_v32, %v3769_v17  ;;  %v7218_v63 = vsel %vm1178_vm6, %v6943_v25, %v3779_v5  ;;  %v7222_v29 = vsel %vm1178_vm6, %v6947_v10, %v3780_v3  ;;  %v3804_v55 = vunpack.i.l.bf16 %v9351_v42  ;;  %v7235_v25 = vld [vmem:[%s8745_s0 + $0x210] sm:$0xff]  ;;  %v7240_v10 = vld [vmem:[%s8745_s0 + $0x218] sm:$0xff] }
 0x14a   :  { %4272 = vrot.lane.b32.xlu1 %v4271_v36, %s4843_s3  ;;  %v3794_v36 = vunpack.i.l.bf16 %v9339_v30  ;;  %v7189_v53 = vpop.permute.xlu1 %3992  ;;  %9344 = vst [vmem:[#allocation104_spill] sm:$0xff] %v7202_v2  ;;  %9345 = vst [vmem:[#allocation105_spill] sm:$0xff] %v7206_v0  ;;  %v7214_v30 = vsel %vm1178_vm6, %v9347_v8, %v3770_v37  ;;  %v3805_v3 = vunpack.i.h.bf16 %v9351_v42  ;;  %v9352_v5 = vld [vmem:[#allocation97_spill] sm:$0xff]  ;;  %v9353_v8 = vld [vmem:[#allocation12_spill] sm:$0xff] }
 0x14b   :  { %9340 = vst [vmem:[#allocation6_spill] sm:$0xff] %v7189_v53  ;;  %v7209_v53 = vpop.permute.xlu0 %3987  ;;  %9348 = vst [vmem:[#allocation8_spill] sm:$0xff] %v7214_v30  ;;  %v3800_v45 = vunpack.i.h.bf16 %v9352_v5  ;;  %v9354_v2 = vld [vmem:[#allocation102_spill] sm:$0xff] }
 0x14c   :  { %4267 = vrot.lane.b32.xlu0 %v4266_v47, %s4843_s3  ;;  %v9346_v47 = vld [vmem:[#allocation92_spill] sm:$0xff]  ;;  %9349 = vst [vmem:[#allocation47_spill] sm:$0xff] %v7218_v63  ;;  %9350 = vst [vmem:[#allocation106_spill] sm:$0xff] %v7222_v29  ;;  %v1214_v17 = vsel %vm1211_vm7, %v6958_v31, %v3794_v36  ;;  %v3799_v36 = vunpack.i.l.bf16 %v9352_v5  ;;  %v3815_v29 = vunpack.i.h.bf16 %v9353_v8  ;;  %v3814_v63 = vunpack.i.l.bf16 %v9353_v8  ;;  %v9357_v31 = vld [vmem:[#allocation14_spill] sm:$0xff] }
 0x14d   :  { %v3789_v54 = vunpack.i.l.bf16 %v9346_v47  ;;  %v3790_v32 = vunpack.i.h.bf16 %v9346_v47  ;;  %v3809_v30 = vunpack.i.l.bf16 %v9354_v2  ;;  %v3810_v42 = vunpack.i.h.bf16 %v9354_v2 }
 0x14e   :  { %4282 = vrot.lane.b32.xlu1 %v4281_v50, %s4843_s3  ;;  %v7230_v37 = vpop.permute.xlu1 %4002  ;;  %v1215_v50 = vsel %vm1211_vm7, %v6962_v11, %v3795_v39  ;;  %v9355_v11 = vpack.i.bf16 %v9235_v58, %v9234_v48  ;;  %v3819_v27 = vunpack.i.l.bf16 %v9357_v31  ;;  %v7276_v58 = vsel %vm1211_vm7, %v7003_v49, %v3805_v3 }
 0x14f   :  { %v1212_v47 = vsel %vm1211_vm7, %v6968_v13, %v3789_v54  ;;  %v7254_v0 = vpop.permute.xlu0 %3997  ;;  %v1213_v39 = vsel %vm1211_vm7, %v6991_v22, %v3790_v32  ;;  %v7265_v13 = vsel %vm1211_vm7, %v6999_v12, %v3804_v55  ;;  %v9356_v54 = vld [vmem:[#allocation3_spill] sm:$0xff]  ;;  %v1216_v12 = vsel %vm1211_vm7, %v7018_v23, %v3799_v36 }
 0x150   :  { %4277 = vrot.lane.b32.xlu0 %v7087_v59, %s4843_s3  ;;  %v3825_v5 = vunpack.i.h.bf16 %v9356_v54  ;;  %v3824_v8 = vunpack.i.l.bf16 %v9356_v54  ;;  %v1217_v22 = vsel %vm1211_vm7, %v7029_v38, %v3800_v45  ;;  %v3820_v2 = vunpack.i.h.bf16 %v9357_v31  ;;  %v9362_v45 = vld [vmem:[#allocation20_spill] sm:$0xff] }
 0x151   :  { %v7285_v32 = vsel %vm1211_vm7, %v7033_v46, %v3814_v63  ;;  %v7289_v55 = vsel %vm1211_vm7, %v7045_v14, %v3815_v29  ;;  %v7293_v49 = vsel %vm1211_vm7, %v7049_v40, %v3809_v30  ;;  %v9358_v23 = vpack.i.bf16 %v9250_v51, %v9249_v24  ;;  %v9359_v46 = vld [vmem:[#allocation68_spill] sm:$0xff] }
 0x152   :  { %4292 = vrot.lane.b32.xlu1 %v9355_v11, %s4843_s3  ;;  %v7272_v48 = vpop.permute.xlu1 %4012  ;;  %v7303_v38 = vsel %vm1211_vm7, %v7065_v44, %v3810_v42  ;;  %v3875_v63 = vunpack.i.h.bf16 %v9359_v46  ;;  %v3874_v14 = vunpack.i.l.bf16 %v9359_v46  ;;  %v7309_v29 = vsel %vm1211_vm7, %v7073_v4, %v3824_v8  ;;  %v9361_v4 = vld [vmem:[#allocation51_spill] sm:$0xff] }
 0x153   :  { %v7295_v3 = vpop.permute.xlu0 %4007  ;;  %v7313_v40 = vsel %vm1211_vm7, %v7093_v28, %v3825_v5  ;;  %v7317_v24 = vsel %vm1211_vm7, %v7117_v9, %v3819_v27  ;;  %v9360_v51 = vpack.i.bf16 %v6132_v6, %v9229_v56  ;;  %v7327_v30 = vsel %vm1211_vm7, %v7121_v43, %v3820_v2  ;;  %v9363_v9 = vld [vmem:[#allocation17_spill] sm:$0xff] }
 0x154   :  { %4287 = vrot.lane.b32.xlu0 %v7103_v26, %s4843_s3  ;;  %v3834_v31 = vunpack.i.l.bf16 %v9361_v4  ;;  %v3870_v28 = vunpack.i.h.bf16 %v9362_v45  ;;  %v3869_v36 = vunpack.i.l.bf16 %v9362_v45  ;;  %v3879_v27 = vunpack.i.l.bf16 %v9363_v9  ;;  %v9365_v5 = vld [vmem:[#allocation73_spill] sm:$0xff] }
 0x155   :  { %v3955_v11 = vunpack.i.h.bf16 %v7009_v18  ;;  %v3954_v6 = vunpack.i.l.bf16 %v7009_v18  ;;  %v9364_v43 = vpack.i.bf16 %v9270_v15, %v9269_v7  ;;  %v1247_v42 = vsel %vm1244_vm8, %v1214_v17, %v3874_v14 }
 0x156   :  { %4302 = vrot.lane.b32.xlu1 %v9358_v23, %s4843_s3  ;;  %v1248_v54 = vsel %vm1244_vm8, %v1215_v50, %v3875_v63  ;;  %v3885_v8 = vunpack.i.h.bf16 %v9365_v5  ;;  %v3884_v2 = vunpack.i.l.bf16 %v9365_v5  ;;  %v3880_v23 = vunpack.i.h.bf16 %v9363_v9 }
 0x157   :  { %v7323_v44 = vpop.permute.xlu1 %4022  ;;  %v7335_v56 = vpop.permute.xlu0 %4017  ;;  %v3950_v46 = vunpack.i.h.bf16 %v7021_v41  ;;  %v3949_v18 = vunpack.i.l.bf16 %v7021_v41  ;;  %v1245_v50 = vsel %vm1244_vm8, %v1212_v47, %v3869_v36  ;;  %v1246_v63 = vsel %vm1244_vm8, %v1213_v39, %v3870_v28 }
 0x158   :  { %4297 = vrot.lane.b32.xlu0 %v9360_v51, %s4843_s3  ;;  %v9366_v51 = vpack.i.bf16 %v9324_v16, %v9323_v33  ;;  %v1249_v14 = vsel %vm1244_vm8, %v1216_v12, %v3879_v27  ;;  %v1280_v45 = vsel %vm1277_vm9, %v1247_v42, %v3954_v6  ;;  %v1281_v9 = vsel %vm1277_vm9, %v1248_v54, %v3955_v11 }
 0x159   :  { %v3959_v41 = vunpack.i.l.bf16 %v7075_v52  ;;  %v9367_v33 = vpack.i.bf16 %v9292_v60, %v9291_v21  ;;  %v1250_v12 = vsel %vm1244_vm8, %v1217_v22, %v3880_v23  ;;  %v3960_v28 = vunpack.i.h.bf16 %v7075_v52  ;;  %v9369_v60 = vld [vmem:[#allocation56_spill] sm:$0xff] }
 0x15a   :  { %4312 = vrot.lane.b32.xlu1 %v9364_v43, %s4843_s3  ;;  %v9368_v27 = vpack.i.bf16 %v9263_v19, %v9262_v35  ;;  %v1278_v6 = vsel %vm1277_vm9, %v1245_v50, %v3949_v18  ;;  %v1279_v21 = vsel %vm1277_vm9, %v1246_v63, %v3950_v46  ;;  %v3890_v42 = vunpack.i.h.bf16 %v9369_v60  ;;  %v9370_v19 = vld [vmem:[#allocation67_spill] sm:$0xff] }
 0x15b   :  { %v4033_v7 = vpop.permute.xlu1 %4032  ;;  %v3889_v22 = vunpack.i.l.bf16 %v9369_v60  ;;  %v3965_v52 = vunpack.i.h.bf16 %v7053_v20  ;;  %v3964_v23 = vunpack.i.l.bf16 %v7053_v20  ;;  %v1282_v46 = vsel %vm1277_vm9, %v1249_v14, %v3959_v41 }
 0x15c   :  { %4307 = vrot.lane.b32.xlu0 %v9366_v51, %s4843_s3  ;;  %v4035_v15 = vunpack.i.h.bf16 %v4033_v7  ;;  %v4034_v17 = vunpack.i.l.bf16 %v4033_v7  ;;  %v4028_v43 = vpop.permute.xlu0 %4027  ;;  %v3969_v7 = vunpack.i.l.bf16 %v7127_v62  ;;  %v1283_v50 = vsel %vm1277_vm9, %v1250_v12, %v3960_v28 }
 0x15d   :  { %v4030_v36 = vunpack.i.h.bf16 %v4028_v43  ;;  %v4029_v39 = vunpack.i.l.bf16 %v4028_v43  ;;  %v3970_v63 = vunpack.i.h.bf16 %v7127_v62  ;;  %v9371_v43 = vld [vmem:[#allocation50_spill] sm:$0xff]  ;;  %v1251_v14 = vsel %vm1244_vm8, %v7265_v13, %v3884_v2  ;;  %v9372_v13 = vld [vmem:[#allocation83_spill] sm:$0xff] }
 0x15e   :  { %4322 = vrot.lane.b32.xlu1 %v9367_v33, %s4843_s3  ;;  %v1313_v16 = vsel %vm1310_vm10, %v1280_v45, %v4034_v17  ;;  %v1314_v47 = vsel %vm1310_vm10, %v1281_v9, %v4035_v15  ;;  %v1252_v41 = vsel %vm1244_vm8, %v7276_v58, %v3885_v8  ;;  %v1253_v62 = vsel %vm1244_vm8, %v7293_v49, %v3889_v22  ;;  %v9375_v22 = vld [vmem:[#allocation21_spill] sm:$0xff] }
 0x15f   :  { %v4043_v11 = vpop.permute.xlu1 %4042  ;;  %v1311_v54 = vsel %vm1310_vm10, %v1278_v6, %v4029_v39  ;;  %v1312_v5 = vsel %vm1310_vm10, %v1279_v21, %v4030_v36  ;;  %v1344_v51 = vpack.c.bf16 %v1314_v47, %v1313_v16  ;;  %v1254_v47 = vsel %vm1244_vm8, %v7303_v38, %v3890_v42  ;;  %v9373_v6 = vld [vmem:[#allocation40_spill] sm:$0xff]  ;;  %v9374_v42 = vld [vmem:[#allocation13_spill] sm:$0xff] }
 0x160   :  { %4317 = vrot.lane.b32.xlu0 %v9368_v27, %s4843_s3  ;;  %v4038_v35 = vpop.permute.xlu0 %4037  ;;  %v1343_v18 = vpack.c.bf16 %v1312_v5, %v1311_v54  ;;  %v4045_v45 = vunpack.i.h.bf16 %v4043_v11  ;;  %v4044_v9 = vunpack.i.l.bf16 %v4043_v11  ;;  %v1284_v36 = vsel %vm1277_vm9, %v1251_v14, %v3964_v23 }
 0x161   :  { %v4040_v15 = vunpack.i.h.bf16 %v4038_v35  ;;  %v4039_v17 = vunpack.i.l.bf16 %v4038_v35  ;;  %v1285_v58 = vsel %vm1277_vm9, %v1252_v41, %v3965_v52  ;;  %v1286_v8 = vsel %vm1277_vm9, %v1253_v62, %v3969_v7  ;;  %v9376_v35 = vld [vmem:[#allocation25_spill] sm:$0xff]  ;;  %v9380_v41 = vld [vmem:[#allocation98_spill] sm:$0xff] }
 0x162   :  { %4332 = vrot.lane.b32.xlu1 %v9370_v19, %s4844_s4  ;;  %3382 = vmatprep.mubr.msk.bf16.mxu0 %vm1386_vm11, %v1343_v18  ;;  %v3835_v27 = vunpack.i.h.bf16 %v9361_v4  ;;  %v1287_v49 = vsel %vm1277_vm9, %v1254_v47, %v3970_v63  ;;  %v1317_v11 = vsel %vm1310_vm10, %v1284_v36, %v4044_v9  ;;  %v1318_v38 = vsel %vm1310_vm10, %v1285_v58, %v4045_v45  ;;  %v9381_v36 = vld [vmem:[#allocation22_spill] sm:$0xff] }
 0x163   :  { %v7387_v20 = vpop.permute.xlu1 %4052  ;;  %v1315_v33 = vsel %vm1310_vm10, %v1282_v46, %v4039_v17  ;;  %v1316_v16 = vsel %vm1310_vm10, %v1283_v50, %v4040_v15  ;;  %3383 = vmatmul.mubr.msk.bf16.vlgmr.msra.gmra.mrb[0].mxu0 %vm1386_vm11, %v1344_v51  ;;  %v7418_v60 = vsel %vm1211_vm7, %v7139_v1, %v3834_v31  ;;  %v3829_v54 = vunpack.i.l.bf16 %v9374_v42  ;;  %v9377_v1 = vld [vmem:[#allocation33_spill] sm:$0xff]  ;;  %v9378_v15 = vld [vmem:[#allocation42_spill] sm:$0xff] }
 0x164   :  { %4327 = vrot.lane.b32.xlu0 %v9371_v43, %s4844_s4  ;;  %v4048_v39 = vpop.permute.xlu0 %4047  ;;  %v1345_v2 = vpack.c.bf16 %v1316_v16, %v1315_v33  ;;  %v3895_v52 = vunpack.i.h.bf16 %v9375_v22  ;;  %v3894_v23 = vunpack.i.l.bf16 %v9375_v22  ;;  %v3900_v18 = vunpack.i.h.bf16 %v9376_v35  ;;  %v9386_v22 = vld [vmem:[#allocation23_spill] sm:$0xff] }
 0x165   :  { %v4050_v12 = vunpack.i.h.bf16 %v4048_v39  ;;  %v4049_v28 = vunpack.i.l.bf16 %v4048_v39  ;;  %v3899_v46 = vunpack.i.l.bf16 %v9376_v35  ;;  %v3975_v4 = vunpack.i.h.bf16 %v9377_v1  ;;  %v9382_v39 = vld [vmem:[#allocation37_spill] sm:$0xff]  ;;  %v9387_v35 = vld [vmem:[#allocation75_spill] sm:$0xff] }
 0x166   :  { %4342 = vrot.lane.b32.xlu1 %v9372_v13, %s4845_s5  ;;  %3386 = vmatprep.mubr.msk.bf16.mxu0 %vm1386_vm11, %v1345_v2  ;;  %v3974_v31 = vunpack.i.l.bf16 %v9377_v1  ;;  %v3980_v17 = vunpack.i.h.bf16 %v9378_v15  ;;  %v1346_v50 = vpack.c.bf16 %v1318_v38, %v1317_v11  ;;  %v3979_v63 = vunpack.i.l.bf16 %v9378_v15  ;;  %v9389_v1 = vld [vmem:[#allocation39_spill] sm:$0xff] }
 0x167   :  { %v7412_v21 = vpop.permute.xlu1 %4062  ;;  %v1319_v5 = vsel %vm1310_vm10, %v1286_v8, %v4049_v28  ;;  %v1320_v51 = vsel %vm1310_vm10, %v1287_v49, %v4050_v12  ;;  %v4055_v45 = vunpack.i.h.bf16 %v7387_v20  ;;  %v4054_v9 = vunpack.i.l.bf16 %v7387_v20  ;;  %v9383_v8 = vld [vmem:[#allocation64_spill] sm:$0xff] }
 0x168   :  { %4337 = vrot.lane.b32.xlu0 %v9373_v6, %s4845_s5  ;;  %v4058_v7 = vpop.permute.xlu0 %4057  ;;  %v9379_v43 = vpack.i.bf16 %v7179_v61, %v7039_v57  ;;  %v7443_v33 = vsel %vm1211_vm7, %v9380_v41, %v3835_v27  ;;  %v3830_v16 = vunpack.i.h.bf16 %v9374_v42  ;;  %v3785_v20 = vunpack.i.h.bf16 %v9381_v36  ;;  %v9385_v42 = vld [vmem:[#allocation7_spill] sm:$0xff] }
 0x169   :  { %v4060_v62 = vunpack.i.h.bf16 %v4058_v7  ;;  %v4059_v47 = vunpack.i.l.bf16 %v4058_v7  ;;  %v1228_v2 = vsel %vm1211_vm7, %v9382_v39, %v3829_v54  ;;  %v1255_v57 = vsel %vm1244_vm8, %v7285_v32, %v3894_v23  ;;  %v9388_v7 = vld [vmem:[#allocation78_spill] sm:$0xff] }
 0x16a   :  { %4352 = vrot.lane.b32.xlu1 %v7087_v59, %s4846_s6  ;;  %v1347_v59 = vpack.c.bf16 %v1320_v51, %v1319_v5  ;;  %v1256_v61 = vsel %vm1244_vm8, %v7289_v55, %v3895_v52  ;;  %v1257_v12 = vsel %vm1244_vm8, %v7317_v24, %v3899_v46  ;;  %v1258_v28 = vsel %vm1244_vm8, %v7327_v30, %v3900_v18  ;;  %v9384_v24 = vld [vmem:[#allocation99_spill] sm:$0xff] }
 0x16b   :  { %v7439_v14 = vpop.permute.xlu1 %4072  ;;  %3387 = vmatmul.mubr.msk.bf16.gmra.mrb[4].mxu0 %vm1386_vm11, %v1346_v50  ;;  %v1288_v27 = vsel %vm1277_vm9, %v1255_v57, %v3974_v31  ;;  %v1289_v32 = vsel %vm1277_vm9, %v1256_v61, %v3975_v4  ;;  %v1290_v49 = vsel %vm1277_vm9, %v1257_v12, %v3979_v63  ;;  %v1291_v55 = vsel %vm1277_vm9, %v1258_v28, %v3980_v17  ;;  %v9390_v57 = vld [vmem:[#allocation100_spill] sm:$0xff] }
 0x16c   :  { %4347 = vrot.lane.b32.xlu0 %v9379_v43, %s4846_s6  ;;  %v7454_v58 = vpop.permute.xlu0 %4067  ;;  %3390 = vmatprep.mubr.msk.bf16.mxu0 %vm1386_vm11, %v1347_v59  ;;  %v1321_v11 = vsel %vm1310_vm10, %v1288_v27, %v4054_v9  ;;  %v1322_v38 = vsel %vm1310_vm10, %v1289_v32, %v4055_v45  ;;  %v1229_v30 = vsel %vm1211_vm7, %v9384_v24, %v3830_v16  ;;  %v3844_v54 = vunpack.i.l.bf16 %v9385_v42  ;;  %v7514_v16 = vld [vmem:[%s8745_s0 + $0x240] sm:$0xff]  ;;  %v9391_v27 = vld [vmem:[#allocation15_spill] sm:$0xff] }
 0x16d   :  { %v1323_v5 = vsel %vm1310_vm10, %v1290_v49, %v4059_v47  ;;  %v1324_v51 = vsel %vm1310_vm10, %v1291_v55, %v4060_v62  ;;  %v3905_v52 = vunpack.i.h.bf16 %v9386_v22  ;;  %v3904_v23 = vunpack.i.l.bf16 %v9386_v22  ;;  %v7519_v62 = vld [vmem:[%s8745_s0 + $0x248] sm:$0xff]  ;;  %v9393_v22 = vld [vmem:[#allocation49_spill] sm:$0xff] }
 0x16e   :  { %4362 = vrot.lane.b32.xlu1 %v9383_v8, %s4847_s11  ;;  %v3910_v18 = vunpack.i.h.bf16 %v9387_v35  ;;  %v3909_v46 = vunpack.i.l.bf16 %v9387_v35  ;;  %v3985_v4 = vunpack.i.h.bf16 %v9389_v1  ;;  %v3984_v31 = vunpack.i.l.bf16 %v9389_v1  ;;  %v9394_v35 = vld [vmem:[#allocation82_spill] sm:$0xff] }
 0x16f   :  { %v7471_v6 = vpop.permute.xlu1 %4082  ;;  %v3990_v15 = vunpack.i.h.bf16 %v7209_v53  ;;  %v1348_v17 = vpack.c.bf16 %v1322_v38, %v1321_v11  ;;  %v3989_v50 = vunpack.i.l.bf16 %v7209_v53  ;;  %v4065_v63 = vunpack.i.h.bf16 %v7412_v21  ;;  %v7502_v53 = vld [vmem:[%s8745_s0 + $0x258] sm:$0xff] }
 0x170   :  { %4357 = vrot.lane.b32.xlu0 %v9370_v19, %s4847_s11  ;;  %v7482_v19 = vpop.permute.xlu0 %4077  ;;  %v4064_v45 = vunpack.i.l.bf16 %v7412_v21  ;;  %v1349_v43 = vpack.c.bf16 %v1324_v51, %v1323_v5  ;;  %v4070_v59 = vunpack.i.h.bf16 %v7454_v58  ;;  %v4069_v41 = vunpack.i.l.bf16 %v7454_v58  ;;  %v7507_v21 = vld [vmem:[%s8745_s0 + $0x260] sm:$0xff] }
 0x171   :  { %v4446_v47 = vpack.i.bf16 %v7519_v62, %v7514_v16  ;;  %v3845_v39 = vunpack.i.h.bf16 %v9385_v42  ;;  %v7526_v61 = vsel %vm1211_vm7, %v9390_v57, %v3844_v54  ;;  %v1259_v58 = vsel %vm1244_vm8, %v7309_v29, %v3904_v23  ;;  %v9397_v57 = vld [vmem:[#allocation43_spill] sm:$0xff]  ;;  %v9425_v16 = vld [vmem:[#allocation84_spill] sm:$0xff] }
 0x172   :  { %4372 = vrot.lane.b32.xlu1 %v9388_v7, %s4848_s12  ;;  %v1260_v12 = vsel %vm1244_vm8, %v7313_v40, %v3905_v52  ;;  %v1261_v32 = vsel %vm1244_vm8, %v1228_v2, %v3909_v46  ;;  %v1262_v49 = vsel %vm1244_vm8, %v1229_v30, %v3910_v18  ;;  %v1292_v55 = vsel %vm1277_vm9, %v1259_v58, %v3984_v31  ;;  %v9392_v2 = vld [vmem:[#allocation35_spill] sm:$0xff] }
 0x173   :  { %v7494_v9 = vpop.permute.xlu1 %4092  ;;  %3391 = vmatmul.mubr.msk.bf16.gmra.mrb[8].mxu0 %vm1386_vm11, %v1348_v17  ;;  %v1293_v11 = vsel %vm1277_vm9, %v1260_v12, %v3985_v4  ;;  %v1294_v29 = vsel %vm1277_vm9, %v1261_v32, %v3989_v50  ;;  %v1295_v38 = vsel %vm1277_vm9, %v1262_v49, %v3990_v15  ;;  %v1325_v40 = vsel %vm1310_vm10, %v1292_v55, %v4064_v45  ;;  %v9396_v4 = vld [vmem:[#allocation6_spill] sm:$0xff]  ;;  %v9398_v12 = vld [vmem:[#allocation103_spill] sm:$0xff]  ;;  %v9399_v55 = vld [vmem:[#allocation9_spill] sm:$0xff] }
 0x174   :  { %4367 = vrot.lane.b32.xlu0 %v9372_v13, %s4848_s12  ;;  %v4451_v13 = vpack.i.bf16 %v7507_v21, %v7502_v53  ;;  %v7532_v28 = vpop.permute.xlu0 %4087  ;;  %3394 = vmatprep.mubr.msk.bf16.mxu0 %vm1386_vm11, %v1349_v43  ;;  %v1326_v24 = vsel %vm1310_vm10, %v1293_v11, %v4065_v63  ;;  %v3840_v54 = vunpack.i.h.bf16 %v9392_v2  ;;  %v3839_v30 = vunpack.i.l.bf16 %v9392_v2 }
 0x175   :  { %v1327_v5 = vsel %vm1310_vm10, %v1294_v29, %v4069_v41  ;;  %v1328_v51 = vsel %vm1310_vm10, %v1295_v38, %v4070_v59  ;;  %v3915_v52 = vunpack.i.h.bf16 %v9393_v22  ;;  %v3914_v23 = vunpack.i.l.bf16 %v9393_v22 }
 0x176   :  { %4382 = vrot.lane.b32.xlu1 %v9391_v27, %s4844_s4  ;;  %v3920_v18 = vunpack.i.h.bf16 %v9394_v35  ;;  %v3919_v46 = vunpack.i.l.bf16 %v9394_v35  ;;  %v3995_v31 = vunpack.i.h.bf16 %v9396_v4  ;;  %v3994_v15 = vunpack.i.l.bf16 %v9396_v4 }
 0x177   :  { %v4000_v17 = vunpack.i.h.bf16 %v7254_v0  ;;  %v1350_v50 = vpack.c.bf16 %v1326_v24, %v1325_v40  ;;  %v3999_v63 = vunpack.i.l.bf16 %v7254_v0  ;;  %v4075_v45 = vunpack.i.h.bf16 %v7439_v14 }
 0x178   :  { %4377 = vrot.lane.b32.xlu0 %v9383_v8, %s4844_s4  ;;  %v7547_v42 = vpop.permute.xlu1 %4102  ;;  %v7557_v1 = vpop.permute.xlu0 %4097  ;;  %v9395_v8 = vld [vmem:[#allocation89_spill] sm:$0xff]  ;;  %v4074_v43 = vunpack.i.l.bf16 %v7439_v14  ;;  %v1351_v41 = vpack.c.bf16 %v1328_v51, %v1327_v5  ;;  %v1235_v58 = vsel %vm1211_vm7, %v9397_v57, %v3845_v39  ;;  %v1232_v32 = vsel %vm1211_vm7, %v9398_v12, %v3839_v30  ;;  %v9401_v30 = vld [vmem:[#allocation18_spill] sm:$0xff] }
 0x179   :  { %v4080_v49 = vunpack.i.h.bf16 %v7482_v19  ;;  %v4079_v0 = vunpack.i.l.bf16 %v7482_v19  ;;  %v1233_v14 = vsel %vm1211_vm7, %v7193_v34, %v3840_v54  ;;  %v1263_v11 = vsel %vm1244_vm8, %v7418_v60, %v3914_v23  ;;  %v9402_v23 = vld [vmem:[#allocation28_spill] sm:$0xff] }
 0x17a   :  { %4392 = vrot.lane.b32.xlu1 %v9395_v8, %s4845_s5  ;;  %v1264_v39 = vsel %vm1244_vm8, %v7443_v33, %v3915_v52  ;;  %v1265_v19 = vsel %vm1244_vm8, %v1232_v32, %v3919_v46  ;;  %v1266_v38 = vsel %vm1244_vm8, %v1233_v14, %v3920_v18  ;;  %v1296_v34 = vsel %vm1277_vm9, %v1263_v11, %v3994_v15  ;;  %v9403_v46 = vld [vmem:[#allocation31_spill] sm:$0xff]  ;;  %v9405_v32 = vld [vmem:[#allocation45_spill] sm:$0xff]  ;;  %v9407_v11 = vld [vmem:[#allocation8_spill] sm:$0xff] }
 0x17b   :  { %3395 = vmatmul.mubr.msk.bf16.gmra.mrb[12].mxu0 %vm1386_vm11, %v1350_v50  ;;  %v1297_v40 = vsel %vm1277_vm9, %v1264_v39, %v3995_v31  ;;  %v1298_v60 = vsel %vm1277_vm9, %v1265_v19, %v3999_v63  ;;  %v1299_v24 = vsel %vm1277_vm9, %v1266_v38, %v4000_v17  ;;  %v1329_v33 = vsel %vm1310_vm10, %v1296_v34, %v4074_v43  ;;  %v9408_v38 = vld [vmem:[#allocation19_spill] sm:$0xff] }
 0x17c   :  { %4387 = vrot.lane.b32.xlu0 %v9388_v7, %s4845_s5  ;;  %v7569_v59 = vpop.permute.xlu1 %4112  ;;  %v3854_v7 = vunpack.i.l.bf16 %v9399_v55  ;;  %3398 = vmatprep.mubr.msk.bf16.mxu0 %vm1386_vm11, %v1351_v41  ;;  %v1330_v2 = vsel %vm1310_vm10, %v1297_v40, %v4075_v45  ;;  %v3850_v5 = vunpack.i.h.bf16 %v9401_v30  ;;  %v3849_v51 = vunpack.i.l.bf16 %v9401_v30 }
 0x17d   :  { %v1331_v22 = vsel %vm1310_vm10, %v1298_v60, %v4079_v0  ;;  %v1332_v52 = vsel %vm1310_vm10, %v1299_v24, %v4080_v49  ;;  %v3925_v35 = vunpack.i.h.bf16 %v9402_v23  ;;  %v3924_v18 = vunpack.i.l.bf16 %v9402_v23  ;;  %v9406_v0 = vld [vmem:[#allocation105_spill] sm:$0xff] }
 0x17e   :  { %v7585_v29 = vpop.permute.xlu0 %4107  ;;  %4402 = vrot.lane.b32.xlu1 %v7103_v26, %s4846_s6  ;;  %v9400_v26 = vpack.i.bf16 %v7240_v10, %v7235_v25  ;;  %v3930_v4 = vunpack.i.h.bf16 %v9403_v46  ;;  %v3929_v31 = vunpack.i.l.bf16 %v9403_v46  ;;  %v9404_v10 = vld [vmem:[#allocation70_spill] sm:$0xff]  ;;  %v4005_v15 = vunpack.i.h.bf16 %v7230_v37 }
 0x17f   :  { %v4004_v17 = vunpack.i.l.bf16 %v7230_v37  ;;  %v4010_v50 = vunpack.i.h.bf16 %v7295_v3  ;;  %v1352_v63 = vpack.c.bf16 %v1330_v2, %v1329_v33  ;;  %v4009_v45 = vunpack.i.l.bf16 %v7295_v3  ;;  %v9409_v2 = vld [vmem:[#allocation41_spill] sm:$0xff] }
 0x180   :  { %4397 = vrot.lane.b32.xlu0 %v9400_v26, %s4846_s6  ;;  %v7602_v54 = vpop.permute.xlu1 %4122  ;;  %v4085_v43 = vunpack.i.h.bf16 %v7471_v6  ;;  %v4084_v41 = vunpack.i.l.bf16 %v7471_v6  ;;  %v1353_v12 = vpack.c.bf16 %v1332_v52, %v1331_v22  ;;  %v1238_v49 = vsel %vm1211_vm7, %v9405_v32, %v3854_v7  ;;  %v9410_v22 = vld [vmem:[#allocation62_spill] sm:$0xff]  ;;  %v9413_v32 = vld [vmem:[#allocation104_spill] sm:$0xff] }
 0x181   :  { %v1236_v37 = vsel %vm1211_vm7, %v9406_v0, %v3849_v51  ;;  %v4090_v14 = vunpack.i.h.bf16 %v7532_v28  ;;  %v4089_v3 = vunpack.i.l.bf16 %v7532_v28  ;;  %v3855_v6 = vunpack.i.h.bf16 %v9399_v55 }
 0x182   :  { %v7612_v25 = vpop.permute.xlu0 %4117  ;;  %4412 = vrot.lane.b32.xlu1 %v9404_v10, %s4847_s11  ;;  %v1267_v39 = vsel %vm1244_vm8, %v7526_v61, %v3924_v18  ;;  %v1268_v19 = vsel %vm1244_vm8, %v1235_v58, %v3925_v35  ;;  %v1269_v28 = vsel %vm1244_vm8, %v1236_v37, %v3929_v31  ;;  %v3860_v26 = vunpack.i.h.bf16 %v9409_v2  ;;  %v9411_v35 = vld [vmem:[#allocation90_spill] sm:$0xff]  ;;  %v9414_v37 = vld [vmem:[#allocation47_spill] sm:$0xff] }
 0x183   :  { %3399 = vmatmul.mubr.msk.bf16.gmra.mrb[16].mxu0 %vm1386_vm11, %v1352_v63  ;;  %v1300_v55 = vsel %vm1277_vm9, %v1267_v39, %v4004_v17  ;;  %v1301_v40 = vsel %vm1277_vm9, %v1268_v19, %v4005_v15  ;;  %v1302_v60 = vsel %vm1277_vm9, %v1269_v28, %v4009_v45  ;;  %v3859_v30 = vunpack.i.l.bf16 %v9409_v2 }
 0x184   :  { %4407 = vrot.lane.b32.xlu0 %v9391_v27, %s4847_s11  ;;  %v7624_v57 = vpop.permute.xlu1 %4132  ;;  %v1237_v27 = vsel %vm1211_vm7, %v9407_v11, %v3850_v5  ;;  %3402 = vmatprep.mubr.msk.bf16.mxu0 %vm1386_vm11, %v1353_v12  ;;  %v1333_v58 = vsel %vm1310_vm10, %v1300_v55, %v4084_v41  ;;  %v1334_v24 = vsel %vm1310_vm10, %v1301_v40, %v4085_v43  ;;  %v3935_v52 = vunpack.i.h.bf16 %v9410_v22 }
 0x185   :  { %v1270_v34 = vsel %vm1244_vm8, %v1237_v27, %v3930_v4  ;;  %v1335_v5 = vsel %vm1310_vm10, %v1302_v60, %v4089_v3  ;;  %v3934_v23 = vunpack.i.l.bf16 %v9410_v22  ;;  %v3940_v18 = vunpack.i.h.bf16 %v9411_v35  ;;  %v9415_v3 = vld [vmem:[#allocation106_spill] sm:$0xff] }
 0x186   :  { %v7639_v7 = vpop.permute.xlu0 %4127  ;;  %4422 = vrot.lane.b32.xlu1 %v9408_v38, %s4848_s12  ;;  %v1303_v61 = vsel %vm1277_vm9, %v1270_v34, %v4010_v50  ;;  %v3939_v46 = vunpack.i.l.bf16 %v9411_v35  ;;  %v4015_v31 = vunpack.i.h.bf16 %v7272_v48  ;;  %v4014_v15 = vunpack.i.l.bf16 %v7272_v48  ;;  %v9420_v22 = vld [vmem:[#allocation2_spill] sm:$0xff] }
 0x187   :  { %v1336_v51 = vsel %vm1310_vm10, %v1303_v61, %v4090_v14  ;;  %v4020_v17 = vunpack.i.h.bf16 %v7335_v56  ;;  %v1354_v50 = vpack.c.bf16 %v1334_v24, %v1333_v58  ;;  %v4019_v63 = vunpack.i.l.bf16 %v7335_v56  ;;  %v9418_v58 = vld [vmem:[#allocation38_spill] sm:$0xff] }
 0x188   :  { %4417 = vrot.lane.b32.xlu0 %v9395_v8, %s4848_s12  ;;  %v7654_v33 = vpop.permute.xlu1 %4142  ;;  %v9412_v8 = vld [vmem:[#allocation93_spill] sm:$0xff]  ;;  %v4095_v45 = vunpack.i.h.bf16 %v7494_v9  ;;  %v4094_v43 = vunpack.i.l.bf16 %v7494_v9  ;;  %v1355_v12 = vpack.c.bf16 %v1336_v51, %v1335_v5  ;;  %v1239_v0 = vsel %vm1211_vm7, %v9413_v32, %v3855_v6  ;;  %v9419_v5 = vld [vmem:[#allocation87_spill] sm:$0xff]  ;;  %v9428_v32 = vld [vmem:[#allocation24_spill] sm:$0xff] }
 0x189   :  { %v1240_v48 = vsel %vm1211_vm7, %v9414_v37, %v3859_v30  ;;  %v4100_v14 = vunpack.i.h.bf16 %v7557_v1  ;;  %v4099_v56 = vunpack.i.l.bf16 %v7557_v1  ;;  %v3784_v9 = vunpack.i.l.bf16 %v9381_v36  ;;  %v9416_v6 = vld [vmem:[#allocation65_spill] sm:$0xff] }
 0x18a   :  { %v7664_v4 = vpop.permute.xlu0 %4137  ;;  %4432 = vrot.lane.b32.xlu1 %v9412_v8, %s4844_s4  ;;  %v1271_v11 = vsel %vm1244_vm8, %v1238_v49, %v3934_v23  ;;  %v1272_v27 = vsel %vm1244_vm8, %v1239_v0, %v3935_v52  ;;  %v1273_v1 = vsel %vm1244_vm8, %v1240_v48, %v3939_v46  ;;  %v3865_v24 = vunpack.i.h.bf16 %v9418_v58 }
 0x18b   :  { %3403 = vmatmul.mubr.msk.bf16.gmra.mrb[20].mxu0 %vm1386_vm11, %v1354_v50  ;;  %v1304_v28 = vsel %vm1277_vm9, %v1271_v11, %v4014_v15  ;;  %v1305_v34 = vsel %vm1277_vm9, %v1272_v27, %v4015_v31  ;;  %v1306_v55 = vsel %vm1277_vm9, %v1273_v1, %v4019_v63  ;;  %v3864_v2 = vunpack.i.l.bf16 %v9418_v58  ;;  %v7798_v1 = vld [vmem:[%s8745_s0 + $0x278] sm:$0xff] }
 0x18c   :  { %4427 = vrot.lane.b32.xlu0 %v9404_v10, %s4844_s4  ;;  %v7676_v41 = vpop.permute.xlu1 %4152  ;;  %v1241_v10 = vsel %vm1211_vm7, %v9415_v3, %v3860_v26  ;;  %3406 = vmatprep.mubr.msk.bf16.mxu0 %vm1386_vm11, %v1355_v12  ;;  %v1337_v40 = vsel %vm1310_vm10, %v1304_v28, %v4094_v43  ;;  %v1338_v60 = vsel %vm1310_vm10, %v1305_v34, %v4095_v45  ;;  %v3945_v52 = vunpack.i.h.bf16 %v9420_v22  ;;  %v7777_v3 = vld [vmem:[%s8745_s0 + $0x288] sm:$0xff]  ;;  %v9435_v58 = vld [vmem:[#allocation77_spill] sm:$0xff] }
 0x18d   :  { %v1274_v19 = vsel %vm1244_vm8, %v1241_v10, %v3940_v18  ;;  %v1339_v26 = vsel %vm1310_vm10, %v1306_v55, %v4099_v56  ;;  %v1209_v51 = vsel %vm1178_vm6, %v9419_v5, %v3784_v9  ;;  %v3944_v23 = vunpack.i.l.bf16 %v9420_v22  ;;  %v9430_v9 = vld [vmem:[#allocation29_spill] sm:$0xff]  ;;  %9431 = vst [vmem:[#allocation63_spill] sm:$0xff] %v7777_v3  ;;  %v7782_v10 = vld [vmem:[%s8745_s0 + $0x290] sm:$0xff]  ;;  %9433 = vst [vmem:[#allocation60_spill] sm:$0xff] %v7798_v1 }
 0x18e   :  { %v7690_v39 = vpop.permute.xlu0 %4147  ;;  %4442 = vrot.lane.b32.xlu1 %v9416_v6, %s4845_s5  ;;  %v1307_v49 = vsel %vm1277_vm9, %v1274_v19, %v4020_v17  ;;  %v4025_v46 = vunpack.i.h.bf16 %v7323_v44  ;;  %v4024_v31 = vunpack.i.l.bf16 %v7323_v44  ;;  %v1356_v15 = vpack.c.bf16 %v1338_v60, %v1337_v40  ;;  %v4801_v22 = vld [vmem:[%s8745_s0 + $0x2b8] sm:$0xff] }
 0x18f   :  { %v1340_v30 = vsel %vm1310_vm10, %v1307_v49, %v4100_v14  ;;  %v4105_v17 = vunpack.i.h.bf16 %v7547_v42  ;;  %v4104_v50 = vunpack.i.l.bf16 %v7547_v42  ;;  %v1242_v21 = vsel %vm1211_vm7, %v1209_v51, %v3864_v2  ;;  %v9429_v14 = vld [vmem:[#allocation101_spill] sm:$0xff]  ;;  %v9434_v49 = vld [vmem:[#allocation94_spill] sm:$0xff]  ;;  %v9441_v51 = vld [vmem:[#allocation32_spill] sm:$0xff] }
 0x190   :  { %4437 = vrot.lane.b32.xlu0 %v9408_v38, %s4845_s5  ;;  %v7705_v61 = vpop.permute.xlu1 %4162  ;;  %v9422_v38 = vld [vmem:[#allocation88_spill] sm:$0xff]  ;;  %v1357_v36 = vpack.c.bf16 %v1340_v30, %v1339_v26  ;;  %v1275_v44 = vsel %vm1244_vm8, %v1242_v21, %v3944_v23  ;;  %v4501_v11 = vpack.i.bf16 %v7782_v10, %v7777_v3 }
 0x191   :  { %9417 = vst [vmem:[#allocation107_spill] sm:$0xff] %v7705_v61  ;;  %v1210_v18 = vsel %vm1178_vm6, %v9422_v38, %v3785_v20  ;;  %v1308_v62 = vsel %vm1277_vm9, %v1275_v44, %v4024_v31  ;;  %v9438_v26 = vld [vmem:[#allocation52_spill] sm:$0xff]  ;;  %v9445_v44 = vld [vmem:[#allocation30_spill] sm:$0xff] }
 0x192   :  { %v7715_v35 = vpop.permute.xlu0 %4157  ;;  %4452 = vrot.lane.b32.xlu1 %v4451_v13, %s4846_s6  ;;  %v1243_v20 = vsel %vm1211_vm7, %v1210_v18, %v3865_v24  ;;  %v1341_v42 = vsel %vm1310_vm10, %v1308_v62, %v4104_v50  ;;  %v4803_v18 = vld [vmem:[%s8745_s0 + $0x2a0] sm:$0xff] }
 0x193   :  { %9421 = vst [vmem:[#allocation5_spill] sm:$0xff] %v7715_v35  ;;  %3407 = vmatmul.mubr.msk.bf16.gmra.mrb[24].mxu0 %vm1386_vm11, %v1356_v15  ;;  %v1276_v13 = vsel %vm1244_vm8, %v1243_v20, %v3945_v52  ;;  %v4802_v52 = vld [vmem:[%s8745_s0 + $0x2c0] sm:$0xff] }
 0x194   :  { %4447 = vrot.lane.b32.xlu0 %v4446_v47, %s4846_s6  ;;  %v7733_v53 = vpop.permute.xlu1 %4172  ;;  %3410 = vmatprep.mubr.msk.bf16.mxu0 %vm1386_vm11, %v1357_v36  ;;  %v1309_v47 = vsel %vm1277_vm9, %v1276_v13, %v4025_v46  ;;  %v4551_v23 = vpack.i.bf16 %v4802_v52, %v4801_v22  ;;  %v4804_v46 = vld [vmem:[%s8745_s0 + $0x2a8] sm:$0xff]  ;;  %v9444_v36 = vld [vmem:[#allocation44_spill] sm:$0xff]  ;;  %v9446_v62 = vld [vmem:[#allocation34_spill] sm:$0xff] }
 0x195   :  { %9423 = vst [vmem:[#allocation53_spill] sm:$0xff] %v7733_v53  ;;  %v1342_v45 = vsel %vm1310_vm10, %v1309_v47, %v4105_v17  ;;  %v4546_v31 = vpack.i.bf16 %v4804_v46, %v4803_v18  ;;  %v9451_v22 = vld [vmem:[#allocation57_spill] sm:$0xff]  ;;  %v3276_v52 = vld [vmem:[%s8745_s0 + $0x330] sm:$0xff]  ;;  %v7923_v18 = vld [vmem:[%s8745_s0 + $0x340] sm:$0x3] }
 0x196   :  { %v7740_v63 = vpop.permute.xlu0 %4167  ;;  %4462 = vrot.lane.b32.xlu1 %v9425_v16, %s4847_s11  ;;  %v1358_v0 = vpack.c.bf16 %v1342_v45, %v1341_v42  ;;  %v9447_v45 = vld [vmem:[#allocation95_spill] sm:$0xff]  ;;  %v4809_v46 = vld [vmem:[%s8745_s0 + $0x300] sm:$0xff] }
 0x197   :  { %9424 = vst [vmem:[#allocation58_spill] sm:$0xff] %v7740_v63 }
 0x198   :  { %4457 = vrot.lane.b32.xlu0 %v9412_v8, %s4847_s11  ;;  %v7751_v43 = vpop.permute.xlu1 %4182 }
 0x199   :  { %9426 = vst [vmem:[#allocation61_spill] sm:$0xff] %v7751_v43 }
 0x19a   :  { %v7753_v12 = vpop.permute.xlu0 %4177  ;;  %4472 = vrot.lane.b32.xlu1 %v9428_v32, %s4848_s12 }
 0x19b   :  { %9427 = vst [vmem:[#allocation48_spill] sm:$0xff] %v7753_v12  ;;  %3411 = vmatmul.mubr.msk.bf16.gmra.mrb[28].mxu0 %vm1386_vm11, %v1358_v0  ;;  %v4806_v0 = vld [vmem:[%s8745_s0 + $0x2f0] sm:$0xff]  ;;  %v2287_v12 = vrot.slane %v3276_v52, 2 }
 0x19c   :  { %4467 = vrot.lane.b32.xlu0 %v9416_v6, %s4848_s12  ;;  %v7759_v37 = vpop.permute.xlu1 %4192  ;;  %v7793_v6 = vld [vmem:[%s8745_s0 + $0x270] sm:$0xff] }
 0x19d   :  { %9432 = vst [vmem:[#allocation59_spill] sm:$0xff] %v7793_v6  ;;  %v4496_v19 = vpack.i.bf16 %v7798_v1, %v7793_v6  ;;  %v4195_v63 = vunpack.i.h.bf16 %v7759_v37  ;;  %v4194_v53 = vunpack.i.l.bf16 %v7759_v37  ;;  %v4813_v37 = vld [vmem:[%s8745_s0 + $0x1d0] sm:$0xff] }
 0x19e   :  { %v7762_v48 = vpop.permute.xlu0 %4187  ;;  %4482 = vrot.lane.b32.xlu1 %v9429_v14, %s4844_s4 }
 0x1a0   :  { %4477 = vrot.lane.b32.xlu0 %v9425_v16, %s4844_s4  ;;  %v7768_v8 = vpop.permute.xlu1 %4202 }
 0x1a2   :  { %v7770_v56 = vpop.permute.xlu0 %4197  ;;  %4492 = vrot.lane.b32.xlu1 %v9430_v9, %s4845_s5 }
 0x1a4   :  { %4487 = vrot.lane.b32.xlu0 %v9428_v32, %s4845_s5  ;;  %v7788_v27 = vpop.permute.xlu1 %4212  ;;  %v4805_v32 = vld [vmem:[%s8745_s0 + $0x2e8] sm:$0xff] }
 0x1a6   :  { %v7802_v28 = vpop.permute.xlu0 %4207  ;;  %4502 = vrot.lane.b32.xlu1 %v4501_v11, %s4846_s6  ;;  %v4807_v11 = vld [vmem:[%s8745_s0 + $0x2d0] sm:$0xff] }
 0x1a8   :  { %4497 = vrot.lane.b32.xlu0 %v4496_v19, %s4846_s6  ;;  %v7806_v34 = vpop.permute.xlu1 %4222  ;;  %v4808_v19 = vld [vmem:[%s8745_s0 + $0x2d8] sm:$0xff] }
 0x1aa   :  { %v7808_v55 = vpop.permute.xlu0 %4217  ;;  %4512 = vrot.lane.b32.xlu1 %v9434_v49, %s4847_s11 }
 0x1ac   :  { %4507 = vrot.lane.b32.xlu0 %v9429_v14, %s4847_s11  ;;  %v7814_v40 = vpop.permute.xlu1 %4232  ;;  %v4601_v14 = vpack.i.bf16 %v4806_v0, %v4805_v32  ;;  %v4811_v32 = vld [vmem:[%s8745_s0 + $0x318] sm:$0xff]  ;;  %v4812_v0 = vld [vmem:[%s8745_s0 + $0x320] sm:$0xff] }
 0x1ae   :  { %v7816_v60 = vpop.permute.xlu0 %4227  ;;  %4522 = vrot.lane.b32.xlu1 %v9435_v58, %s4848_s12 }
 0x1b0   :  { %4517 = vrot.lane.b32.xlu0 %v9430_v9, %s4848_s12  ;;  %v7822_v24 = vpop.permute.xlu1 %4242 }
 0x1b1   :  { %9436 = vst [vmem:[#allocation66_spill] sm:$0xff] %v7822_v24  ;;  %v4815_v24 = vld [vmem:[%s8745_s0 + $0x1b8] sm:$0xff] }
 0x1b2   :  { %v7824_v2 = vpop.permute.xlu0 %4237  ;;  %4532 = vrot.lane.b32.xlu1 %v9438_v26, %s4844_s4 }
 0x1b3   :  { %9437 = vst [vmem:[#allocation69_spill] sm:$0xff] %v7824_v2 }
 0x1b4   :  { %4527 = vrot.lane.b32.xlu0 %v9434_v49, %s4844_s4  ;;  %v7830_v30 = vpop.permute.xlu1 %4252  ;;  %v4596_v49 = vpack.i.bf16 %v4808_v19, %v4807_v11  ;;  %v7943_v11 = vpack.i.bf16 %v4812_v0, %v4811_v32  ;;  %v2186_v19 = vrot.slane %v3276_v52, 1  ;;  %v4110_v32 = vunpack.i.h.bf16 %v7585_v29 }
 0x1b5   :  { %9439 = vst [vmem:[#allocation54_spill] sm:$0xff] %v7830_v30  ;;  %v4109_v0 = vunpack.i.l.bf16 %v7585_v29  ;;  %v4189_v29 = vunpack.i.l.bf16 %v7762_v48 }
 0x1b6   :  { %v7832_v5 = vpop.permute.xlu0 %4247  ;;  %4542 = vrot.lane.b32.xlu1 %v9441_v51, %s4845_s5  ;;  %v2690_v35 = vsel %vm1079_vm2, %v4815_v24, %v4110_v32 }
 0x1b7   :  { %9440 = vst [vmem:[#allocation55_spill] sm:$0xff] %v7832_v5 }
 0x1b8   :  { %4537 = vrot.lane.b32.xlu0 %v9435_v58, %s4845_s5  ;;  %v7844_v38 = vpop.permute.xlu1 %4262 }
 0x1b9   :  { %9442 = vst [vmem:[#allocation72_spill] sm:$0xff] %v7844_v38  ;;  %v4114_v38 = vunpack.i.l.bf16 %v7569_v59 }
 0x1ba   :  { %v7852_v15 = vpop.permute.xlu0 %4257  ;;  %4552 = vrot.lane.b32.xlu1 %v4551_v23, %s4846_s6  ;;  %v7918_v23 = vld [vmem:[%s8745_s0 + $0x338] sm:$0xff] }
 0x1bb   :  { %9443 = vst [vmem:[#allocation79_spill] sm:$0xff] %v7852_v15  ;;  %v4115_v15 = vunpack.i.h.bf16 %v7569_v59  ;;  %v7959_v30 = vpack.i.bf16 %v7918_v23, %v3276_v52 }
 0x1bc   :  { %4547 = vrot.lane.b32.xlu0 %v4546_v31, %s4846_s6  ;;  %v7856_v17 = vpop.permute.xlu1 %4272  ;;  %v4810_v31 = vld [vmem:[%s8745_s0 + $0x308] sm:$0xff] }
 0x1be   :  { %v7858_v50 = vpop.permute.xlu0 %4267  ;;  %4562 = vrot.lane.b32.xlu1 %v9444_v36, %s4847_s11 }
 0x1c0   :  { %4557 = vrot.lane.b32.xlu0 %v9438_v26, %s4847_s11  ;;  %v7864_v21 = vpop.permute.xlu1 %4282 }
 0x1c2   :  { %v7866_v20 = vpop.permute.xlu0 %4277  ;;  %4572 = vrot.lane.b32.xlu1 %v9445_v44, %s4848_s12 }
 0x1c4   :  { %4567 = vrot.lane.b32.xlu0 %v9441_v51, %s4848_s12  ;;  %v7872_v13 = vpop.permute.xlu1 %4292 }
 0x1c6   :  { %v7874_v16 = vpop.permute.xlu0 %4287  ;;  %4582 = vrot.lane.b32.xlu1 %v9446_v62, %s4844_s4 }
 0x1c8   :  { %4577 = vrot.lane.b32.xlu0 %v9444_v36, %s4844_s4  ;;  %v7880_v47 = vpop.permute.xlu1 %4302  ;;  %v7931_v36 = vpack.i.bf16 %v4810_v31, %v4809_v46  ;;  %v2189_v46 = vrot.slane %v7923_v18, 1 }
 0x1ca   :  { %v7882_v42 = vpop.permute.xlu0 %4297  ;;  %4592 = vrot.lane.b32.xlu1 %v9447_v45, %s4845_s5 }
 0x1cc   :  { %4587 = vrot.lane.b32.xlu0 %v9445_v44, %s4845_s5  ;;  %v7894_v9 = vpop.permute.xlu1 %4312 }
 0x1ce   :  { %v7902_v58 = vpop.permute.xlu0 %4307  ;;  %4602 = vrot.lane.b32.xlu1 %v4601_v14, %s4846_s6 }
 0x1cf   :  { %9448 = vst [vmem:[#allocation80_spill] sm:$0xff] %v7902_v58 }
 0x1d0   :  { %4597 = vrot.lane.b32.xlu0 %v4596_v49, %s4846_s6  ;;  %v7906_v26 = vpop.permute.xlu1 %4322  ;;  %v2187_v49 = vrot.slane %v7918_v23, 1 }
 0x1d1   :  { %9449 = vst [vmem:[#allocation74_spill] sm:$0xff] %v7906_v26  ;;  %v4274_v26 = vunpack.i.l.bf16 %v7856_v17 }
 0x1d2   :  { %v7908_v51 = vpop.permute.xlu0 %4317  ;;  %4612 = vrot.lane.b32.xlu1 %v9451_v22, %s4847_s11  ;;  %v7964_v59 = vsel %vm123_vm0, %v2186_v19, %v2187_v49  ;;  %v7967_v43 = vsel %vm123_vm0, %v2187_v49, %v2189_v46  ;;  %v2692_v19 = vsel %vm1079_vm2, %v4813_v37, %v4115_v15  ;;  %v4814_v49 = vld [vmem:[%s8745_s0 + $0x1c8] sm:$0xff]  ;;  %v9453_v46 = vrot.slane %v7918_v23, 2  ;;  %v4816_v15 = vld [vmem:[%s8745_s0 + $0x1b0] sm:$0xff] }
 0x1d3   :  { %9450 = vst [vmem:[#allocation26_spill] sm:$0xff] %v7908_v51  ;;  %v4190_v51 = vunpack.i.h.bf16 %v7762_v48  ;;  %v2691_v48 = vsel %vm1079_vm2, %v4814_v49, %v4114_v38  ;;  %v2689_v37 = vsel %vm1079_vm2, %v4816_v15, %v4109_v0  ;;  %v4270_v38 = vunpack.i.h.bf16 %v7858_v50 }
 0x1d4   :  { %4607 = vrot.lane.b32.xlu0 %v9446_v62, %s4847_s11  ;;  %v7935_v44 = vpop.permute.xlu1 %4332  ;;  %v9452_v62 = vld [vmem:[#allocation91_spill] sm:$0xff]  ;;  %v4269_v49 = vunpack.i.l.bf16 %v7858_v50  ;;  %v2724_v2 = vsel %vm1112_vm3, %v2692_v19, %v4195_v63  ;;  %v2721_v32 = vsel %vm1112_vm3, %v2689_v37, %v4189_v29 }
 0x1d5   :  { %v4335_v61 = vunpack.i.h.bf16 %v7935_v44  ;;  %v4334_v24 = vunpack.i.l.bf16 %v7935_v44  ;;  %v2722_v58 = vsel %vm1112_vm3, %v2690_v35, %v4190_v51 }
 0x1d6   :  { %v7947_v31 = vpop.permute.xlu0 %4327  ;;  %4622 = vrot.lane.b32.xlu1 %v9452_v62, %s4848_s12  ;;  %v2753_v44 = vsel %vm1145_vm5, %v2721_v32, %v4269_v49  ;;  %v2754_v29 = vsel %vm1145_vm5, %v2722_v58, %v4270_v38  ;;  %v9455_v49 = vld [vmem:[#allocation4_spill] sm:$0xff] }
 0x1d7   :  { %v4329_v63 = vunpack.i.l.bf16 %v7947_v31 }
 0x1d8   :  { %4617 = vrot.lane.b32.xlu0 %v9447_v45, %s4848_s12  ;;  %v4343_v5 = vpop.permute.xlu1 %4342  ;;  %v4275_v45 = vunpack.i.h.bf16 %v7856_v17  ;;  %v7986_v17 = vsel %vm300_vm1, %v2287_v12, %v9453_v46  ;;  %v2723_v46 = vsel %vm1112_vm3, %v2691_v48, %v4194_v53  ;;  %v4330_v53 = vunpack.i.h.bf16 %v7947_v31 }
 0x1d9   :  { %v2755_v0 = vsel %vm1145_vm5, %v2723_v46, %v4274_v26  ;;  %v4345_v19 = vunpack.i.h.bf16 %v4343_v5  ;;  %v4344_v48 = vunpack.i.l.bf16 %v4343_v5  ;;  %v2785_v58 = vsel %vm1178_vm6, %v2753_v44, %v4329_v63 }
 0x1da   :  { %v4338_v52 = vpop.permute.xlu0 %4337  ;;  %4632 = vrot.lane.b32.xlu1 %v7931_v36, %s4843_s3  ;;  %v2756_v15 = vsel %vm1145_vm5, %v2724_v2, %v4275_v45  ;;  %v2787_v26 = vsel %vm1178_vm6, %v2755_v0, %v4334_v24 }
 0x1db   :  { %v4340_v37 = vunpack.i.h.bf16 %v4338_v52  ;;  %v4339_v35 = vunpack.i.l.bf16 %v4338_v52  ;;  %v2788_v51 = vsel %vm1178_vm6, %v2756_v15, %v4335_v61  ;;  %v2786_v52 = vsel %vm1178_vm6, %v2754_v29, %v4330_v53 }
 0x1dc   :  { %4627 = vrot.lane.b32.xlu0 %v4601_v14, %s4843_s3  ;;  %v4353_v12 = vpop.permute.xlu1 %4352  ;;  %v9454_v14 = vld [vmem:[#allocation16_spill] sm:$0xff]  ;;  %v2820_v38 = vsel %vm1211_vm7, %v2788_v51, %v4345_v19 }
 0x1dd   :  { %v4355_v45 = vunpack.i.h.bf16 %v4353_v12  ;;  %v4354_v46 = vunpack.i.l.bf16 %v4353_v12  ;;  %v2817_v61 = vsel %vm1211_vm7, %v2785_v58, %v4339_v35  ;;  %v2818_v12 = vsel %vm1211_vm7, %v2786_v52, %v4340_v37  ;;  %v8033_v19 = vld [vmem:[%s8745_s0 + $0x350] sm:$0xff]  ;;  %v8044_v37 = vld [vmem:[%s8745_s0 + $0x348] sm:$0xff]  ;;  %v8063_v52 = vld [vmem:[%s8745_s0 + $0x358] sm:$0x3] }
 0x1de   :  { %v4348_v50 = vpop.permute.xlu0 %4347  ;;  %4642 = vrot.lane.b32.xlu1 %v9454_v14, %s4844_s4  ;;  %v2488_v58 = vrot.slane %v8033_v19, 1 }
 0x1df   :  { %v4350_v6 = vunpack.i.h.bf16 %v4348_v50  ;;  %v4349_v31 = vunpack.i.l.bf16 %v4348_v50  ;;  %v2852_v50 = vsel %vm1244_vm8, %v2820_v38, %v4355_v45 }
 0x1e0   :  { %4637 = vrot.lane.b32.xlu0 %v9451_v22, %s4844_s4  ;;  %v4363_v2 = vpop.permute.xlu1 %4362  ;;  %v2819_v22 = vsel %vm1211_vm7, %v2787_v26, %v4344_v48 }
 0x1e1   :  { %v4365_v1 = vunpack.i.h.bf16 %v4363_v2  ;;  %v4364_v5 = vunpack.i.l.bf16 %v4363_v2  ;;  %v2851_v15 = vsel %vm1244_vm8, %v2819_v22, %v4354_v46  ;;  %v2849_v48 = vsel %vm1244_vm8, %v2817_v61, %v4349_v31 }
 0x1e2   :  { %v4358_v3 = vpop.permute.xlu0 %4357  ;;  %4652 = vrot.lane.b32.xlu1 %v9455_v49, %s4845_s5  ;;  %v2850_v44 = vsel %vm1244_vm8, %v2818_v12, %v4350_v6  ;;  %v9456_v46 = vrot.slane %v7923_v18, 2  ;;  %v9457_v31 = vrot.slane %v7918_v23, 2  ;;  %v2487_v61 = vrot.slane %v8044_v37, 1  ;;  %v9458_v23 = vld [vmem:[#allocation36_spill] sm:$0xff] }
 0x1e3   :  { %v4360_v24 = vunpack.i.h.bf16 %v4358_v3  ;;  %v4359_v32 = vunpack.i.l.bf16 %v4358_v3  ;;  %v2883_v3 = vsel %vm1277_vm9, %v2851_v15, %v4364_v5 }
 0x1e4   :  { %4647 = vrot.lane.b32.xlu0 %v9452_v62, %s4845_s5  ;;  %v4373_v0 = vpop.permute.xlu1 %4372  ;;  %v2884_v62 = vsel %vm1277_vm9, %v2852_v50, %v4365_v1  ;;  %v2291_v5 = vsel %vm300_vm1, %v9457_v31, %v9456_v46  ;;  %v2490_v50 = vrot.slane %v8063_v52, 1  ;;  %v4820_v31 = vld [vmem:[%s8745_s0 + $0x1e0] sm:$0xff] }
 0x1e5   :  { %v4375_v63 = vunpack.i.h.bf16 %v4373_v0  ;;  %v4374_v53 = vunpack.i.l.bf16 %v4373_v0  ;;  %v2881_v1 = vsel %vm1277_vm9, %v2849_v48, %v4359_v32  ;;  %v2882_v45 = vsel %vm1277_vm9, %v2850_v44, %v4360_v24 }
 0x1e6   :  { %v4368_v29 = vpop.permute.xlu0 %4367  ;;  %4662 = vrot.lane.b32.xlu1 %v7943_v11, %s4846_s6  ;;  %v8074_v24 = vpack.i.bf16 %v7967_v43, %v7964_v59  ;;  %v4125_v32 = vunpack.i.h.bf16 %v7602_v54  ;;  %v4124_v0 = vunpack.i.l.bf16 %v7602_v54  ;;  %v8079_v15 = vpack.i.bf16 %v2291_v5, %v7986_v17 }
 0x1e7   :  { %v2915_v35 = vsel %vm1310_vm10, %v2883_v3, %v4374_v53  ;;  %v2916_v2 = vsel %vm1310_vm10, %v2884_v62, %v4375_v63  ;;  %v4370_v26 = vunpack.i.h.bf16 %v4368_v29  ;;  %v4369_v51 = vunpack.i.l.bf16 %v4368_v29 }
 0x1e8   :  { %4657 = vrot.lane.b32.xlu0 %v7931_v36, %s4846_s6  ;;  %v8050_v6 = vpop.permute.xlu1 %4382  ;;  %v2946_v36 = vpack.c.bf16 %v2916_v2, %v2915_v35  ;;  %v4120_v63 = vunpack.i.h.bf16 %v7612_v25  ;;  %v4119_v53 = vunpack.i.l.bf16 %v7612_v25  ;;  %v2589_v59 = vrot.slane %v8033_v19, 2  ;;  %v9459_v2 = vld [vmem:[#allocation96_spill] sm:$0xff] }
 0x1e9   :  { %v2913_v22 = vsel %vm1310_vm10, %v2881_v1, %v4369_v51  ;;  %v2914_v38 = vsel %vm1310_vm10, %v2882_v45, %v4370_v26  ;;  %v4721_v54 = vpack.i.bf16 %v8033_v19, %v8044_v37  ;;  %v4205_v17 = vunpack.i.h.bf16 %v7768_v8  ;;  %v4818_v51 = vld [vmem:[%s8745_s0 + $0x1f8] sm:$0xff]  ;;  %v4819_v45 = vld [vmem:[%s8745_s0 + $0x1e8] sm:$0xff] }
 0x1ea   :  { %v8068_v12 = vpop.permute.xlu0 %4377  ;;  %4672 = vrot.lane.b32.xlu1 %v9458_v23, %s4847_s11  ;;  %v2945_v18 = vpack.c.bf16 %v2914_v38, %v2913_v22  ;;  %v4204_v48 = vunpack.i.l.bf16 %v7768_v8  ;;  %v2588_v25 = vrot.slane %v8044_v37, 2  ;;  %v8097_v44 = vsel %vm123_vm0, %v2487_v61, %v2488_v58  ;;  %v4817_v8 = vld [vmem:[%s8745_s0 + $0x200] sm:$0xff] }
 0x1eb   :  { %v4199_v3 = vunpack.i.l.bf16 %v7770_v56  ;;  %v4285_v62 = vunpack.i.h.bf16 %v7864_v21  ;;  %v4284_v29 = vunpack.i.l.bf16 %v7864_v21  ;;  %v2696_v26 = vsel %vm1079_vm2, %v4817_v8, %v4125_v32 }
 0x1ec   :  { %4667 = vrot.lane.b32.xlu0 %v9454_v14, %s4847_s11  ;;  %3424 = vmatprep.mubr.msk.bf16.mxu1 %vm1386_vm11, %v2945_v18  ;;  %v8087_v43 = vpop.permute.xlu1 %4392  ;;  %v4200_v14 = vunpack.i.h.bf16 %v7770_v56  ;;  %v2695_v56 = vsel %vm1079_vm2, %v4818_v51, %v4124_v0  ;;  %v8114_v1 = vsel %vm123_vm0, %v2488_v58, %v2490_v50  ;;  %v2591_v21 = vrot.slane %v8063_v52, 2 }
 0x1ed   :  { %3425 = vmatmul.mubr.msk.bf16.vlgmr.msra.gmra.mrb[0].mxu1 %vm1386_vm11, %v2946_v36  ;;  %v2694_v46 = vsel %vm1079_vm2, %v4819_v45, %v4120_v63  ;;  %v2693_v5 = vsel %vm1079_vm2, %v4820_v31, %v4119_v53  ;;  %v4280_v36 = vunpack.i.h.bf16 %v7866_v20  ;;  %v4279_v22 = vunpack.i.l.bf16 %v7866_v20 }
 0x1ee   :  { %v4388_v35 = vpop.permute.xlu0 %4387  ;;  %4682 = vrot.lane.b32.xlu1 %v9459_v2, %s4848_s12  ;;  %v2727_v38 = vsel %vm1112_vm3, %v2695_v56, %v4204_v48  ;;  %v2728_v61 = vsel %vm1112_vm3, %v2696_v26, %v4205_v17  ;;  %v4385_v18 = vunpack.i.h.bf16 %v8050_v6  ;;  %v4384_v32 = vunpack.i.l.bf16 %v8050_v6 }
 0x1ef   :  { %v2725_v0 = vsel %vm1112_vm3, %v2693_v5, %v4199_v3  ;;  %v2726_v50 = vsel %vm1112_vm3, %v2694_v46, %v4200_v14  ;;  %v2759_v63 = vsel %vm1145_vm5, %v2727_v38, %v4284_v29  ;;  %v2760_v20 = vsel %vm1145_vm5, %v2728_v61, %v4285_v62 }
 0x1f0   :  { %4677 = vrot.lane.b32.xlu0 %v9455_v49, %s4848_s12  ;;  %v4403_v58 = vpop.permute.xlu1 %4402  ;;  %v4380_v49 = vunpack.i.h.bf16 %v8068_v12  ;;  %v4379_v17 = vunpack.i.l.bf16 %v8068_v12  ;;  %v4395_v48 = vunpack.i.h.bf16 %v8087_v43  ;;  %v4394_v6 = vunpack.i.l.bf16 %v8087_v43 }
 0x1f1   :  { %v2757_v3 = vsel %vm1145_vm5, %v2725_v0, %v4279_v22  ;;  %v2758_v14 = vsel %vm1145_vm5, %v2726_v50, %v4280_v36  ;;  %v4390_v8 = vunpack.i.h.bf16 %v4388_v35  ;;  %v4389_v29 = vunpack.i.l.bf16 %v4388_v35 }
 0x1f2   :  { %v4398_v53 = vpop.permute.xlu0 %4397  ;;  %4692 = vrot.lane.b32.xlu1 %v7959_v30, %s4843_s3  ;;  %v2791_v26 = vsel %vm1178_vm6, %v2759_v63, %v4384_v32  ;;  %v2792_v51 = vsel %vm1178_vm6, %v2760_v20, %v4385_v18  ;;  %v4405_v56 = vunpack.i.h.bf16 %v4403_v58  ;;  %v4404_v12 = vunpack.i.l.bf16 %v4403_v58 }
 0x1f3   :  { %v4400_v45 = vunpack.i.h.bf16 %v4398_v53  ;;  %v4399_v46 = vunpack.i.l.bf16 %v4398_v53  ;;  %v2789_v35 = vsel %vm1178_vm6, %v2757_v3, %v4379_v17  ;;  %v2790_v36 = vsel %vm1178_vm6, %v2758_v14, %v4380_v49 }
 0x1f4   :  { %4687 = vrot.lane.b32.xlu0 %v7943_v11, %s4843_s3  ;;  %v4413_v62 = vpop.permute.xlu1 %4412  ;;  %v2823_v11 = vsel %vm1211_vm7, %v2791_v26, %v4394_v6  ;;  %v2824_v22 = vsel %vm1211_vm7, %v2792_v51, %v4395_v48  ;;  %v2821_v38 = vsel %vm1211_vm7, %v2789_v35, %v4389_v29  ;;  %v2822_v58 = vsel %vm1211_vm7, %v2790_v36, %v4390_v8  ;;  %v4822_v36 = vld [vmem:[%s8745_s0 + $0x228] sm:$0xff] }
 0x1f5   :  { %v4415_v31 = vunpack.i.h.bf16 %v4413_v62  ;;  %v4414_v43 = vunpack.i.l.bf16 %v4413_v62  ;;  %v2855_v0 = vsel %vm1244_vm8, %v2823_v11, %v4404_v12  ;;  %v2856_v50 = vsel %vm1244_vm8, %v2824_v22, %v4405_v56  ;;  %v4824_v22 = vld [vmem:[%s8745_s0 + $0x210] sm:$0xff] }
 0x1f6   :  { %v4408_v5 = vpop.permute.xlu0 %4407  ;;  %4702 = vrot.lane.b32.xlu1 %v8074_v24, %s4844_s4  ;;  %v2853_v53 = vsel %vm1244_vm8, %v2821_v38, %v4399_v46  ;;  %v2854_v49 = vsel %vm1244_vm8, %v2822_v58, %v4400_v45  ;;  %v4134_v35 = vunpack.i.l.bf16 %v7624_v57  ;;  %v4215_v52 = vunpack.i.h.bf16 %v7788_v27 }
 0x1f7   :  { %v4410_v61 = vunpack.i.h.bf16 %v4408_v5  ;;  %v4409_v18 = vunpack.i.l.bf16 %v4408_v5  ;;  %v2887_v17 = vsel %vm1277_vm9, %v2855_v0, %v4414_v43  ;;  %v2888_v48 = vsel %vm1277_vm9, %v2856_v50, %v4415_v31 }
 0x1f8   :  { %4697 = vrot.lane.b32.xlu0 %v9458_v23, %s4844_s4  ;;  %v4423_v32 = vpop.permute.xlu1 %4422  ;;  %v4731_v31 = vpack.i.bf16 %v8114_v1, %v8097_v44  ;;  %v2592_v43 = vsel %vm300_vm1, %v2589_v59, %v2591_v21  ;;  %v4135_v5 = vunpack.i.h.bf16 %v7624_v57  ;;  %v4129_v44 = vunpack.i.l.bf16 %v7639_v7 }
 0x1f9   :  { %v4425_v63 = vunpack.i.h.bf16 %v4423_v32  ;;  %v4424_v20 = vunpack.i.l.bf16 %v4423_v32  ;;  %v2885_v29 = vsel %vm1277_vm9, %v2853_v53, %v4409_v18  ;;  %v2886_v62 = vsel %vm1277_vm9, %v2854_v49, %v4410_v61 }
 0x1fa   :  { %v4418_v6 = vpop.permute.xlu0 %4417  ;;  %4712 = vrot.lane.b32.xlu1 %v8079_v15, %s4845_s5  ;;  %v4214_v19 = vunpack.i.l.bf16 %v7788_v27  ;;  %v4209_v57 = vunpack.i.l.bf16 %v7802_v28  ;;  %v4295_v1 = vunpack.i.h.bf16 %v7872_v13  ;;  %v2699_v11 = vsel %vm1079_vm2, %v4822_v36, %v4134_v35 }
 0x1fb   :  { %v2919_v23 = vsel %vm1310_vm10, %v2887_v17, %v4424_v20  ;;  %v2920_v3 = vsel %vm1310_vm10, %v2888_v48, %v4425_v63  ;;  %v4420_v14 = vunpack.i.h.bf16 %v4418_v6  ;;  %v4419_v8 = vunpack.i.l.bf16 %v4418_v6 }
 0x1fc   :  { %4707 = vrot.lane.b32.xlu0 %v9459_v2, %s4845_s5  ;;  %v4433_v26 = vpop.permute.xlu1 %4432  ;;  %v2948_v51 = vpack.c.bf16 %v2920_v3, %v2919_v23  ;;  %v2590_v2 = vsel %vm300_vm1, %v2588_v25, %v2589_v59  ;;  %v4210_v25 = vunpack.i.h.bf16 %v7802_v28  ;;  %v4823_v28 = vld [vmem:[%s8745_s0 + $0x218] sm:$0xff]  ;;  %v2697_v38 = vsel %vm1079_vm2, %v4824_v22, %v4129_v44 }
 0x1fd   :  { %v2917_v56 = vsel %vm1310_vm10, %v2885_v29, %v4419_v8  ;;  %v2918_v12 = vsel %vm1310_vm10, %v2886_v62, %v4420_v14  ;;  %v4741_v59 = vpack.i.bf16 %v2592_v43, %v2590_v2  ;;  %v4290_v58 = vunpack.i.h.bf16 %v7874_v16 }
 0x1fe   :  { %v2947_v45 = vpack.c.bf16 %v2918_v12, %v2917_v56  ;;  %v8175_v46 = vpop.permute.xlu0 %4427  ;;  %4722 = vrot.lane.b32.xlu1 %v4721_v54, %s4846_s6  ;;  %v4130_v54 = vunpack.i.h.bf16 %v7639_v7  ;;  %v4294_v7 = vunpack.i.l.bf16 %v7872_v13  ;;  %v4289_v61 = vunpack.i.l.bf16 %v7874_v16 }
 0x1ff   :  { %v2731_v32 = vsel %vm1112_vm3, %v2699_v11, %v4214_v19  ;;  %v4435_v50 = vunpack.i.h.bf16 %v4433_v26  ;;  %v4434_v63 = vunpack.i.l.bf16 %v4433_v26  ;;  %v2729_v20 = vsel %vm1112_vm3, %v2697_v38, %v4209_v57 }
 0x200   :  { %4717 = vrot.lane.b32.xlu0 %v7959_v30, %s4846_s6  ;;  %3428 = vmatprep.mubr.msk.bf16.mxu1 %vm1386_vm11, %v2947_v45  ;;  %v4443_v37 = vpop.permute.xlu1 %4442  ;;  %v4821_v30 = vld [vmem:[%s8745_s0 + $0x230] sm:$0xff]  ;;  %v2698_v13 = vsel %vm1079_vm2, %v4823_v28, %v4130_v54  ;;  %v2763_v49 = vsel %vm1145_vm5, %v2731_v32, %v4294_v7  ;;  %v4430_v16 = vunpack.i.h.bf16 %v8175_v46  ;;  %v2761_v3 = vsel %vm1145_vm5, %v2729_v20, %v4289_v61 }
 0x201   :  { %3429 = vmatmul.mubr.msk.bf16.gmra.mrb[4].mxu1 %vm1386_vm11, %v2948_v51  ;;  %v2700_v27 = vsel %vm1079_vm2, %v4821_v30, %v4135_v5  ;;  %v2730_v53 = vsel %vm1112_vm3, %v2698_v13, %v4210_v25  ;;  %v4445_v6 = vunpack.i.h.bf16 %v4443_v37  ;;  %v4444_v23 = vunpack.i.l.bf16 %v4443_v37 }
 0x202   :  { %v4438_v21 = vpop.permute.xlu0 %4437  ;;  %4732 = vrot.lane.b32.xlu1 %v4731_v31, %s4847_s11  ;;  %v2732_v0 = vsel %vm1112_vm3, %v2700_v27, %v4215_v52  ;;  %v2762_v14 = vsel %vm1145_vm5, %v2730_v53, %v4290_v58  ;;  %v2795_v26 = vsel %vm1178_vm6, %v2763_v49, %v4434_v63  ;;  %v4145_v53 = vunpack.i.h.bf16 %v7654_v33 }
 0x203   :  { %v2764_v17 = vsel %vm1145_vm5, %v2732_v0, %v4295_v1  ;;  %v4440_v8 = vunpack.i.h.bf16 %v4438_v21  ;;  %v4439_v29 = vunpack.i.l.bf16 %v4438_v21  ;;  %v2794_v35 = vsel %vm1178_vm6, %v2762_v14, %v4430_v16 }
 0x204   :  { %4727 = vrot.lane.b32.xlu0 %v8074_v24, %s4847_s11  ;;  %v4453_v18 = vpop.permute.xlu1 %4452  ;;  %v4429_v24 = vunpack.i.l.bf16 %v8175_v46  ;;  %v2796_v51 = vsel %vm1178_vm6, %v2764_v17, %v4435_v50  ;;  %v2827_v54 = vsel %vm1211_vm7, %v2795_v26, %v4444_v23  ;;  %v4144_v49 = vunpack.i.l.bf16 %v7654_v33 }
 0x205   :  { %v4455_v56 = vunpack.i.h.bf16 %v4453_v18  ;;  %v4454_v12 = vunpack.i.l.bf16 %v4453_v18  ;;  %v2826_v37 = vsel %vm1211_vm7, %v2794_v35, %v4440_v8  ;;  %v4140_v17 = vunpack.i.h.bf16 %v7664_v4 }
 0x206   :  { %v4448_v48 = vpop.permute.xlu0 %4447  ;;  %4742 = vrot.lane.b32.xlu1 %v4741_v59, %s4848_s12  ;;  %v2793_v5 = vsel %vm1178_vm6, %v2761_v3, %v4429_v24  ;;  %v4225_v24 = vunpack.i.h.bf16 %v7806_v34  ;;  %v4220_v23 = vunpack.i.h.bf16 %v7808_v55  ;;  %v4219_v3 = vunpack.i.l.bf16 %v7808_v55  ;;  %v4827_v55 = vld [vmem:[%s8745_s0 + $0x248] sm:$0xff] }
 0x207   :  { %v4450_v45 = vunpack.i.h.bf16 %v4448_v48  ;;  %v4449_v46 = vunpack.i.l.bf16 %v4448_v48  ;;  %v2825_v44 = vsel %vm1211_vm7, %v2793_v5, %v4439_v29  ;;  %v2859_v25 = vsel %vm1244_vm8, %v2827_v54, %v4454_v12 }
 0x208   :  { %4737 = vrot.lane.b32.xlu0 %v8079_v15, %s4848_s12  ;;  %v4463_v62 = vpop.permute.xlu1 %4462  ;;  %v2828_v15 = vsel %vm1211_vm7, %v2796_v51, %v4445_v6  ;;  %v4139_v48 = vunpack.i.l.bf16 %v7664_v4  ;;  %v4224_v6 = vunpack.i.l.bf16 %v7806_v34  ;;  %v4305_v14 = vunpack.i.h.bf16 %v7880_v47  ;;  %v4825_v4 = vld [vmem:[%s8745_s0 + $0x260] sm:$0xff]  ;;  %v4826_v34 = vld [vmem:[%s8745_s0 + $0x258] sm:$0xff] }
 0x209   :  { %v4465_v31 = vunpack.i.h.bf16 %v4463_v62  ;;  %v4464_v2 = vunpack.i.l.bf16 %v4463_v62  ;;  %v2860_v57 = vsel %vm1244_vm8, %v2828_v15, %v4455_v56  ;;  %v2857_v21 = vsel %vm1244_vm8, %v2825_v44, %v4449_v46 }
 0x20a   :  { %v4458_v43 = vpop.permute.xlu0 %4457  ;;  %v2858_v30 = vsel %vm1244_vm8, %v2826_v37, %v4450_v45  ;;  %v4304_v33 = vunpack.i.l.bf16 %v7880_v47  ;;  %v2704_v29 = vsel %vm1079_vm2, %v4825_v4, %v4145_v53  ;;  %v2703_v62 = vsel %vm1079_vm2, %v4826_v34, %v4144_v49  ;;  %v4828_v47 = vld [vmem:[%s8745_s0 + $0x240] sm:$0xff] }
 0x20b   :  { %v4460_v52 = vunpack.i.h.bf16 %v4458_v43  ;;  %v4459_v19 = vunpack.i.l.bf16 %v4458_v43  ;;  %v2891_v27 = vsel %vm1277_vm9, %v2859_v25, %v4464_v2  ;;  %v2892_v36 = vsel %vm1277_vm9, %v2860_v57, %v4465_v31 }
 0x20c   :  { %v4473_v59 = vpop.permute.xlu1 %4472  ;;  %v2702_v26 = vsel %vm1079_vm2, %v4827_v55, %v4140_v17  ;;  %v2701_v51 = vsel %vm1079_vm2, %v4828_v47, %v4139_v48  ;;  %v4300_v56 = vunpack.i.h.bf16 %v7882_v42  ;;  %v4299_v12 = vunpack.i.l.bf16 %v7882_v42 }
 0x20d   :  { %v4475_v1 = vunpack.i.h.bf16 %v4473_v59  ;;  %v4474_v7 = vunpack.i.l.bf16 %v4473_v59  ;;  %v2889_v58 = vsel %vm1277_vm9, %v2857_v21, %v4459_v19  ;;  %v2890_v61 = vsel %vm1277_vm9, %v2858_v30, %v4460_v52 }
 0x20e   :  { %v4468_v11 = vpop.permute.xlu0 %4467  ;;  %v2735_v46 = vsel %vm1112_vm3, %v2703_v62, %v4224_v6  ;;  %v2736_v31 = vsel %vm1112_vm3, %v2704_v29, %v4225_v24  ;;  %v2733_v5 = vsel %vm1112_vm3, %v2701_v51, %v4219_v3  ;;  %v2734_v35 = vsel %vm1112_vm3, %v2702_v26, %v4220_v23 }
 0x20f   :  { %v2923_v28 = vsel %vm1310_vm10, %v2891_v27, %v4474_v7  ;;  %v2924_v13 = vsel %vm1310_vm10, %v2892_v36, %v4475_v1  ;;  %v4470_v22 = vunpack.i.h.bf16 %v4468_v11  ;;  %v4469_v38 = vunpack.i.l.bf16 %v4468_v11 }
 0x210   :  { %v4483_v18 = vpop.permute.xlu1 %4482  ;;  %v2950_v32 = vpack.c.bf16 %v2924_v13, %v2923_v28  ;;  %v2767_v54 = vsel %vm1145_vm5, %v2735_v46, %v4304_v33  ;;  %v2768_v15 = vsel %vm1145_vm5, %v2736_v31, %v4305_v14  ;;  %v2765_v59 = vsel %vm1145_vm5, %v2733_v5, %v4299_v12 }
 0x211   :  { %v2921_v0 = vsel %vm1310_vm10, %v2889_v58, %v4469_v38  ;;  %v2922_v50 = vsel %vm1310_vm10, %v2890_v61, %v4470_v22  ;;  %v4485_v2 = vunpack.i.h.bf16 %v4483_v18  ;;  %v4484_v43 = vunpack.i.l.bf16 %v4483_v18 }
 0x212   :  { %v2949_v63 = vpack.c.bf16 %v2922_v50, %v2921_v0  ;;  %v4478_v20 = vpop.permute.xlu0 %4477  ;;  %v2766_v25 = vsel %vm1145_vm5, %v2734_v35, %v4300_v56  ;;  %v4154_v46 = vunpack.i.l.bf16 %v7676_v41  ;;  %v4150_v31 = vunpack.i.h.bf16 %v7690_v39 }
 0x213   :  { %v4480_v37 = vunpack.i.h.bf16 %v4478_v20  ;;  %v4479_v52 = vunpack.i.l.bf16 %v4478_v20  ;;  %v2799_v21 = vsel %vm1178_vm6, %v2767_v54, %v4484_v43  ;;  %v2800_v30 = vsel %vm1178_vm6, %v2768_v15, %v4485_v2 }
 0x214   :  { %3432 = vmatprep.mubr.msk.bf16.mxu1 %vm1386_vm11, %v2949_v63  ;;  %v4493_v16 = vpop.permute.xlu1 %4492  ;;  %v4149_v2 = vunpack.i.l.bf16 %v7690_v39  ;;  %v4235_v5 = vunpack.i.h.bf16 %v7814_v40  ;;  %v4234_v35 = vunpack.i.l.bf16 %v7814_v40  ;;  %v4230_v54 = vunpack.i.h.bf16 %v7816_v60 }
 0x215   :  { %3433 = vmatmul.mubr.msk.bf16.gmra.mrb[8].mxu1 %vm1386_vm11, %v2950_v32  ;;  %v4495_v19 = vunpack.i.h.bf16 %v4493_v16  ;;  %v4494_v42 = vunpack.i.l.bf16 %v4493_v16  ;;  %v2797_v58 = vsel %vm1178_vm6, %v2765_v59, %v4479_v52  ;;  %v2798_v61 = vsel %vm1178_vm6, %v2766_v25, %v4480_v37  ;;  %v9460_v52 = vld [vmem:[#allocation63_spill] sm:$0xff] }
 0x216   :  { %v4488_v8 = vpop.permute.xlu0 %4487  ;;  %v4229_v15 = vunpack.i.l.bf16 %v7816_v60  ;;  %v9462_v59 = vld [vmem:[#allocation59_spill] sm:$0xff] }
 0x217   :  { %v4490_v57 = vunpack.i.h.bf16 %v4488_v8  ;;  %v4489_v1 = vunpack.i.l.bf16 %v4488_v8  ;;  %v2831_v18 = vsel %vm1211_vm7, %v2799_v21, %v4494_v42  ;;  %v2832_v32 = vsel %vm1211_vm7, %v2800_v30, %v4495_v19  ;;  %v9461_v42 = vld [vmem:[#allocation60_spill] sm:$0xff] }
 0x218   :  { %v4503_v45 = vpop.permute.xlu1 %4502  ;;  %v2707_v19 = vsel %vm1079_vm2, %v9460_v52, %v4154_v46  ;;  %v2706_v40 = vsel %vm1079_vm2, %v9461_v42, %v4150_v31  ;;  %v2705_v25 = vsel %vm1079_vm2, %v9462_v59, %v4149_v2 }
 0x219   :  { %v4505_v27 = vunpack.i.h.bf16 %v4503_v45  ;;  %v4504_v36 = vunpack.i.l.bf16 %v4503_v45  ;;  %v2829_v0 = vsel %vm1211_vm7, %v2797_v58, %v4489_v1  ;;  %v2830_v50 = vsel %vm1211_vm7, %v2798_v61, %v4490_v57  ;;  %v9463_v57 = vld [vmem:[#allocation80_spill] sm:$0xff] }
 0x21a   :  { %v4498_v44 = vpop.permute.xlu0 %4497  ;;  %v4155_v45 = vunpack.i.h.bf16 %v7676_v41  ;;  %v4314_v41 = vunpack.i.l.bf16 %v7894_v9  ;;  %v4310_v1 = vunpack.i.h.bf16 %v9463_v57  ;;  %v4309_v60 = vunpack.i.l.bf16 %v9463_v57  ;;  %v9464_v57 = vld [vmem:[#allocation107_spill] sm:$0xff] }
 0x21b   :  { %v4500_v11 = vunpack.i.h.bf16 %v4498_v44  ;;  %v4499_v28 = vunpack.i.l.bf16 %v4498_v44  ;;  %v2863_v49 = vsel %vm1244_vm8, %v2831_v18, %v4504_v36  ;;  %v2864_v17 = vsel %vm1244_vm8, %v2832_v32, %v4505_v27 }
 0x21c   :  { %v4513_v7 = vpop.permute.xlu1 %4512  ;;  %v4315_v44 = vunpack.i.h.bf16 %v7894_v9  ;;  %v2708_v39 = vsel %vm1079_vm2, %v7782_v10, %v4155_v45  ;;  %v2739_v9 = vsel %vm1112_vm3, %v2707_v19, %v4234_v35  ;;  %v2737_v27 = vsel %vm1112_vm3, %v2705_v25, %v4229_v15 }
 0x21d   :  { %v4515_v13 = vunpack.i.h.bf16 %v4513_v7  ;;  %v4514_v22 = vunpack.i.l.bf16 %v4513_v7  ;;  %v2861_v24 = vsel %vm1244_vm8, %v2829_v0, %v4499_v28  ;;  %v2862_v6 = vsel %vm1244_vm8, %v2830_v50, %v4500_v11 }
 0x21e   :  { %v4508_v38 = vpop.permute.xlu0 %4507  ;;  %v2740_v21 = vsel %vm1112_vm3, %v2708_v39, %v4235_v5  ;;  %v2738_v36 = vsel %vm1112_vm3, %v2706_v40, %v4230_v54  ;;  %v2771_v11 = vsel %vm1145_vm5, %v2739_v9, %v4314_v41  ;;  %v2769_v18 = vsel %vm1145_vm5, %v2737_v27, %v4309_v60  ;;  %v9465_v9 = vld [vmem:[#allocation5_spill] sm:$0xff]  ;;  %v9466_v27 = vld [vmem:[#allocation66_spill] sm:$0xff] }
 0x21f   :  { %v4510_v63 = vunpack.i.h.bf16 %v4508_v38  ;;  %v4509_v20 = vunpack.i.l.bf16 %v4508_v38  ;;  %v2895_v23 = vsel %vm1277_vm9, %v2863_v49, %v4514_v22  ;;  %v2896_v3 = vsel %vm1277_vm9, %v2864_v17, %v4515_v13 }
 0x220   :  { %v4523_v53 = vpop.permute.xlu1 %4522  ;;  %v2772_v28 = vsel %vm1145_vm5, %v2740_v21, %v4315_v44  ;;  %v2770_v32 = vsel %vm1145_vm5, %v2738_v36, %v4310_v1  ;;  %v4165_v1 = vunpack.i.h.bf16 %v9464_v57  ;;  %v4164_v60 = vunpack.i.l.bf16 %v9464_v57 }
 0x221   :  { %v4525_v48 = vunpack.i.h.bf16 %v4523_v53  ;;  %v4524_v16 = vunpack.i.l.bf16 %v4523_v53  ;;  %v2893_v34 = vsel %vm1277_vm9, %v2861_v24, %v4509_v20  ;;  %v2894_v62 = vsel %vm1277_vm9, %v2862_v6, %v4510_v63 }
 0x222   :  { %v4518_v14 = vpop.permute.xlu0 %4517  ;;  %v4160_v21 = vunpack.i.h.bf16 %v9465_v9  ;;  %v4245_v36 = vunpack.i.h.bf16 %v9466_v27 }
 0x223   :  { %v2927_v33 = vsel %vm1310_vm10, %v2895_v23, %v4524_v16  ;;  %v2928_v8 = vsel %vm1310_vm10, %v2896_v3, %v4525_v48  ;;  %v4520_v4 = vunpack.i.h.bf16 %v4518_v14  ;;  %v4519_v29 = vunpack.i.l.bf16 %v4518_v14 }
 0x224   :  { %v4533_v55 = vpop.permute.xlu1 %4532  ;;  %v2952_v26 = vpack.c.bf16 %v2928_v8, %v2927_v33 }
 0x225   :  { %v2925_v47 = vsel %vm1310_vm10, %v2893_v34, %v4519_v29  ;;  %v2926_v51 = vsel %vm1310_vm10, %v2894_v62, %v4520_v4  ;;  %v4535_v30 = vunpack.i.h.bf16 %v4533_v55  ;;  %v4534_v10 = vunpack.i.l.bf16 %v4533_v55 }
 0x226   :  { %v2951_v56 = vpack.c.bf16 %v2926_v51, %v2925_v47  ;;  %v4528_v12 = vpop.permute.xlu0 %4527 }
 0x227   :  { %v4530_v22 = vunpack.i.h.bf16 %v4528_v12  ;;  %v4529_v38 = vunpack.i.l.bf16 %v4528_v12  ;;  %v2803_v20 = vsel %vm1178_vm6, %v2771_v11, %v4534_v10  ;;  %v2804_v53 = vsel %vm1178_vm6, %v2772_v28, %v4535_v30  ;;  %v9467_v28 = vld [vmem:[#allocation69_spill] sm:$0xff] }
 0x228   :  { %3436 = vmatprep.mubr.msk.bf16.mxu1 %vm1386_vm11, %v2951_v56  ;;  %v4543_v43 = vpop.permute.xlu1 %4542  ;;  %v4159_v30 = vunpack.i.l.bf16 %v9465_v9  ;;  %v4244_v11 = vunpack.i.l.bf16 %v9466_v27 }
 0x229   :  { %3437 = vmatmul.mubr.msk.bf16.gmra.mrb[12].mxu1 %vm1386_vm11, %v2952_v26  ;;  %v4545_v58 = vunpack.i.h.bf16 %v4543_v43  ;;  %v4544_v61 = vunpack.i.l.bf16 %v4543_v43  ;;  %v2801_v3 = vsel %vm1178_vm6, %v2769_v18, %v4529_v38  ;;  %v2802_v14 = vsel %vm1178_vm6, %v2770_v32, %v4530_v22  ;;  %v9468_v38 = vld [vmem:[#allocation74_spill] sm:$0xff] }
 0x22a   :  { %v4538_v37 = vpop.permute.xlu0 %4537  ;;  %v4239_v22 = vunpack.i.l.bf16 %v9467_v28  ;;  %v4829_v32 = vld [vmem:[%s8745_s0 + $0x2c0] sm:$0xff] }
 0x22b   :  { %v4540_v0 = vunpack.i.h.bf16 %v4538_v37  ;;  %v4539_v50 = vunpack.i.l.bf16 %v4538_v37  ;;  %v2835_v33 = vsel %vm1211_vm7, %v2803_v20, %v4544_v61  ;;  %v2836_v8 = vsel %vm1211_vm7, %v2804_v53, %v4545_v58  ;;  %v4831_v20 = vld [vmem:[%s8745_s0 + $0x2a8] sm:$0xff] }
 0x22c   :  { %v4553_v7 = vpop.permute.xlu1 %4552  ;;  %v4325_v58 = vunpack.i.h.bf16 %v9468_v38  ;;  %v4324_v61 = vunpack.i.l.bf16 %v9468_v38  ;;  %v2710_v53 = vsel %vm1079_vm2, %v4831_v20, %v4160_v21 }
 0x22d   :  { %v4555_v49 = vunpack.i.h.bf16 %v4553_v7  ;;  %v4554_v17 = vunpack.i.l.bf16 %v4553_v7  ;;  %v2833_v4 = vsel %vm1211_vm7, %v2801_v3, %v4539_v50  ;;  %v2834_v29 = vsel %vm1211_vm7, %v2802_v14, %v4540_v0  ;;  %v4830_v50 = vld [vmem:[%s8745_s0 + $0x2b8] sm:$0xff] }
 0x22e   :  { %v4548_v13 = vpop.permute.xlu0 %4547  ;;  %v2712_v0 = vsel %vm1079_vm2, %v4829_v32, %v4165_v1 }
 0x22f   :  { %v4550_v48 = vunpack.i.h.bf16 %v4548_v13  ;;  %v4549_v16 = vunpack.i.l.bf16 %v4548_v13  ;;  %v2867_v26 = vsel %vm1244_vm8, %v2835_v33, %v4554_v17  ;;  %v2868_v47 = vsel %vm1244_vm8, %v2836_v8, %v4555_v49  ;;  %v4832_v49 = vld [vmem:[%s8745_s0 + $0x2a0] sm:$0xff] }
 0x230   :  { %v4563_v63 = vpop.permute.xlu1 %4562  ;;  %v4240_v13 = vunpack.i.h.bf16 %v9467_v28  ;;  %v2709_v17 = vsel %vm1079_vm2, %v4832_v49, %v4159_v30  ;;  %v2744_v14 = vsel %vm1112_vm3, %v2712_v0, %v4245_v36 }
 0x231   :  { %v4565_v24 = vunpack.i.h.bf16 %v4563_v63  ;;  %v4564_v6 = vunpack.i.l.bf16 %v4563_v63  ;;  %v2865_v12 = vsel %vm1244_vm8, %v2833_v4, %v4549_v16  ;;  %v2866_v45 = vsel %vm1244_vm8, %v2834_v29, %v4550_v48  ;;  %v9469_v48 = vld [vmem:[#allocation26_spill] sm:$0xff] }
 0x232   :  { %v4558_v23 = vpop.permute.xlu0 %4557  ;;  %v2711_v63 = vsel %vm1079_vm2, %v4830_v50, %v4164_v60  ;;  %v4320_v16 = vunpack.i.h.bf16 %v9469_v48  ;;  %v2741_v29 = vsel %vm1112_vm3, %v2709_v17, %v4239_v22 }
 0x233   :  { %v4560_v34 = vunpack.i.h.bf16 %v4558_v23  ;;  %v4559_v62 = vunpack.i.l.bf16 %v4558_v23  ;;  %v2899_v46 = vsel %vm1277_vm9, %v2867_v26, %v4564_v6  ;;  %v2900_v31 = vsel %vm1277_vm9, %v2868_v47, %v4565_v24 }
 0x234   :  { %v4573_v55 = vpop.permute.xlu1 %4572  ;;  %v4319_v24 = vunpack.i.l.bf16 %v9469_v48  ;;  %v2743_v3 = vsel %vm1112_vm3, %v2711_v63, %v4244_v11 }
 0x235   :  { %v4575_v51 = vunpack.i.h.bf16 %v4573_v55  ;;  %v4574_v56 = vunpack.i.l.bf16 %v4573_v55  ;;  %v2897_v15 = vsel %vm1277_vm9, %v2865_v12, %v4559_v62  ;;  %v2898_v44 = vsel %vm1277_vm9, %v2866_v45, %v4560_v34 }
 0x236   :  { %v4568_v2 = vpop.permute.xlu0 %4567  ;;  %v3384_v41 = vpop.f32.mrb[0].mxu0  ;;  %v2742_v34 = vsel %vm1112_vm3, %v2710_v53, %v4240_v13  ;;  %v2775_v62 = vsel %vm1145_vm5, %v2743_v3, %v4324_v61  ;;  %v2776_v55 = vsel %vm1145_vm5, %v2744_v14, %v4325_v58 }
 0x237   :  { %v2931_v43 = vsel %vm1310_vm10, %v2899_v46, %v4574_v56  ;;  %v2932_v5 = vsel %vm1310_vm10, %v2900_v31, %v4575_v51  ;;  %v4570_v35 = vunpack.i.h.bf16 %v4568_v2  ;;  %v4569_v54 = vunpack.i.l.bf16 %v4568_v2  ;;  %1602 = vst [vmem:[%s8747_s2 + $0x10] sm:$0xff] %v3384_v41  ;;  %v1473_v42 = vpop.f32.mrb[1].mxu0 }
 0x238   :  { %v8367_v37 = vpop.permute.xlu1 %4582  ;;  %v2954_v39 = vpack.c.bf16 %v2932_v5, %v2931_v43  ;;  %1600 = vst [vmem:[%s8747_s2] sm:$0xff] %v1473_v42  ;;  %v3385_v25 = vpop.f32.mrb[2].mxu0  ;;  %v2773_v31 = vsel %vm1145_vm5, %v2741_v29, %v4319_v24  ;;  %v2774_v2 = vsel %vm1145_vm5, %v2742_v34, %v4320_v16  ;;  %v9470_v29 = vld [vmem:[#allocation53_spill] sm:$0xff] }
 0x239   :  { %v2929_v52 = vsel %vm1310_vm10, %v2897_v15, %v4569_v54  ;;  %v2930_v19 = vsel %vm1310_vm10, %v2898_v44, %v4570_v35  ;;  %1603 = vst [vmem:[%s8747_s2 + $0x18] sm:$0xff] %v3385_v25  ;;  %v1476_v7 = vpop.f32.mrb[3].mxu0  ;;  %v4585_v33 = vunpack.i.h.bf16 %v8367_v37  ;;  %v4584_v8 = vunpack.i.l.bf16 %v8367_v37 }
 0x23a   :  { %v2953_v40 = vpack.c.bf16 %v2930_v19, %v2929_v52  ;;  %v8377_v59 = vpop.permute.xlu0 %4577  ;;  %1601 = vst [vmem:[%s8747_s2 + $0x8] sm:$0xff] %v1476_v7  ;;  %v4175_v34 = vunpack.i.h.bf16 %v9470_v29 }
 0x23b   :  { %v4580_v51 = vunpack.i.h.bf16 %v8377_v59  ;;  %v4579_v56 = vunpack.i.l.bf16 %v8377_v59  ;;  %v2807_v54 = vsel %vm1178_vm6, %v2775_v62, %v4584_v8  ;;  %v2808_v15 = vsel %vm1178_vm6, %v2776_v55, %v4585_v33 }
 0x23c   :  { %3440 = vmatprep.mubr.msk.bf16.mxu1 %vm1386_vm11, %v2953_v40  ;;  %v4593_v10 = vpop.permute.xlu1 %4592  ;;  %v4174_v62 = vunpack.i.l.bf16 %v9470_v29 }
 0x23d   :  { %3441 = vmatmul.mubr.msk.bf16.gmra.mrb[16].mxu1 %vm1386_vm11, %v2954_v39  ;;  %v4595_v12 = vunpack.i.h.bf16 %v4593_v10  ;;  %v4594_v45 = vunpack.i.l.bf16 %v4593_v10  ;;  %v2805_v40 = vsel %vm1178_vm6, %v2773_v31, %v4579_v56  ;;  %v2806_v59 = vsel %vm1178_vm6, %v2774_v2, %v4580_v51  ;;  %v9473_v31 = vld [vmem:[#allocation55_spill] sm:$0xff] }
 0x23e   :  { %v4588_v18 = vpop.permute.xlu0 %4587  ;;  %v3388_v6 = vpop.f32.mrb[4].mxu0  ;;  %v4250_v2 = vunpack.i.h.bf16 %v9473_v31 }
 0x23f   :  { %1606 = vst [vmem:[%s8747_s2 + $0x30] sm:$0xff] %v3388_v6  ;;  %v1489_v4 = vpop.f32.mrb[5].mxu0  ;;  %v4590_v43 = vunpack.i.h.bf16 %v4588_v18  ;;  %v4589_v5 = vunpack.i.l.bf16 %v4588_v18  ;;  %v2839_v25 = vsel %vm1211_vm7, %v2807_v54, %v4594_v45  ;;  %v2840_v57 = vsel %vm1211_vm7, %v2808_v15, %v4595_v12  ;;  %v9472_v12 = vld [vmem:[#allocation54_spill] sm:$0xff]  ;;  %v4833_v15 = vld [vmem:[%s8745_s0 + $0x2f0] sm:$0xff] }
 0x240   :  { %v4603_v23 = vpop.permute.xlu1 %4602  ;;  %1604 = vst [vmem:[%s8747_s2 + $0x20] sm:$0xff] %v1489_v4  ;;  %v3389_v47 = vpop.f32.mrb[6].mxu0  ;;  %v4255_v45 = vunpack.i.h.bf16 %v9472_v12 }
 0x241   :  { %1607 = vst [vmem:[%s8747_s2 + $0x38] sm:$0xff] %v3389_v47  ;;  %v1492_v46 = vpop.f32.mrb[7].mxu0  ;;  %v4605_v44 = vunpack.i.h.bf16 %v4603_v23  ;;  %v4604_v41 = vunpack.i.l.bf16 %v4603_v23  ;;  %v2837_v1 = vsel %vm1211_vm7, %v2805_v40, %v4589_v5  ;;  %v2838_v60 = vsel %vm1211_vm7, %v2806_v59, %v4590_v43 }
 0x242   :  { %v4598_v26 = vpop.permute.xlu0 %4597  ;;  %1605 = vst [vmem:[%s8747_s2 + $0x28] sm:$0xff] %v1492_v46  ;;  %v4254_v46 = vunpack.i.l.bf16 %v9472_v12  ;;  %v4249_v43 = vunpack.i.l.bf16 %v9473_v31 }
 0x243   :  { %v4600_v37 = vunpack.i.h.bf16 %v4598_v26  ;;  %v4599_v39 = vunpack.i.l.bf16 %v4598_v26  ;;  %v2871_v10 = vsel %vm1244_vm8, %v2839_v25, %v4604_v41  ;;  %v2872_v27 = vsel %vm1244_vm8, %v2840_v57, %v4605_v44  ;;  %v9471_v26 = vld [vmem:[#allocation58_spill] sm:$0xff]  ;;  %v4834_v41 = vld [vmem:[%s8745_s0 + $0x2e8] sm:$0xff] }
 0x244   :  { %v4613_v35 = vpop.permute.xlu1 %4612  ;;  %v4170_v47 = vunpack.i.h.bf16 %v9471_v26  ;;  %v4169_v51 = vunpack.i.l.bf16 %v9471_v26  ;;  %v2716_v44 = vsel %vm1079_vm2, %v4833_v15, %v4175_v34 }
 0x245   :  { %v4615_v52 = vunpack.i.h.bf16 %v4613_v35  ;;  %v4614_v19 = vunpack.i.l.bf16 %v4613_v35  ;;  %v2869_v13 = vsel %vm1244_vm8, %v2837_v1, %v4599_v39  ;;  %v2870_v22 = vsel %vm1244_vm8, %v2838_v60, %v4600_v37  ;;  %v4835_v39 = vld [vmem:[%s8745_s0 + $0x2d8] sm:$0xff] }
 0x246   :  { %v4608_v42 = vpop.permute.xlu0 %4607  ;;  %v3392_v21 = vpop.f32.mrb[8].mxu0  ;;  %v2715_v37 = vsel %vm1079_vm2, %v4834_v41, %v4174_v62  ;;  %v2748_v60 = vsel %vm1112_vm3, %v2716_v44, %v4255_v45 }
 0x247   :  { %v4610_v7 = vunpack.i.h.bf16 %v4608_v42  ;;  %v4609_v9 = vunpack.i.l.bf16 %v4608_v42  ;;  %1610 = vst [vmem:[%s8747_s2 + $0x50] sm:$0xff] %v3392_v21  ;;  %v1505_v36 = vpop.f32.mrb[9].mxu0  ;;  %v2903_v38 = vsel %vm1277_vm9, %v2871_v10, %v4614_v19  ;;  %v2904_v58 = vsel %vm1277_vm9, %v2872_v27, %v4615_v52  ;;  %v4836_v19 = vld [vmem:[%s8745_s0 + $0x2d0] sm:$0xff] }
 0x248   :  { %v4623_v30 = vpop.permute.xlu1 %4622  ;;  %1608 = vst [vmem:[%s8747_s2 + $0x40] sm:$0xff] %v1505_v36  ;;  %v3393_v18 = vpop.f32.mrb[10].mxu0  ;;  %v2714_v52 = vsel %vm1079_vm2, %v4835_v39, %v4170_v47  ;;  %v2713_v42 = vsel %vm1079_vm2, %v4836_v19, %v4169_v51  ;;  %v2747_v1 = vsel %vm1112_vm3, %v2715_v37, %v4254_v46 }
 0x249   :  { %v4625_v11 = vunpack.i.h.bf16 %v4623_v30  ;;  %v4624_v28 = vunpack.i.l.bf16 %v4623_v30  ;;  %1611 = vst [vmem:[%s8747_s2 + $0x58] sm:$0xff] %v3393_v18  ;;  %v1508_v20 = vpop.f32.mrb[11].mxu0  ;;  %v2901_v53 = vsel %vm1277_vm9, %v2869_v13, %v4609_v9  ;;  %v2902_v49 = vsel %vm1277_vm9, %v2870_v22, %v4610_v7 }
 0x24a   :  { %v4618_v61 = vpop.permute.xlu0 %4617  ;;  %1609 = vst [vmem:[%s8747_s2 + $0x48] sm:$0xff] %v1508_v20  ;;  %v2745_v30 = vsel %vm1112_vm3, %v2713_v42, %v4249_v43  ;;  %v2746_v10 = vsel %vm1112_vm3, %v2714_v52, %v4250_v2 }
 0x24b   :  { %v2935_v32 = vsel %vm1310_vm10, %v2903_v38, %v4624_v28  ;;  %v2936_v0 = vsel %vm1310_vm10, %v2904_v58, %v4625_v11  ;;  %v4620_v50 = vunpack.i.h.bf16 %v4618_v61  ;;  %v4619_v63 = vunpack.i.l.bf16 %v4618_v61 }
 0x24c   :  { %v4633_v17 = vpop.permute.xlu1 %4632  ;;  %v2956_v48 = vpack.c.bf16 %v2936_v0, %v2935_v32 }
 0x24d   :  { %v2933_v16 = vsel %vm1310_vm10, %v2901_v53, %v4619_v63  ;;  %v2934_v24 = vsel %vm1310_vm10, %v2902_v49, %v4620_v50  ;;  %v4635_v5 = vunpack.i.h.bf16 %v4633_v17  ;;  %v4634_v35 = vunpack.i.l.bf16 %v4633_v17 }
 0x24e   :  { %v2955_v6 = vpack.c.bf16 %v2934_v24, %v2933_v16  ;;  %v4628_v23 = vpop.permute.xlu0 %4627  ;;  %v3396_v3 = vpop.f32.mrb[12].mxu0 }
 0x24f   :  { %1614 = vst [vmem:[%s8747_s2 + $0x70] sm:$0xff] %v3396_v3  ;;  %v1521_v33 = vpop.f32.mrb[13].mxu0  ;;  %v4630_v40 = vunpack.i.h.bf16 %v4628_v23  ;;  %v4629_v59 = vunpack.i.l.bf16 %v4628_v23  ;;  %v2779_v27 = vsel %vm1145_vm5, %v2747_v1, %v4634_v35  ;;  %v2780_v36 = vsel %vm1145_vm5, %v2748_v60, %v4635_v5 }
 0x250   :  { %3444 = vmatprep.mubr.msk.bf16.mxu1 %vm1386_vm11, %v2955_v6  ;;  %v4643_v14 = vpop.permute.xlu1 %4642  ;;  %1612 = vst [vmem:[%s8747_s2 + $0x60] sm:$0xff] %v1521_v33  ;;  %v3397_v4 = vpop.f32.mrb[14].mxu0 }
 0x251   :  { %3445 = vmatmul.mubr.msk.bf16.gmra.mrb[20].mxu1 %vm1386_vm11, %v2956_v48  ;;  %1615 = vst [vmem:[%s8747_s2 + $0x78] sm:$0xff] %v3397_v4  ;;  %v1524_v55 = vpop.f32.mrb[15].mxu0  ;;  %v4645_v7 = vunpack.i.h.bf16 %v4643_v14  ;;  %v4644_v9 = vunpack.i.l.bf16 %v4643_v14  ;;  %v2777_v18 = vsel %vm1145_vm5, %v2745_v30, %v4629_v59  ;;  %v2778_v32 = vsel %vm1145_vm5, %v2746_v10, %v4630_v40  ;;  %v9474_v30 = vld [vmem:[#allocation61_spill] sm:$0xff] }
 0x252   :  { %v8479_v8 = vpop.permute.xlu0 %4637  ;;  %1613 = vst [vmem:[%s8747_s2 + $0x68] sm:$0xff] %v1524_v55  ;;  %v4185_v10 = vunpack.i.h.bf16 %v9474_v30 }
 0x253   :  { %v4640_v13 = vunpack.i.h.bf16 %v8479_v8  ;;  %v4639_v22 = vunpack.i.l.bf16 %v8479_v8  ;;  %v2811_v20 = vsel %vm1178_vm6, %v2779_v27, %v4644_v9  ;;  %v2812_v53 = vsel %vm1178_vm6, %v2780_v36, %v4645_v7 }
 0x254   :  { %v4653_v56 = vpop.permute.xlu1 %4652  ;;  %v4184_v27 = vunpack.i.l.bf16 %v9474_v30 }
 0x255   :  { %v4655_v38 = vunpack.i.h.bf16 %v4653_v56  ;;  %v4654_v58 = vunpack.i.l.bf16 %v4653_v56  ;;  %v2809_v3 = vsel %vm1178_vm6, %v2777_v18, %v4639_v22  ;;  %v2810_v14 = vsel %vm1178_vm6, %v2778_v32, %v4640_v13  ;;  %v9477_v18 = vld [vmem:[#allocation79_spill] sm:$0xff] }
 0x256   :  { %v4648_v54 = vpop.permute.xlu0 %4647  ;;  %v3400_v25 = vpop.f32.mrb[16].mxu0  ;;  %v4260_v32 = vunpack.i.h.bf16 %v9477_v18 }
 0x257   :  { %1618 = vst [vmem:[%s8747_s2 + $0x90] sm:$0xff] %v3400_v25  ;;  %v1537_v21 = vpop.f32.mrb[17].mxu0  ;;  %v4650_v0 = vunpack.i.h.bf16 %v4648_v54  ;;  %v4649_v50 = vunpack.i.l.bf16 %v4648_v54  ;;  %v2843_v33 = vsel %vm1211_vm7, %v2811_v20, %v4654_v58  ;;  %v2844_v8 = vsel %vm1211_vm7, %v2812_v53, %v4655_v38  ;;  %v9476_v38 = vld [vmem:[#allocation72_spill] sm:$0xff]  ;;  %v4837_v53 = vld [vmem:[%s8745_s0 + $0x320] sm:$0xff] }
 0x258   :  { %v4663_v57 = vpop.permute.xlu1 %4662  ;;  %1616 = vst [vmem:[%s8747_s2 + $0x80] sm:$0xff] %v1537_v21  ;;  %v3401_v28 = vpop.f32.mrb[18].mxu0  ;;  %v4265_v58 = vunpack.i.h.bf16 %v9476_v38 }
 0x259   :  { %1619 = vst [vmem:[%s8747_s2 + $0x98] sm:$0xff] %v3401_v28  ;;  %v1540_v61 = vpop.f32.mrb[19].mxu0  ;;  %v4665_v49 = vunpack.i.h.bf16 %v4663_v57  ;;  %v4664_v17 = vunpack.i.l.bf16 %v4663_v57  ;;  %v2841_v4 = vsel %vm1211_vm7, %v2809_v3, %v4649_v50  ;;  %v2842_v29 = vsel %vm1211_vm7, %v2810_v14, %v4650_v0 }
 0x25a   :  { %v4658_v11 = vpop.permute.xlu0 %4657  ;;  %1617 = vst [vmem:[%s8747_s2 + $0x88] sm:$0xff] %v1540_v61  ;;  %v4264_v61 = vunpack.i.l.bf16 %v9476_v38  ;;  %v4259_v0 = vunpack.i.l.bf16 %v9477_v18 }
 0x25b   :  { %v4660_v48 = vunpack.i.h.bf16 %v4658_v11  ;;  %v4659_v16 = vunpack.i.l.bf16 %v4658_v11  ;;  %v2875_v47 = vsel %vm1244_vm8, %v2843_v33, %v4664_v17  ;;  %v2876_v51 = vsel %vm1244_vm8, %v2844_v8, %v4665_v49  ;;  %v9475_v11 = vld [vmem:[#allocation48_spill] sm:$0xff]  ;;  %v4838_v17 = vld [vmem:[%s8745_s0 + $0x318] sm:$0xff] }
 0x25c   :  { %v4673_v63 = vpop.permute.xlu1 %4672  ;;  %v4180_v28 = vunpack.i.h.bf16 %v9475_v11  ;;  %v4179_v13 = vunpack.i.l.bf16 %v9475_v11  ;;  %v2720_v49 = vsel %vm1079_vm2, %v4837_v53, %v4185_v10 }
 0x25d   :  { %v4675_v24 = vunpack.i.h.bf16 %v4673_v63  ;;  %v4674_v6 = vunpack.i.l.bf16 %v4673_v63  ;;  %v2873_v46 = vsel %vm1244_vm8, %v2841_v4, %v4659_v16  ;;  %v2874_v31 = vsel %vm1244_vm8, %v2842_v29, %v4660_v48  ;;  %v4839_v16 = vld [vmem:[%s8745_s0 + $0x308] sm:$0xff] }
 0x25e   :  { %v4668_v23 = vpop.permute.xlu0 %4667  ;;  %v3404_v55 = vpop.f32.mrb[20].mxu0  ;;  %v2719_v48 = vsel %vm1079_vm2, %v4838_v17, %v4184_v27  ;;  %v2752_v29 = vsel %vm1112_vm3, %v2720_v49, %v4265_v58 }
 0x25f   :  { %v4670_v34 = vunpack.i.h.bf16 %v4668_v23  ;;  %v4669_v62 = vunpack.i.l.bf16 %v4668_v23  ;;  %1622 = vst [vmem:[%s8747_s2 + $0xb0] sm:$0xff] %v3404_v55  ;;  %v1553_v56 = vpop.f32.mrb[21].mxu0  ;;  %v2907_v2 = vsel %vm1277_vm9, %v2875_v47, %v4674_v6  ;;  %v2908_v43 = vsel %vm1277_vm9, %v2876_v51, %v4675_v24  ;;  %v4840_v6 = vld [vmem:[%s8745_s0 + $0x300] sm:$0xff] }
 0x260   :  { %v4683_v26 = vpop.permute.xlu1 %4682  ;;  %1620 = vst [vmem:[%s8747_s2 + $0xa0] sm:$0xff] %v1553_v56  ;;  %v3405_v35 = vpop.f32.mrb[22].mxu0  ;;  %v2718_v24 = vsel %vm1079_vm2, %v4839_v16, %v4180_v28  ;;  %v2717_v23 = vsel %vm1079_vm2, %v4840_v6, %v4179_v13  ;;  %v2751_v4 = vsel %vm1112_vm3, %v2719_v48, %v4264_v61 }
 0x261   :  { %v4685_v12 = vunpack.i.h.bf16 %v4683_v26  ;;  %v4684_v45 = vunpack.i.l.bf16 %v4683_v26  ;;  %1623 = vst [vmem:[%s8747_s2 + $0xb8] sm:$0xff] %v3405_v35  ;;  %v1556_v37 = vpop.f32.mrb[23].mxu0  ;;  %v2905_v39 = vsel %vm1277_vm9, %v2873_v46, %v4669_v62  ;;  %v2906_v52 = vsel %vm1277_vm9, %v2874_v31, %v4670_v34 }
 0x262   :  { %v4678_v5 = vpop.permute.xlu0 %4677  ;;  %1621 = vst [vmem:[%s8747_s2 + $0xa8] sm:$0xff] %v1556_v37  ;;  %v2749_v26 = vsel %vm1112_vm3, %v2717_v23, %v4259_v0  ;;  %v2750_v47 = vsel %vm1112_vm3, %v2718_v24, %v4260_v32 }
 0x263   :  { %v2939_v54 = vsel %vm1310_vm10, %v2907_v2, %v4684_v45  ;;  %v2940_v15 = vsel %vm1310_vm10, %v2908_v43, %v4685_v12  ;;  %v4680_v44 = vunpack.i.h.bf16 %v4678_v5  ;;  %v4679_v41 = vunpack.i.l.bf16 %v4678_v5 }
 0x264   :  { %v4693_v19 = vpop.permute.xlu1 %4692  ;;  %v2958_v42 = vpack.c.bf16 %v2940_v15, %v2939_v54 }
 0x265   :  { %v2937_v40 = vsel %vm1310_vm10, %v2905_v39, %v4679_v41  ;;  %v2938_v59 = vsel %vm1310_vm10, %v2906_v52, %v4680_v44  ;;  %v4695_v50 = vunpack.i.h.bf16 %v4693_v19  ;;  %v4694_v63 = vunpack.i.l.bf16 %v4693_v19 }
 0x266   :  { %v2957_v25 = vpack.c.bf16 %v2938_v59, %v2937_v40  ;;  %v4688_v57 = vpop.permute.xlu0 %4687  ;;  %v3408_v1 = vpop.f32.mrb[24].mxu0 }
 0x267   :  { %1626 = vst [vmem:[%s8747_s2 + $0xd0] sm:$0xff] %v3408_v1  ;;  %v1569_v7 = vpop.f32.mrb[25].mxu0  ;;  %v4690_v3 = vunpack.i.h.bf16 %v4688_v57  ;;  %v4689_v14 = vunpack.i.l.bf16 %v4688_v57  ;;  %v2783_v51 = vsel %vm1145_vm5, %v2751_v4, %v4694_v63  ;;  %v2784_v56 = vsel %vm1145_vm5, %v2752_v29, %v4695_v50 }
 0x268   :  { %3448 = vmatprep.mubr.msk.bf16.mxu1 %vm1386_vm11, %v2957_v25  ;;  %v4703_v60 = vpop.permute.xlu1 %4702  ;;  %1624 = vst [vmem:[%s8747_s2 + $0xc0] sm:$0xff] %v1569_v7  ;;  %v3409_v21 = vpop.f32.mrb[26].mxu0 }
 0x269   :  { %3449 = vmatmul.mubr.msk.bf16.gmra.mrb[24].mxu1 %vm1386_vm11, %v2958_v42  ;;  %1627 = vst [vmem:[%s8747_s2 + $0xd8] sm:$0xff] %v3409_v21  ;;  %v1572_v36 = vpop.f32.mrb[27].mxu0  ;;  %v4705_v34 = vunpack.i.h.bf16 %v4703_v60  ;;  %v4704_v62 = vunpack.i.l.bf16 %v4703_v60  ;;  %v2781_v35 = vsel %vm1145_vm5, %v2749_v26, %v4689_v14  ;;  %v2782_v54 = vsel %vm1145_vm5, %v2750_v47, %v4690_v3 }
 0x26a   :  { %v8573_v9 = vpop.permute.xlu0 %4697  ;;  %1625 = vst [vmem:[%s8747_s2 + $0xc8] sm:$0xff] %v1572_v36 }
 0x26b   :  { %v4700_v46 = vunpack.i.h.bf16 %v8573_v9  ;;  %v4699_v31 = vunpack.i.l.bf16 %v8573_v9  ;;  %v2815_v37 = vsel %vm1178_vm6, %v2783_v51, %v4704_v62  ;;  %v2816_v39 = vsel %vm1178_vm6, %v2784_v56, %v4705_v34 }
 0x26c   :  { %v4713_v22 = vpop.permute.xlu1 %4712 }
 0x26d   :  { %v4715_v2 = vunpack.i.h.bf16 %v4713_v22  ;;  %v4714_v43 = vunpack.i.l.bf16 %v4713_v22  ;;  %v2813_v1 = vsel %vm1178_vm6, %v2781_v35, %v4699_v31  ;;  %v2814_v60 = vsel %vm1178_vm6, %v2782_v54, %v4700_v46 }
 0x26e   :  { %v4708_v20 = vpop.permute.xlu0 %4707  ;;  %v3412_v33 = vpop.f32.mrb[28].mxu0 }
 0x26f   :  { %1630 = vst [vmem:[%s8747_s2 + $0xf0] sm:$0xff] %v3412_v33  ;;  %v1585_v55 = vpop.f32.mrb[29].mxu0  ;;  %v4710_v15 = vunpack.i.h.bf16 %v4708_v20  ;;  %v4709_v44 = vunpack.i.l.bf16 %v4708_v20  ;;  %v2847_v7 = vsel %vm1211_vm7, %v2815_v37, %v4714_v43  ;;  %v2848_v9 = vsel %vm1211_vm7, %v2816_v39, %v4715_v2 }
 0x270   :  { %v4723_v8 = vpop.permute.xlu1 %4722  ;;  %1628 = vst [vmem:[%s8747_s2 + $0xe0] sm:$0xff] %v1585_v55  ;;  %v3413_v45 = vpop.f32.mrb[30].mxu0 }
 0x271   :  { %1631 = vst [vmem:[%s8747_s2 + $0xf8] sm:$0xff] %v3413_v45  ;;  %v1588_v5 = vpop.f32.mrb[31].mxu0  ;;  %v4725_v52 = vunpack.i.h.bf16 %v4723_v8  ;;  %v4724_v19 = vunpack.i.l.bf16 %v4723_v8  ;;  %v2845_v21 = vsel %vm1211_vm7, %v2813_v1, %v4709_v44  ;;  %v2846_v30 = vsel %vm1211_vm7, %v2814_v60, %v4710_v15 }
 0x272   :  { %v4718_v12 = vpop.permute.xlu0 %4717  ;;  %1629 = vst [vmem:[%s8747_s2 + $0xe8] sm:$0xff] %v1588_v5 }
 0x273   :  { %v4720_v42 = vunpack.i.h.bf16 %v4718_v12  ;;  %v4719_v40 = vunpack.i.l.bf16 %v4718_v12  ;;  %v2879_v11 = vsel %vm1244_vm8, %v2847_v7, %v4724_v19  ;;  %v2880_v28 = vsel %vm1244_vm8, %v2848_v9, %v4725_v52 }
 0x274   :  { %v4733_v41 = vpop.permute.xlu1 %4732 }
 0x275   :  { %v4735_v59 = vunpack.i.h.bf16 %v4733_v41  ;;  %v4734_v25 = vunpack.i.l.bf16 %v4733_v41  ;;  %v2877_v38 = vsel %vm1244_vm8, %v2845_v21, %v4719_v40  ;;  %v2878_v58 = vsel %vm1244_vm8, %v2846_v30, %v4720_v42 }
 0x276   :  { %v4728_v57 = vpop.permute.xlu0 %4727 }
 0x277   :  { %v4730_v10 = vunpack.i.h.bf16 %v4728_v57  ;;  %v4729_v27 = vunpack.i.l.bf16 %v4728_v57  ;;  %v2911_v61 = vsel %vm1277_vm9, %v2879_v11, %v4734_v25  ;;  %v2912_v18 = vsel %vm1277_vm9, %v2880_v28, %v4735_v59 }
 0x278   :  { %v4743_v36 = vpop.permute.xlu1 %4742 }
 0x279   :  { %v4745_v13 = vunpack.i.h.bf16 %v4743_v36  ;;  %v4744_v22 = vunpack.i.l.bf16 %v4743_v36  ;;  %v2909_v53 = vsel %vm1277_vm9, %v2877_v38, %v4729_v27  ;;  %v2910_v49 = vsel %vm1277_vm9, %v2878_v58, %v4730_v10 }
 0x27a   :  { %v4738_v32 = vpop.permute.xlu0 %4737 }
 0x27b   :  { %v2943_v0 = vsel %vm1310_vm10, %v2911_v61, %v4744_v22  ;;  %v2944_v50 = vsel %vm1310_vm10, %v2912_v18, %v4745_v13  ;;  %v4740_v63 = vunpack.i.h.bf16 %v4738_v32  ;;  %v4739_v20 = vunpack.i.l.bf16 %v4738_v32 }
 0x27c   :  { %v2960_v17 = vpack.c.bf16 %v2944_v50, %v2943_v0 }
 0x27d   :  { %v2941_v48 = vsel %vm1310_vm10, %v2909_v53, %v4739_v20  ;;  %v2942_v16 = vsel %vm1310_vm10, %v2910_v49, %v4740_v63 }
 0x27e   :  { %v2959_v24 = vpack.c.bf16 %v2942_v16, %v2941_v48 }
 0x280   :  { %3452 = vmatprep.mubr.msk.bf16.mxu1 %vm1386_vm11, %v2959_v24 }
 0x281   :  { %3453 = vmatmul.mubr.msk.bf16.gmra.mrb[28].mxu1 %vm1386_vm11, %v2960_v17 }
 0x2c0   :  { %v3426_v6 = vpop.f32.mrb[0].mxu1 }
 0x2c1   :  { %3300 = vst [vmem:[%s8747_s2 + $0x110] sm:$0xff] %v3426_v6  ;;  %v3043_v23 = vpop.f32.mrb[1].mxu1 }
 0x2c2   :  { %3298 = vst [vmem:[%s8747_s2 + $0x100] sm:$0xff] %v3043_v23  ;;  %v3427_v3 = vpop.f32.mrb[2].mxu1 }
 0x2c3   :  { %3301 = vst [vmem:[%s8747_s2 + $0x118] sm:$0xff] %v3427_v3  ;;  %v3046_v14 = vpop.f32.mrb[3].mxu1 }
 0x2c4   :  { %3299 = vst [vmem:[%s8747_s2 + $0x108] sm:$0xff] %v3046_v14 }
 0x2d4   :  { %v3430_v33 = vpop.f32.mrb[4].mxu1 }
 0x2d5   :  { %3304 = vst [vmem:[%s8747_s2 + $0x130] sm:$0xff] %v3430_v33  ;;  %v3059_v8 = vpop.f32.mrb[5].mxu1 }
 0x2d6   :  { %3302 = vst [vmem:[%s8747_s2 + $0x120] sm:$0xff] %v3059_v8  ;;  %v3431_v4 = vpop.f32.mrb[6].mxu1 }
 0x2d7   :  { %3305 = vst [vmem:[%s8747_s2 + $0x138] sm:$0xff] %v3431_v4  ;;  %v3062_v29 = vpop.f32.mrb[7].mxu1 }
 0x2d8   :  { %3303 = vst [vmem:[%s8747_s2 + $0x128] sm:$0xff] %v3062_v29 }
 0x2e8   :  { %v3434_v34 = vpop.f32.mrb[8].mxu1 }
 0x2e9   :  { %3308 = vst [vmem:[%s8747_s2 + $0x150] sm:$0xff] %v3434_v34  ;;  %v3075_v62 = vpop.f32.mrb[9].mxu1 }
 0x2ea   :  { %3306 = vst [vmem:[%s8747_s2 + $0x140] sm:$0xff] %v3075_v62  ;;  %v3435_v55 = vpop.f32.mrb[10].mxu1 }
 0x2eb   :  { %3309 = vst [vmem:[%s8747_s2 + $0x158] sm:$0xff] %v3435_v55  ;;  %v3078_v26 = vpop.f32.mrb[11].mxu1 }
 0x2ec   :  { %3307 = vst [vmem:[%s8747_s2 + $0x148] sm:$0xff] %v3078_v26 }
 0x2fc   :  { %v3438_v47 = vpop.f32.mrb[12].mxu1 }
 0x2fd   :  { %3312 = vst [vmem:[%s8747_s2 + $0x170] sm:$0xff] %v3438_v47  ;;  %v3091_v51 = vpop.f32.mrb[13].mxu1 }
 0x2fe   :  { %3310 = vst [vmem:[%s8747_s2 + $0x160] sm:$0xff] %v3091_v51  ;;  %v3439_v56 = vpop.f32.mrb[14].mxu1 }
 0x2ff   :  { %3313 = vst [vmem:[%s8747_s2 + $0x178] sm:$0xff] %v3439_v56  ;;  %v3094_v12 = vpop.f32.mrb[15].mxu1 }
 0x300   :  { %3311 = vst [vmem:[%s8747_s2 + $0x168] sm:$0xff] %v3094_v12 }
 0x310   :  { %v3442_v45 = vpop.f32.mrb[16].mxu1 }
 0x311   :  { %3316 = vst [vmem:[%s8747_s2 + $0x190] sm:$0xff] %v3442_v45  ;;  %v3107_v46 = vpop.f32.mrb[17].mxu1 }
 0x312   :  { %3314 = vst [vmem:[%s8747_s2 + $0x180] sm:$0xff] %v3107_v46  ;;  %v3443_v31 = vpop.f32.mrb[18].mxu1 }
 0x313   :  { %3317 = vst [vmem:[%s8747_s2 + $0x198] sm:$0xff] %v3443_v31  ;;  %v3110_v2 = vpop.f32.mrb[19].mxu1 }
 0x314   :  { %3315 = vst [vmem:[%s8747_s2 + $0x188] sm:$0xff] %v3110_v2 }
 0x324   :  { %v3446_v43 = vpop.f32.mrb[20].mxu1 }
 0x325   :  { %3320 = vst [vmem:[%s8747_s2 + $0x1b0] sm:$0xff] %v3446_v43  ;;  %v3123_v5 = vpop.f32.mrb[21].mxu1 }
 0x326   :  { %3318 = vst [vmem:[%s8747_s2 + $0x1a0] sm:$0xff] %v3123_v5  ;;  %v3447_v35 = vpop.f32.mrb[22].mxu1 }
 0x327   :  { %3321 = vst [vmem:[%s8747_s2 + $0x1b8] sm:$0xff] %v3447_v35  ;;  %v3126_v54 = vpop.f32.mrb[23].mxu1 }
 0x328   :  { %3319 = vst [vmem:[%s8747_s2 + $0x1a8] sm:$0xff] %v3126_v54 }
 0x33c   :  { %v3450_v15 = vpop.f32.mrb[24].mxu1 }
 0x33d   :  { %3324 = vst [vmem:[%s8747_s2 + $0x1d0] sm:$0xff] %v3450_v15  ;;  %v3139_v44 = vpop.f32.mrb[25].mxu1 }
 0x33e   :  { %3322 = vst [vmem:[%s8747_s2 + $0x1c0] sm:$0xff] %v3139_v44  ;;  %v3451_v41 = vpop.f32.mrb[26].mxu1 }
 0x33f   :  { %3325 = vst [vmem:[%s8747_s2 + $0x1d8] sm:$0xff] %v3451_v41  ;;  %v3142_v37 = vpop.f32.mrb[27].mxu1 }
 0x340   :  { %3323 = vst [vmem:[%s8747_s2 + $0x1c8] sm:$0xff] %v3142_v37 }
 0x354   :  { %v3454_v39 = vpop.f32.mrb[28].mxu1 }
 0x355   :  { %3328 = vst [vmem:[%s8747_s2 + $0x1f0] sm:$0xff] %v3454_v39  ;;  %v3155_v52 = vpop.f32.mrb[29].mxu1 }
 0x356   :  { %3326 = vst [vmem:[%s8747_s2 + $0x1e0] sm:$0xff] %v3155_v52  ;;  %v3455_v19 = vpop.f32.mrb[30].mxu1 }
 0x357   :  { %3329 = vst [vmem:[%s8747_s2 + $0x1f8] sm:$0xff] %v3455_v19  ;;  %v3158_v42 = vpop.f32.mrb[31].mxu1 }
 0x358   :  { %3327 = vst [vmem:[%s8747_s2 + $0x1e8] sm:$0xff] %v3158_v42 }

</bundles_post_ra>
